<compile_context>
chip_gen: v7x
topology: tpu7x:2x2x1
jax: 0.10.0
libtpu: 0.0.40
codegen_flags: <defaults>
</compile_context>

<pallas_src>
import jax
import jax.numpy as jnp
from jax.experimental import pallas as pl
from jax.experimental.pallas import tpu as pltpu

HID = 64           # LSTM hidden size per direction
D = 2 * HID        # fused [fwd|bwd] state width = 128 lanes (one vreg row)
G = 4 * D          # fused gate width = 512 lanes, [i_f i_b|f_f f_b|o_f o_b|g_f g_b]
EMBED = 300        # embedding dim == LSTM input size (hard-coded 300 in the module)
PAD = 2            # padding of the shared activation buffer (max conv padding = 2)
SUB = 8            # sublane count -> batch padded to a multiple of this


# ---------------------------------------------------------------------------
# reference cell (PyTorch gate order i, f, g, o) -- used only by ref_forward
# ---------------------------------------------------------------------------
def _lstm_cell(x_t, h, c, wih, whh, b):
    gates = (jnp.dot(x_t, wih, preferred_element_type=jnp.float32)
             + jnp.dot(h, whh, preferred_element_type=jnp.float32)
             + b)
    i = jax.nn.sigmoid(gates[:, 0 * HID:1 * HID])
    f = jax.nn.sigmoid(gates[:, 1 * HID:2 * HID])
    g = jnp.tanh(gates[:, 2 * HID:3 * HID])
    o = jax.nn.sigmoid(gates[:, 3 * HID:4 * HID])
    c_new = f * c + i * g
    h_new = o * jnp.tanh(c_new)
    return h_new, c_new


# ---------------------------------------------------------------------------
# Pallas kernel
# ---------------------------------------------------------------------------
def make_lstmcnn_kernel(T, Bp):
    TP = T + 2 * PAD           # padded time extent of the activation buffer

    def kernel(x_ref, wih_ref, bih_ref, whh_ref, h0_ref,
               w13_ref, b13_ref, w2_ref, b2_ref,
               wfc13_ref, wfc2_ref, bfc_ref,
               out_ref, gx_ref, a_ref):
        # ---- hoisted input projection: both directions, all gates, bias folded.
        # (T*Bp, 300) x (300, 512); result parked in VMEM (not vregs).
        gx_ref[...] = (jnp.dot(x_ref[...], wih_ref[...],
                               preferred_element_type=jnp.float32) + bih_ref[...])

        # zero ONLY the PAD rows of the shared activation buffer
        zpad = jnp.zeros((PAD * Bp, D), jnp.float32)
        a_ref[0:PAD * Bp, :] = zpad
        a_ref[(PAD + T) * Bp:TP * Bp, :] = zpad

        # lane mask: True on the forward half of every 128-lane gate block
        lane = jax.lax.broadcasted_iota(jnp.int32, (Bp, G), 1)
        fwd_mask = (lane & (D - 1)) < HID

        # fused initial state (torch uses h0 for BOTH h and c — intentional)
        h_cat = jnp.broadcast_to(h0_ref[...], (Bp, D))
        c_cat = h_cat

        hf_rows = [None] * T
        hb_rows = [None] * T

        # ---- fused fwd/bwd recurrence: one block-diag (Bp,128)x(128,512) matmul,
        # one 384-lane sigmoid, two 128-lane tanh per step.
        # TODO(synk): for T > ~16 switch to lax.fori_loop(..., unroll=2..4).
        for t in range(T):
            s = T - 1 - t
            gx_t = gx_ref[t * Bp:(t + 1) * Bp, :]
            gx_s = gx_ref[s * Bp:(s + 1) * Bp, :]
            # fwd lanes take time t, bwd lanes take time T-1-t
            gx_step = jnp.where(fwd_mask, gx_t, gx_s)
            gates = gx_step + jnp.dot(h_cat, whh_ref[...],
                                      preferred_element_type=jnp.float32)
            # sigmoid via tanh identity: one EUP FIFO round trip instead of two
            sig = 0.5 * (jnp.tanh(0.5 * gates[:, 0:3 * D]) + 1.0)
            g = jnp.tanh(gates[:, 3 * D:4 * D])
            i = sig[:, 0:D]
            f = sig[:, D:2 * D]
            o = sig[:, 2 * D:3 * D]
            c_cat = f * c_cat + i * g
            h_cat = o * jnp.tanh(c_cat)
            a = jnp.maximum(h_cat, 0.0)          # relu(H)
            hf_rows[t] = a[:, 0:HID]             # forward output at time t
            hb_rows[s] = a[:, HID:D]             # backward output at time T-1-t

        # one bulk, full-width, sublane-aligned store of all T time rows
        merged = jnp.concatenate(
            [jnp.concatenate([hf_rows[t], hb_rows[t]], axis=-1) for t in range(T)],
            axis=0)                               # (T*Bp, 128)
        a_ref[PAD * Bp:(PAD + T) * Bp, :] = merged

        # ---- Conv1d taps as lane-dense matmuls, then bias + relu + max over time.
        def conv_relu_maxpool(w_ref, bias_ref, start, L, k, cout):
            acc = jnp.zeros((L * Bp, cout), jnp.float32)
            for j in range(k):
                win = a_ref[(start + j) * Bp:(start + j + L) * Bp, :]   # (L*Bp, 128)
                acc = acc + jnp.dot(win, w_ref[j],
                                    preferred_element_type=jnp.float32)
            acc = jnp.maximum(acc + bias_ref[...], 0.0)                  # relu
            return jnp.max(acc.reshape(L, Bp, cout), axis=0)             # (Bp, cout)

        # conv1 (k=3, pad=1) fused with conv3 (k=5, pad=2): conv1's real taps sit at
        # j=1..3, its j=0/j=4 taps are zero weights -> bit-exact, 128-lane output.
        z13 = conv_relu_maxpool(w13_ref, b13_ref, start=0, L=T, k=5, cout=D)
        # conv2 (k=4, pad=2) has L=T+1, kept separate
        z2 = conv_relu_maxpool(w2_ref, b2_ref, start=0, L=T + 1, k=4, cout=HID)

        # F.dropout(z, 0.5, training=False) is identity; lstm dropout is a no-op
        # with num_layers=1.  fc weights are row-split so no [z1|z2|z3] lane concat.
        out_ref[...] = (jnp.dot(z13, wfc13_ref[...], preferred_element_type=jnp.float32)
                        + jnp.dot(z2, wfc2_ref[...], preferred_element_type=jnp.float32)
                        + bfc_ref[...])

    return kernel


# ---------------------------------------------------------------------------
# wrapper: embedding gather, gate repacking, layout plumbing (plain JAX glue)
# ---------------------------------------------------------------------------
def _repack_gates(w):
    # PyTorch per-direction gate order (i, f, g, o) -> kernel order (i, f, o, g)
    return jnp.concatenate([w[..., 0:2 * HID],
                            w[..., 3 * HID:4 * HID],
                            w[..., 2 * HID:3 * HID]], axis=-1)


def _pack_dirs(wf, wb):
    # (..., 256) fwd + (..., 256) bwd -> (..., 512) gate-major, direction-minor
    lead = wf.shape[:-1]
    a = wf.reshape(*lead, 4, HID)
    b = wb.reshape(*lead, 4, HID)
    return jnp.concatenate([a, b], axis=-1).reshape(*lead, G)


def lstmcnn_forward(batch_ids, params):
    emb = params['embedding'][batch_ids]                        # (B, T, 300)
    B, T, _ = emb.shape
    Bp = -(-B // SUB) * SUB                                     # batch padded to 8
    x_tm = jnp.transpose(emb, (1, 0, 2)).astype(jnp.float32)    # (T, B, 300)
    x = jnp.pad(x_tm, ((0, 0), (0, Bp - B), (0, 0))).reshape(T * Bp, EMBED)
    label_size = params['fc_w'].shape[1]

    # fused input projection weights: gate-major / direction-minor, biases folded
    wih = _pack_dirs(_repack_gates(params['wih_f']), _repack_gates(params['wih_b']))
    bih = _pack_dirs(_repack_gates(params['b_f']), _repack_gates(params['b_b']))

    # block-diagonal recurrent weights: (128, 512); fwd rows 0:64, bwd rows 64:128
    wf = _repack_gates(params['whh_f']).reshape(HID, 4, HID)
    wb = _repack_gates(params['whh_b']).reshape(HID, 4, HID)
    zb = jnp.zeros((HID, 4, HID), jnp.float32)
    whh_bd = jnp.concatenate(
        [jnp.concatenate([wf, zb], axis=-1),
         jnp.concatenate([zb, wb], axis=-1)], axis=0).reshape(D, G)

    # fused initial state [h0_fwd | h0_bwd]
    h0_cat = jnp.concatenate([params['h0'][0:1, :], params['h0'][1:2, :]], axis=-1)

    # conv1 (k=3) zero-padded to k=5 and fused with conv3 along output channels
    w13 = jnp.zeros((5, D, D), jnp.float32)
    w13 = w13.at[1:4, :, 0:HID].set(params['conv1_w'])
    w13 = w13.at[:, :, HID:D].set(params['conv3_w'])
    b13 = jnp.concatenate([params['conv1_b'], params['conv3_b']], axis=-1)

    # fc weights split by source block: rows 0:64 (conv1) + 128:192 (conv3), 64:128 (conv2)
    fc_w = params['fc_w']
    wfc13 = jnp.concatenate([fc_w[0:HID], fc_w[2 * HID:3 * HID]], axis=0)   # (128, L)
    wfc2 = fc_w[HID:2 * HID]                                                # (64, L)

    kernel = make_lstmcnn_kernel(T, Bp)
    out = pl.pallas_call(
        kernel,
        out_shape=jax.ShapeDtypeStruct((Bp, label_size), jnp.float32),
        in_specs=[pl.BlockSpec(memory_space=pltpu.MemorySpace.VMEM)] * 12,
        out_specs=pl.BlockSpec(memory_space=pltpu.MemorySpace.VMEM),
        scratch_shapes=[
            pltpu.VMEM((T * Bp, G), jnp.float32),                 # gx (input projection)
            pltpu.VMEM(((T + 2 * PAD) * Bp, D), jnp.float32),     # relu(H) fwd|bwd buffer
        ],
        compiler_params=pltpu.CompilerParams(vmem_limit_bytes=32 * 1024 * 1024),
    )(x, wih, bih, whh_bd, h0_cat,
      w13, b13, params['conv2_w'], params['conv2_b'],
      wfc13, wfc2, params['fc_b'])
    # strip batch padding; mirrors `.squeeze()` of the torch model
    return jnp.squeeze(out[:B])


# ---------------------------------------------------------------------------
# parameters + pure-JAX reference
# ---------------------------------------------------------------------------
def init_params(key, vocab_size, label_size):
    ks = jax.random.split(key, 16)

    def u(k, shape, bound):
        return jax.random.uniform(k, shape, jnp.float32, -bound, bound)

    s_l = 1.0 / (HID ** 0.5)
    s_c3 = 1.0 / ((2 * HID * 3) ** 0.5)
    s_c4 = 1.0 / ((2 * HID * 4) ** 0.5)
    s_c5 = 1.0 / ((2 * HID * 5) ** 0.5)
    s_fc = 1.0 / ((3 * HID) ** 0.5)
    return dict(
        embedding=jax.random.normal(ks[0], (vocab_size, EMBED), jnp.float32) * 0.1,
        # LSTM weights stored transposed: (in, 4*hid); bias = b_ih + b_hh combined
        wih_f=u(ks[1], (EMBED, 4 * HID), s_l),
        whh_f=u(ks[2], (HID, 4 * HID), s_l),
        b_f=u(ks[3], (1, 4 * HID), s_l),
        wih_b=u(ks[4], (EMBED, 4 * HID), s_l),
        whh_b=u(ks[5], (HID, 4 * HID), s_l),
        b_b=u(ks[6], (1, 4 * HID), s_l),
        h0=jax.random.normal(ks[7], (2, HID), jnp.float32) * 0.1,   # (2,1,64) squeezed
        # conv weights stored per-tap: (k, C_in=128 [fwd|bwd], C_out=64)
        conv1_w=u(ks[8], (3, 2 * HID, HID), s_c3),
        conv1_b=u(ks[9], (1, HID), s_c3),
        conv2_w=u(ks[10], (4, 2 * HID, HID), s_c4),
        conv2_b=u(ks[11], (1, HID), s_c4),
        conv3_w=u(ks[12], (5, 2 * HID, HID), s_c5),
        conv3_b=u(ks[13], (1, HID), s_c5),
        fc_w=u(ks[14], (3 * HID, label_size), s_fc),
        fc_b=u(ks[15], (1, label_size), s_fc),
    )


def ref_forward(batch_ids, p):
    """Pure-JAX reference replicating the PyTorch forward semantics."""
    emb = p['embedding'][batch_ids].astype(jnp.float32)      # (B, T, 300)
    B, T, _ = emb.shape
    x_tm = jnp.transpose(emb, (1, 0, 2))                     # (T, B, 300)

    def run_dir(xs, wih, whh, b, h_init):
        def step(carry, x_t):
            h, c = carry
            h, c = _lstm_cell(x_t, h, c, wih, whh, b)
            return (h, c), h
        _, hs = jax.lax.scan(step, (h_init, h_init), xs)
        return hs                                            # (T, B, HID)

    h0f = jnp.broadcast_to(p['h0'][0:1, :], (B, HID))
    h0b = jnp.broadcast_to(p['h0'][1:2, :], (B, HID))
    Hf = run_dir(x_tm, p['wih_f'], p['whh_f'], p['b_f'], h0f)
    Hb = run_dir(x_tm[::-1], p['wih_b'], p['whh_b'], p['b_b'], h0b)[::-1]
    a = jax.nn.relu(jnp.concatenate([Hf, Hb], axis=-1))      # (T, B, 128)
    a_btc = jnp.transpose(a, (1, 0, 2))                      # (B, T, 128)

    def conv1d(a_in, w, bias, pad):
        k = w.shape[0]
        a_p = jnp.pad(a_in, ((0, 0), (pad, pad), (0, 0)))
        L = a_in.shape[1] + 2 * pad - k + 1
        acc = jnp.zeros((a_in.shape[0], L, HID), jnp.float32)
        for j in range(k):
            acc = acc + jnp.einsum('btc,co->bto', a_p[:, j:j + L, :], w[j])
        return jax.nn.relu(acc + bias)

    z1 = conv1d(a_btc, p['conv1_w'], p['conv1_b'], 1).max(axis=1)
    z2 = conv1d(a_btc, p['conv2_w'], p['conv2_b'], 2).max(axis=1)
    z3 = conv1d(a_btc, p['conv3_w'], p['conv3_b'], 2).max(axis=1)
    z = jnp.concatenate([z1, z2, z3], axis=-1)               # (B, 192)
    y = z @ p['fc_w'] + p['fc_b']
    return jnp.squeeze(y)


if __name__ == "__main__":
    vocab_size, label_size = 100, 6
    B, T = 2, 8

    key = jax.random.PRNGKey(0)
    k_param, k_ids = jax.random.split(key)
    params = init_params(k_param, vocab_size, label_size)
    batch = jax.random.randint(k_ids, (B, T), 0, vocab_size)

    y = jax.block_until_ready(lstmcnn_forward(batch, params))
    y_ref = jax.block_until_ready(ref_forward(batch, params))

    assert y.shape == (B, label_size), y.shape
    assert bool(jnp.all(jnp.isfinite(y)))
    assert jnp.allclose(y, y_ref, atol=5e-3, rtol=5e-3), (y, y_ref)
    print("KERNEL_OK")
</pallas_src>

<mosaic_0001>
module attributes {stable_mosaic.version = 11 : i64} {
  func.func @kernel(%arg0: memref<64x300xf32, #tpu.memory_space<vmem>>, %arg1: memref<300x512xf32, #tpu.memory_space<vmem>>, %arg2: memref<1x512xf32, #tpu.memory_space<vmem>>, %arg3: memref<128x512xf32, #tpu.memory_space<vmem>>, %arg4: memref<1x128xf32, #tpu.memory_space<vmem>>, %arg5: memref<5x128x128xf32, #tpu.memory_space<vmem>>, %arg6: memref<1x128xf32, #tpu.memory_space<vmem>>, %arg7: memref<4x128x64xf32, #tpu.memory_space<vmem>>, %arg8: memref<1x64xf32, #tpu.memory_space<vmem>>, %arg9: memref<128x6xf32, #tpu.memory_space<vmem>>, %arg10: memref<64x6xf32, #tpu.memory_space<vmem>>, %arg11: memref<1x6xf32, #tpu.memory_space<vmem>>, %arg12: memref<8x6xf32, #tpu.memory_space<vmem>>, %arg13: memref<64x512xf32, #tpu.memory_space<vmem>>, %arg14: memref<96x128xf32, #tpu.memory_space<vmem>>) attributes {dimension_semantics = [], scalar_prefetch = 0 : i64, scratch_operands = 2 : i64, tpu.core_type = #tpu.core_type<tc>} {
    %c0 = arith.constant 0 : index
    %c0_0 = arith.constant 0 : index
    %0 = vector.load %arg0[%c0, %c0_0] : memref<64x300xf32, #tpu.memory_space<vmem>>, vector<64x300xf32>
    %c0_1 = arith.constant 0 : index
    %c0_2 = arith.constant 0 : index
    %1 = vector.load %arg1[%c0_1, %c0_2] : memref<300x512xf32, #tpu.memory_space<vmem>>, vector<300x512xf32>
    %cst = arith.constant dense<0.000000e+00> : vector<64x512xf32>
    %2 = tpu.matmul %0, %1, %cst {dimension_numbers = #tpu.dot_dimension_numbers<[1], [0], [0], [1], [0, 0, 1, 1], [], []>} : vector<64x300xf32>, vector<300x512xf32>, vector<64x512xf32> -> vector<64x512xf32>
    %c0_3 = arith.constant 0 : index
    %c0_4 = arith.constant 0 : index
    %3 = vector.load %arg2[%c0_3, %c0_4] : memref<1x512xf32, #tpu.memory_space<vmem>>, vector<1x512xf32>
    %4 = vector.broadcast %3 : vector<1x512xf32> to vector<64x512xf32>
    %5 = arith.addf %2, %4 : vector<64x512xf32>
    %c0_5 = arith.constant 0 : index
    %c0_6 = arith.constant 0 : index
    %6 = vector.load %arg13[%c0_5, %c0_6] : memref<64x512xf32, #tpu.memory_space<vmem>>, vector<64x512xf32>
    tpu.vector_store %arg13[%c0_5, %c0_6], %5 {strides = array<i32>} : memref<64x512xf32, #tpu.memory_space<vmem>>, vector<64x512xf32>,
    %cst_7 = arith.constant 0.000000e+00 : f32
    %7 = vector.broadcast %cst_7 : f32 to vector<16x128xf32>
    %c0_8 = arith.constant 0 : index
    %c0_9 = arith.constant 0 : index
    %8 = vector.load %arg14[%c0_8, %c0_9] : memref<96x128xf32, #tpu.memory_space<vmem>>, vector<16x128xf32>
    tpu.vector_store %arg14[%c0_8, %c0_9], %7 {strides = array<i32>} : memref<96x128xf32, #tpu.memory_space<vmem>>, vector<16x128xf32>,
    %c80 = arith.constant 80 : index
    %c0_10 = arith.constant 0 : index
    %9 = vector.load %arg14[%c80, %c0_10] : memref<96x128xf32, #tpu.memory_space<vmem>>, vector<16x128xf32>
    tpu.vector_store %arg14[%c80, %c0_10], %7 {strides = array<i32>} : memref<96x128xf32, #tpu.memory_space<vmem>>, vector<16x128xf32>,
    %10 = tpu.iota {dimensions = array<i32: 1>} : vector<8x512xi32>
    %c127_i32 = arith.constant 127 : i32
    %11 = vector.broadcast %c127_i32 : i32 to vector<8x512xi32>
    %12 = arith.andi %10, %11 : vector<8x512xi32>
    %c64_i32 = arith.constant 64 : i32
    %13 = vector.broadcast %c64_i32 : i32 to vector<8x512xi32>
    %14 = arith.cmpi slt, %12, %13 : vector<8x512xi32>
    %c0_11 = arith.constant 0 : index
    %c0_12 = arith.constant 0 : index
    %15 = vector.load %arg4[%c0_11, %c0_12] : memref<1x128xf32, #tpu.memory_space<vmem>>, vector<1x128xf32>
    %16 = vector.shape_cast %15 : vector<1x128xf32> to vector<1x128xf32>
    %17 = vector.broadcast %16 : vector<1x128xf32> to vector<8x128xf32>
    %c0_13 = arith.constant 0 : index
    %c0_14 = arith.constant 0 : index
    %18 = vector.load %arg13[%c0_13, %c0_14] : memref<64x512xf32, #tpu.memory_space<vmem>>, vector<8x512xf32>
    %c56 = arith.constant 56 : index
    %c0_15 = arith.constant 0 : index
    %19 = vector.load %arg13[%c56, %c0_15] : memref<64x512xf32, #tpu.memory_space<vmem>>, vector<8x512xf32>
    %20 = arith.select %14, %18, %19 : vector<8x512xi1>, vector<8x512xf32>
    %c0_16 = arith.constant 0 : index
    %c0_17 = arith.constant 0 : index
    %21 = vector.load %arg3[%c0_16, %c0_17] : memref<128x512xf32, #tpu.memory_space<vmem>>, vector<128x512xf32>
    %cst_18 = arith.constant dense<0.000000e+00> : vector<8x512xf32>
    %22 = tpu.matmul %17, %21, %cst_18 {dimension_numbers = #tpu.dot_dimension_numbers<[1], [0], [0], [1], [0, 0, 1, 1], [], []>} : vector<8x128xf32>, vector<128x512xf32>, vector<8x512xf32> -> vector<8x512xf32>
    %23 = arith.addf %20, %22 : vector<8x512xf32>
    %24 = vector.extract_strided_slice %23 {offsets = [0, 0], sizes = [8, 384], strides = [1, 1]} : vector<8x512xf32> to vector<8x384xf32>
    %cst_19 = arith.constant 5.000000e-01 : f32
    %25 = vector.broadcast %cst_19 : f32 to vector<8x384xf32>
    %26 = arith.mulf %25, %24 : vector<8x384xf32>
    %27 = math.tanh %26 : vector<8x384xf32>
    %cst_20 = arith.constant 1.000000e+00 : f32
    %28 = vector.broadcast %cst_20 : f32 to vector<8x384xf32>
    %29 = arith.addf %27, %28 : vector<8x384xf32>
    %cst_21 = arith.constant 5.000000e-01 : f32
    %30 = vector.broadcast %cst_21 : f32 to vector<8x384xf32>
    %31 = arith.mulf %30, %29 : vector<8x384xf32>
    %32 = vector.extract_strided_slice %23 {offsets = [0, 384], sizes = [8, 128], strides = [1, 1]} : vector<8x512xf32> to vector<8x128xf32>
    %33 = math.tanh %32 : vector<8x128xf32>
    %34 = vector.extract_strided_slice %31 {offsets = [0, 0], sizes = [8, 128], strides = [1, 1]} : vector<8x384xf32> to vector<8x128xf32>
    %35 = vector.extract_strided_slice %31 {offsets = [0, 128], sizes = [8, 128], strides = [1, 1]} : vector<8x384xf32> to vector<8x128xf32>
    %36 = vector.extract_strided_slice %31 {offsets = [0, 256], sizes = [8, 128], strides = [1, 1]} : vector<8x384xf32> to vector<8x128xf32>
    %37 = arith.mulf %35, %17 : vector<8x128xf32>
    %38 = arith.mulf %34, %33 : vector<8x128xf32>
    %39 = arith.addf %37, %38 : vector<8x128xf32>
    %40 = math.tanh %39 : vector<8x128xf32>
    %41 = arith.mulf %36, %40 : vector<8x128xf32>
    %cst_22 = arith.constant 0.000000e+00 : f32
    %42 = vector.broadcast %cst_22 : f32 to vector<8x128xf32>
    %43 = arith.maximumf %41, %42 : vector<8x128xf32>
    %44 = vector.extract_strided_slice %43 {offsets = [0, 0], sizes = [8, 64], strides = [1, 1]} : vector<8x128xf32> to vector<8x64xf32>
    %45 = vector.extract_strided_slice %43 {offsets = [0, 64], sizes = [8, 64], strides = [1, 1]} : vector<8x128xf32> to vector<8x64xf32>
    %c8 = arith.constant 8 : index
    %c0_23 = arith.constant 0 : index
    %46 = vector.load %arg13[%c8, %c0_23] : memref<64x512xf32, #tpu.memory_space<vmem>>, vector<8x512xf32>
    %c48 = arith.constant 48 : index
    %c0_24 = arith.constant 0 : index
    %47 = vector.load %arg13[%c48, %c0_24] : memref<64x512xf32, #tpu.memory_space<vmem>>, vector<8x512xf32>
    %48 = arith.select %14, %46, %47 : vector<8x512xi1>, vector<8x512xf32>
    %c0_25 = arith.constant 0 : index
    %c0_26 = arith.constant 0 : index
    %49 = vector.load %arg3[%c0_25, %c0_26] : memref<128x512xf32, #tpu.memory_space<vmem>>, vector<128x512xf32>
    %cst_27 = arith.constant dense<0.000000e+00> : vector<8x512xf32>
    %50 = tpu.matmul %41, %49, %cst_27 {dimension_numbers = #tpu.dot_dimension_numbers<[1], [0], [0], [1], [0, 0, 1, 1], [], []>} : vector<8x128xf32>, vector<128x512xf32>, vector<8x512xf32> -> vector<8x512xf32>
    %51 = arith.addf %48, %50 : vector<8x512xf32>
    %52 = vector.extract_strided_slice %51 {offsets = [0, 0], sizes = [8, 384], strides = [1, 1]} : vector<8x512xf32> to vector<8x384xf32>
    %cst_28 = arith.constant 5.000000e-01 : f32
    %53 = vector.broadcast %cst_28 : f32 to vector<8x384xf32>
    %54 = arith.mulf %53, %52 : vector<8x384xf32>
    %55 = math.tanh %54 : vector<8x384xf32>
    %cst_29 = arith.constant 1.000000e+00 : f32
    %56 = vector.broadcast %cst_29 : f32 to vector<8x384xf32>
    %57 = arith.addf %55, %56 : vector<8x384xf32>
    %cst_30 = arith.constant 5.000000e-01 : f32
    %58 = vector.broadcast %cst_30 : f32 to vector<8x384xf32>
    %59 = arith.mulf %58, %57 : vector<8x384xf32>
    %60 = vector.extract_strided_slice %51 {offsets = [0, 384], sizes = [8, 128], strides = [1, 1]} : vector<8x512xf32> to vector<8x128xf32>
    %61 = math.tanh %60 : vector<8x128xf32>
    %62 = vector.extract_strided_slice %59 {offsets = [0, 0], sizes = [8, 128], strides = [1, 1]} : vector<8x384xf32> to vector<8x128xf32>
    %63 = vector.extract_strided_slice %59 {offsets = [0, 128], sizes = [8, 128], strides = [1, 1]} : vector<8x384xf32> to vector<8x128xf32>
    %64 = vector.extract_strided_slice %59 {offsets = [0, 256], sizes = [8, 128], strides = [1, 1]} : vector<8x384xf32> to vector<8x128xf32>
    %65 = arith.mulf %63, %39 : vector<8x128xf32>
    %66 = arith.mulf %62, %61 : vector<8x128xf32>
    %67 = arith.addf %65, %66 : vector<8x128xf32>
    %68 = math.tanh %67 : vector<8x128xf32>
    %69 = arith.mulf %64, %68 : vector<8x128xf32>
    %cst_31 = arith.constant 0.000000e+00 : f32
    %70 = vector.broadcast %cst_31 : f32 to vector<8x128xf32>
    %71 = arith.maximumf %69, %70 : vector<8x128xf32>
    %72 = vector.extract_strided_slice %71 {offsets = [0, 0], sizes = [8, 64], strides = [1, 1]} : vector<8x128xf32> to vector<8x64xf32>
    %73 = vector.extract_strided_slice %71 {offsets = [0, 64], sizes = [8, 64], strides = [1, 1]} : vector<8x128xf32> to vector<8x64xf32>
    %c16 = arith.constant 16 : index
    %c0_32 = arith.constant 0 : index
    %74 = vector.load %arg13[%c16, %c0_32] : memref<64x512xf32, #tpu.memory_space<vmem>>, vector<8x512xf32>
    %c40 = arith.constant 40 : index
    %c0_33 = arith.constant 0 : index
    %75 = vector.load %arg13[%c40, %c0_33] : memref<64x512xf32, #tpu.memory_space<vmem>>, vector<8x512xf32>
    %76 = arith.select %14, %74, %75 : vector<8x512xi1>, vector<8x512xf32>
    %c0_34 = arith.constant 0 : index
    %c0_35 = arith.constant 0 : index
    %77 = vector.load %arg3[%c0_34, %c0_35] : memref<128x512xf32, #tpu.memory_space<vmem>>, vector<128x512xf32>
    %cst_36 = arith.constant dense<0.000000e+00> : vector<8x512xf32>
    %78 = tpu.matmul %69, %77, %cst_36 {dimension_numbers = #tpu.dot_dimension_numbers<[1], [0], [0], [1], [0, 0, 1, 1], [], []>} : vector<8x128xf32>, vector<128x512xf32>, vector<8x512xf32> -> vector<8x512xf32>
    %79 = arith.addf %76, %78 : vector<8x512xf32>
    %80 = vector.extract_strided_slice %79 {offsets = [0, 0], sizes = [8, 384], strides = [1, 1]} : vector<8x512xf32> to vector<8x384xf32>
    %cst_37 = arith.constant 5.000000e-01 : f32
    %81 = vector.broadcast %cst_37 : f32 to vector<8x384xf32>
    %82 = arith.mulf %81, %80 : vector<8x384xf32>
    %83 = math.tanh %82 : vector<8x384xf32>
    %cst_38 = arith.constant 1.000000e+00 : f32
    %84 = vector.broadcast %cst_38 : f32 to vector<8x384xf32>
    %85 = arith.addf %83, %84 : vector<8x384xf32>
    %cst_39 = arith.constant 5.000000e-01 : f32
    %86 = vector.broadcast %cst_39 : f32 to vector<8x384xf32>
    %87 = arith.mulf %86, %85 : vector<8x384xf32>
    %88 = vector.extract_strided_slice %79 {offsets = [0, 384], sizes = [8, 128], strides = [1, 1]} : vector<8x512xf32> to vector<8x128xf32>
    %89 = math.tanh %88 : vector<8x128xf32>
    %90 = vector.extract_strided_slice %87 {offsets = [0, 0], sizes = [8, 128], strides = [1, 1]} : vector<8x384xf32> to vector<8x128xf32>
    %91 = vector.extract_strided_slice %87 {offsets = [0, 128], sizes = [8, 128], strides = [1, 1]} : vector<8x384xf32> to vector<8x128xf32>
    %92 = vector.extract_strided_slice %87 {offsets = [0, 256], sizes = [8, 128], strides = [1, 1]} : vector<8x384xf32> to vector<8x128xf32>
    %93 = arith.mulf %91, %67 : vector<8x128xf32>
    %94 = arith.mulf %90, %89 : vector<8x128xf32>
    %95 = arith.addf %93, %94 : vector<8x128xf32>
    %96 = math.tanh %95 : vector<8x128xf32>
    %97 = arith.mulf %92, %96 : vector<8x128xf32>
    %cst_40 = arith.constant 0.000000e+00 : f32
    %98 = vector.broadcast %cst_40 : f32 to vector<8x128xf32>
    %99 = arith.maximumf %97, %98 : vector<8x128xf32>
    %100 = vector.extract_strided_slice %99 {offsets = [0, 0], sizes = [8, 64], strides = [1, 1]} : vector<8x128xf32> to vector<8x64xf32>
    %101 = vector.extract_strided_slice %99 {offsets = [0, 64], sizes = [8, 64], strides = [1, 1]} : vector<8x128xf32> to vector<8x64xf32>
    %c24 = arith.constant 24 : index
    %c0_41 = arith.constant 0 : index
    %102 = vector.load %arg13[%c24, %c0_41] : memref<64x512xf32, #tpu.memory_space<vmem>>, vector<8x512xf32>
    %c32 = arith.constant 32 : index
    %c0_42 = arith.constant 0 : index
    %103 = vector.load %arg13[%c32, %c0_42] : memref<64x512xf32, #tpu.memory_space<vmem>>, vector<8x512xf32>
    %104 = arith.select %14, %102, %103 : vector<8x512xi1>, vector<8x512xf32>
    %c0_43 = arith.constant 0 : index
    %c0_44 = arith.constant 0 : index
    %105 = vector.load %arg3[%c0_43, %c0_44] : memref<128x512xf32, #tpu.memory_space<vmem>>, vector<128x512xf32>
    %cst_45 = arith.constant dense<0.000000e+00> : vector<8x512xf32>
    %106 = tpu.matmul %97, %105, %cst_45 {dimension_numbers = #tpu.dot_dimension_numbers<[1], [0], [0], [1], [0, 0, 1, 1], [], []>} : vector<8x128xf32>, vector<128x512xf32>, vector<8x512xf32> -> vector<8x512xf32>
    %107 = arith.addf %104, %106 : vector<8x512xf32>
    %108 = vector.extract_strided_slice %107 {offsets = [0, 0], sizes = [8, 384], strides = [1, 1]} : vector<8x512xf32> to vector<8x384xf32>
    %cst_46 = arith.constant 5.000000e-01 : f32
    %109 = vector.broadcast %cst_46 : f32 to vector<8x384xf32>
    %110 = arith.mulf %109, %108 : vector<8x384xf32>
    %111 = math.tanh %110 : vector<8x384xf32>
    %cst_47 = arith.constant 1.000000e+00 : f32
    %112 = vector.broadcast %cst_47 : f32 to vector<8x384xf32>
    %113 = arith.addf %111, %112 : vector<8x384xf32>
    %cst_48 = arith.constant 5.000000e-01 : f32
    %114 = vector.broadcast %cst_48 : f32 to vector<8x384xf32>
    %115 = arith.mulf %114, %113 : vector<8x384xf32>
    %116 = vector.extract_strided_slice %107 {offsets = [0, 384], sizes = [8, 128], strides = [1, 1]} : vector<8x512xf32> to vector<8x128xf32>
    %117 = math.tanh %116 : vector<8x128xf32>
    %118 = vector.extract_strided_slice %115 {offsets = [0, 0], sizes = [8, 128], strides = [1, 1]} : vector<8x384xf32> to vector<8x128xf32>
    %119 = vector.extract_strided_slice %115 {offsets = [0, 128], sizes = [8, 128], strides = [1, 1]} : vector<8x384xf32> to vector<8x128xf32>
    %120 = vector.extract_strided_slice %115 {offsets = [0, 256], sizes = [8, 128], strides = [1, 1]} : vector<8x384xf32> to vector<8x128xf32>
    %121 = arith.mulf %119, %95 : vector<8x128xf32>
    %122 = arith.mulf %118, %117 : vector<8x128xf32>
    %123 = arith.addf %121, %122 : vector<8x128xf32>
    %124 = math.tanh %123 : vector<8x128xf32>
    %125 = arith.mulf %120, %124 : vector<8x128xf32>
    %cst_49 = arith.constant 0.000000e+00 : f32
    %126 = vector.broadcast %cst_49 : f32 to vector<8x128xf32>
    %127 = arith.maximumf %125, %126 : vector<8x128xf32>
    %128 = vector.extract_strided_slice %127 {offsets = [0, 0], sizes = [8, 64], strides = [1, 1]} : vector<8x128xf32> to vector<8x64xf32>
    %129 = vector.extract_strided_slice %127 {offsets = [0, 64], sizes = [8, 64], strides = [1, 1]} : vector<8x128xf32> to vector<8x64xf32>
    %c32_50 = arith.constant 32 : index
    %c0_51 = arith.constant 0 : index
    %130 = vector.load %arg13[%c32_50, %c0_51] : memref<64x512xf32, #tpu.memory_space<vmem>>, vector<8x512xf32>
    %c24_52 = arith.constant 24 : index
    %c0_53 = arith.constant 0 : index
    %131 = vector.load %arg13[%c24_52, %c0_53] : memref<64x512xf32, #tpu.memory_space<vmem>>, vector<8x512xf32>
    %132 = arith.select %14, %130, %131 : vector<8x512xi1>, vector<8x512xf32>
    %c0_54 = arith.constant 0 : index
    %c0_55 = arith.constant 0 : index
    %133 = vector.load %arg3[%c0_54, %c0_55] : memref<128x512xf32, #tpu.memory_space<vmem>>, vector<128x512xf32>
    %cst_56 = arith.constant dense<0.000000e+00> : vector<8x512xf32>
    %134 = tpu.matmul %125, %133, %cst_56 {dimension_numbers = #tpu.dot_dimension_numbers<[1], [0], [0], [1], [0, 0, 1, 1], [], []>} : vector<8x128xf32>, vector<128x512xf32>, vector<8x512xf32> -> vector<8x512xf32>
    %135 = arith.addf %132, %134 : vector<8x512xf32>
    %136 = vector.extract_strided_slice %135 {offsets = [0, 0], sizes = [8, 384], strides = [1, 1]} : vector<8x512xf32> to vector<8x384xf32>
    %cst_57 = arith.constant 5.000000e-01 : f32
    %137 = vector.broadcast %cst_57 : f32 to vector<8x384xf32>
    %138 = arith.mulf %137, %136 : vector<8x384xf32>
    %139 = math.tanh %138 : vector<8x384xf32>
    %cst_58 = arith.constant 1.000000e+00 : f32
    %140 = vector.broadcast %cst_58 : f32 to vector<8x384xf32>
    %141 = arith.addf %139, %140 : vector<8x384xf32>
    %cst_59 = arith.constant 5.000000e-01 : f32
    %142 = vector.broadcast %cst_59 : f32 to vector<8x384xf32>
    %143 = arith.mulf %142, %141 : vector<8x384xf32>
    %144 = vector.extract_strided_slice %135 {offsets = [0, 384], sizes = [8, 128], strides = [1, 1]} : vector<8x512xf32> to vector<8x128xf32>
    %145 = math.tanh %144 : vector<8x128xf32>
    %146 = vector.extract_strided_slice %143 {offsets = [0, 0], sizes = [8, 128], strides = [1, 1]} : vector<8x384xf32> to vector<8x128xf32>
    %147 = vector.extract_strided_slice %143 {offsets = [0, 128], sizes = [8, 128], strides = [1, 1]} : vector<8x384xf32> to vector<8x128xf32>
    %148 = vector.extract_strided_slice %143 {offsets = [0, 256], sizes = [8, 128], strides = [1, 1]} : vector<8x384xf32> to vector<8x128xf32>
    %149 = arith.mulf %147, %123 : vector<8x128xf32>
    %150 = arith.mulf %146, %145 : vector<8x128xf32>
    %151 = arith.addf %149, %150 : vector<8x128xf32>
    %152 = math.tanh %151 : vector<8x128xf32>
    %153 = arith.mulf %148, %152 : vector<8x128xf32>
    %cst_60 = arith.constant 0.000000e+00 : f32
    %154 = vector.broadcast %cst_60 : f32 to vector<8x128xf32>
    %155 = arith.maximumf %153, %154 : vector<8x128xf32>
    %156 = vector.extract_strided_slice %155 {offsets = [0, 0], sizes = [8, 64], strides = [1, 1]} : vector<8x128xf32> to vector<8x64xf32>
    %157 = vector.extract_strided_slice %155 {offsets = [0, 64], sizes = [8, 64], strides = [1, 1]} : vector<8x128xf32> to vector<8x64xf32>
    %c40_61 = arith.constant 40 : index
    %c0_62 = arith.constant 0 : index
    %158 = vector.load %arg13[%c40_61, %c0_62] : memref<64x512xf32, #tpu.memory_space<vmem>>, vector<8x512xf32>
    %c16_63 = arith.constant 16 : index
    %c0_64 = arith.constant 0 : index
    %159 = vector.load %arg13[%c16_63, %c0_64] : memref<64x512xf32, #tpu.memory_space<vmem>>, vector<8x512xf32>
    %160 = arith.select %14, %158, %159 : vector<8x512xi1>, vector<8x512xf32>
    %c0_65 = arith.constant 0 : index
    %c0_66 = arith.constant 0 : index
    %161 = vector.load %arg3[%c0_65, %c0_66] : memref<128x512xf32, #tpu.memory_space<vmem>>, vector<128x512xf32>
    %cst_67 = arith.constant dense<0.000000e+00> : vector<8x512xf32>
    %162 = tpu.matmul %153, %161, %cst_67 {dimension_numbers = #tpu.dot_dimension_numbers<[1], [0], [0], [1], [0, 0, 1, 1], [], []>} : vector<8x128xf32>, vector<128x512xf32>, vector<8x512xf32> -> vector<8x512xf32>
    %163 = arith.addf %160, %162 : vector<8x512xf32>
    %164 = vector.extract_strided_slice %163 {offsets = [0, 0], sizes = [8, 384], strides = [1, 1]} : vector<8x512xf32> to vector<8x384xf32>
    %cst_68 = arith.constant 5.000000e-01 : f32
    %165 = vector.broadcast %cst_68 : f32 to vector<8x384xf32>
    %166 = arith.mulf %165, %164 : vector<8x384xf32>
    %167 = math.tanh %166 : vector<8x384xf32>
    %cst_69 = arith.constant 1.000000e+00 : f32
    %168 = vector.broadcast %cst_69 : f32 to vector<8x384xf32>
    %169 = arith.addf %167, %168 : vector<8x384xf32>
    %cst_70 = arith.constant 5.000000e-01 : f32
    %170 = vector.broadcast %cst_70 : f32 to vector<8x384xf32>
    %171 = arith.mulf %170, %169 : vector<8x384xf32>
    %172 = vector.extract_strided_slice %163 {offsets = [0, 384], sizes = [8, 128], strides = [1, 1]} : vector<8x512xf32> to vector<8x128xf32>
    %173 = math.tanh %172 : vector<8x128xf32>
    %174 = vector.extract_strided_slice %171 {offsets = [0, 0], sizes = [8, 128], strides = [1, 1]} : vector<8x384xf32> to vector<8x128xf32>
    %175 = vector.extract_strided_slice %171 {offsets = [0, 128], sizes = [8, 128], strides = [1, 1]} : vector<8x384xf32> to vector<8x128xf32>
    %176 = vector.extract_strided_slice %171 {offsets = [0, 256], sizes = [8, 128], strides = [1, 1]} : vector<8x384xf32> to vector<8x128xf32>
    %177 = arith.mulf %175, %151 : vector<8x128xf32>
    %178 = arith.mulf %174, %173 : vector<8x128xf32>
    %179 = arith.addf %177, %178 : vector<8x128xf32>
    %180 = math.tanh %179 : vector<8x128xf32>
    %181 = arith.mulf %176, %180 : vector<8x128xf32>
    %cst_71 = arith.constant 0.000000e+00 : f32
    %182 = vector.broadcast %cst_71 : f32 to vector<8x128xf32>
    %183 = arith.maximumf %181, %182 : vector<8x128xf32>
    %184 = vector.extract_strided_slice %183 {offsets = [0, 0], sizes = [8, 64], strides = [1, 1]} : vector<8x128xf32> to vector<8x64xf32>
    %185 = vector.extract_strided_slice %183 {offsets = [0, 64], sizes = [8, 64], strides = [1, 1]} : vector<8x128xf32> to vector<8x64xf32>
    %c48_72 = arith.constant 48 : index
    %c0_73 = arith.constant 0 : index
    %186 = vector.load %arg13[%c48_72, %c0_73] : memref<64x512xf32, #tpu.memory_space<vmem>>, vector<8x512xf32>
    %c8_74 = arith.constant 8 : index
    %c0_75 = arith.constant 0 : index
    %187 = vector.load %arg13[%c8_74, %c0_75] : memref<64x512xf32, #tpu.memory_space<vmem>>, vector<8x512xf32>
    %188 = arith.select %14, %186, %187 : vector<8x512xi1>, vector<8x512xf32>
    %c0_76 = arith.constant 0 : index
    %c0_77 = arith.constant 0 : index
    %189 = vector.load %arg3[%c0_76, %c0_77] : memref<128x512xf32, #tpu.memory_space<vmem>>, vector<128x512xf32>
    %cst_78 = arith.constant dense<0.000000e+00> : vector<8x512xf32>
    %190 = tpu.matmul %181, %189, %cst_78 {dimension_numbers = #tpu.dot_dimension_numbers<[1], [0], [0], [1], [0, 0, 1, 1], [], []>} : vector<8x128xf32>, vector<128x512xf32>, vector<8x512xf32> -> vector<8x512xf32>
    %191 = arith.addf %188, %190 : vector<8x512xf32>
    %192 = vector.extract_strided_slice %191 {offsets = [0, 0], sizes = [8, 384], strides = [1, 1]} : vector<8x512xf32> to vector<8x384xf32>
    %cst_79 = arith.constant 5.000000e-01 : f32
    %193 = vector.broadcast %cst_79 : f32 to vector<8x384xf32>
    %194 = arith.mulf %193, %192 : vector<8x384xf32>
    %195 = math.tanh %194 : vector<8x384xf32>
    %cst_80 = arith.constant 1.000000e+00 : f32
    %196 = vector.broadcast %cst_80 : f32 to vector<8x384xf32>
    %197 = arith.addf %195, %196 : vector<8x384xf32>
    %cst_81 = arith.constant 5.000000e-01 : f32
    %198 = vector.broadcast %cst_81 : f32 to vector<8x384xf32>
    %199 = arith.mulf %198, %197 : vector<8x384xf32>
    %200 = vector.extract_strided_slice %191 {offsets = [0, 384], sizes = [8, 128], strides = [1, 1]} : vector<8x512xf32> to vector<8x128xf32>
    %201 = math.tanh %200 : vector<8x128xf32>
    %202 = vector.extract_strided_slice %199 {offsets = [0, 0], sizes = [8, 128], strides = [1, 1]} : vector<8x384xf32> to vector<8x128xf32>
    %203 = vector.extract_strided_slice %199 {offsets = [0, 128], sizes = [8, 128], strides = [1, 1]} : vector<8x384xf32> to vector<8x128xf32>
    %204 = vector.extract_strided_slice %199 {offsets = [0, 256], sizes = [8, 128], strides = [1, 1]} : vector<8x384xf32> to vector<8x128xf32>
    %205 = arith.mulf %203, %179 : vector<8x128xf32>
    %206 = arith.mulf %202, %201 : vector<8x128xf32>
    %207 = arith.addf %205, %206 : vector<8x128xf32>
    %208 = math.tanh %207 : vector<8x128xf32>
    %209 = arith.mulf %204, %208 : vector<8x128xf32>
    %cst_82 = arith.constant 0.000000e+00 : f32
    %210 = vector.broadcast %cst_82 : f32 to vector<8x128xf32>
    %211 = arith.maximumf %209, %210 : vector<8x128xf32>
    %212 = vector.extract_strided_slice %211 {offsets = [0, 0], sizes = [8, 64], strides = [1, 1]} : vector<8x128xf32> to vector<8x64xf32>
    %213 = vector.extract_strided_slice %211 {offsets = [0, 64], sizes = [8, 64], strides = [1, 1]} : vector<8x128xf32> to vector<8x64xf32>
    %c56_83 = arith.constant 56 : index
    %c0_84 = arith.constant 0 : index
    %214 = vector.load %arg13[%c56_83, %c0_84] : memref<64x512xf32, #tpu.memory_space<vmem>>, vector<8x512xf32>
    %c0_85 = arith.constant 0 : index
    %c0_86 = arith.constant 0 : index
    %215 = vector.load %arg13[%c0_85, %c0_86] : memref<64x512xf32, #tpu.memory_space<vmem>>, vector<8x512xf32>
    %216 = arith.select %14, %214, %215 : vector<8x512xi1>, vector<8x512xf32>
    %c0_87 = arith.constant 0 : index
    %c0_88 = arith.constant 0 : index
    %217 = vector.load %arg3[%c0_87, %c0_88] : memref<128x512xf32, #tpu.memory_space<vmem>>, vector<128x512xf32>
    %cst_89 = arith.constant dense<0.000000e+00> : vector<8x512xf32>
    %218 = tpu.matmul %209, %217, %cst_89 {dimension_numbers = #tpu.dot_dimension_numbers<[1], [0], [0], [1], [0, 0, 1, 1], [], []>} : vector<8x128xf32>, vector<128x512xf32>, vector<8x512xf32> -> vector<8x512xf32>
    %219 = arith.addf %216, %218 : vector<8x512xf32>
    %220 = vector.extract_strided_slice %219 {offsets = [0, 0], sizes = [8, 384], strides = [1, 1]} : vector<8x512xf32> to vector<8x384xf32>
    %cst_90 = arith.constant 5.000000e-01 : f32
    %221 = vector.broadcast %cst_90 : f32 to vector<8x384xf32>
    %222 = arith.mulf %221, %220 : vector<8x384xf32>
    %223 = math.tanh %222 : vector<8x384xf32>
    %cst_91 = arith.constant 1.000000e+00 : f32
    %224 = vector.broadcast %cst_91 : f32 to vector<8x384xf32>
    %225 = arith.addf %223, %224 : vector<8x384xf32>
    %cst_92 = arith.constant 5.000000e-01 : f32
    %226 = vector.broadcast %cst_92 : f32 to vector<8x384xf32>
    %227 = arith.mulf %226, %225 : vector<8x384xf32>
    %228 = vector.extract_strided_slice %219 {offsets = [0, 384], sizes = [8, 128], strides = [1, 1]} : vector<8x512xf32> to vector<8x128xf32>
    %229 = math.tanh %228 : vector<8x128xf32>
    %230 = vector.extract_strided_slice %227 {offsets = [0, 0], sizes = [8, 128], strides = [1, 1]} : vector<8x384xf32> to vector<8x128xf32>
    %231 = vector.extract_strided_slice %227 {offsets = [0, 128], sizes = [8, 128], strides = [1, 1]} : vector<8x384xf32> to vector<8x128xf32>
    %232 = vector.extract_strided_slice %227 {offsets = [0, 256], sizes = [8, 128], strides = [1, 1]} : vector<8x384xf32> to vector<8x128xf32>
    %233 = arith.mulf %231, %207 : vector<8x128xf32>
    %234 = arith.mulf %230, %229 : vector<8x128xf32>
    %235 = arith.addf %233, %234 : vector<8x128xf32>
    %236 = math.tanh %235 : vector<8x128xf32>
    %237 = arith.mulf %232, %236 : vector<8x128xf32>
    %cst_93 = arith.constant 0.000000e+00 : f32
    %238 = vector.broadcast %cst_93 : f32 to vector<8x128xf32>
    %239 = arith.maximumf %237, %238 : vector<8x128xf32>
    %240 = vector.extract_strided_slice %239 {offsets = [0, 0], sizes = [8, 64], strides = [1, 1]} : vector<8x128xf32> to vector<8x64xf32>
    %241 = vector.extract_strided_slice %239 {offsets = [0, 64], sizes = [8, 64], strides = [1, 1]} : vector<8x128xf32> to vector<8x64xf32>
    %242 = tpu.concatenate %44, %241 in 1 : vector<8x64xf32>, vector<8x64xf32> -> vector<8x128xf32>
    %243 = tpu.concatenate %72, %213 in 1 : vector<8x64xf32>, vector<8x64xf32> -> vector<8x128xf32>
    %244 = tpu.concatenate %100, %185 in 1 : vector<8x64xf32>, vector<8x64xf32> -> vector<8x128xf32>
    %245 = tpu.concatenate %128, %157 in 1 : vector<8x64xf32>, vector<8x64xf32> -> vector<8x128xf32>
    %246 = tpu.concatenate %156, %129 in 1 : vector<8x64xf32>, vector<8x64xf32> -> vector<8x128xf32>
    %247 = tpu.concatenate %184, %101 in 1 : vector<8x64xf32>, vector<8x64xf32> -> vector<8x128xf32>
    %248 = tpu.concatenate %212, %73 in 1 : vector<8x64xf32>, vector<8x64xf32> -> vector<8x128xf32>
    %249 = tpu.concatenate %240, %45 in 1 : vector<8x64xf32>, vector<8x64xf32> -> vector<8x128xf32>
    %250 = tpu.concatenate %242, %243, %244, %245, %246, %247, %248, %249 in 0 : vector<8x128xf32>, vector<8x128xf32>, vector<8x128xf32>, vector<8x128xf32>, vector<8x128xf32>, vector<8x128xf32>, vector<8x128xf32>, vector<8x128xf32> -> vector<64x128xf32>
    %c16_94 = arith.constant 16 : index
    %c0_95 = arith.constant 0 : index
    %251 = vector.load %arg14[%c16_94, %c0_95] : memref<96x128xf32, #tpu.memory_space<vmem>>, vector<64x128xf32>
    tpu.vector_store %arg14[%c16_94, %c0_95], %250 {strides = array<i32>} : memref<96x128xf32, #tpu.memory_space<vmem>>, vector<64x128xf32>,
    %cst_96 = arith.constant 0.000000e+00 : f32
    %252 = vector.broadcast %cst_96 : f32 to vector<64x128xf32>
    %c0_97 = arith.constant 0 : index
    %c0_98 = arith.constant 0 : index
    %253 = vector.load %arg14[%c0_97, %c0_98] : memref<96x128xf32, #tpu.memory_space<vmem>>, vector<64x128xf32>
    %c0_99 = arith.constant 0 : index
    %c0_100 = arith.constant 0 : index
    %c0_101 = arith.constant 0 : index
    %254 = vector.load %arg5[%c0_99, %c0_100, %c0_101] : memref<5x128x128xf32, #tpu.memory_space<vmem>>, vector<1x128x128xf32>
    %255 = vector.shape_cast %254 : vector<1x128x128xf32> to vector<128x128xf32>
    %cst_102 = arith.constant dense<0.000000e+00> : vector<64x128xf32>
    %256 = tpu.matmul %253, %255, %cst_102 {dimension_numbers = #tpu.dot_dimension_numbers<[1], [0], [0], [1], [0, 0, 1, 1], [], []>} : vector<64x128xf32>, vector<128x128xf32>, vector<64x128xf32> -> vector<64x128xf32>
    %257 = arith.addf %252, %256 : vector<64x128xf32>
    %c8_103 = arith.constant 8 : index
    %c0_104 = arith.constant 0 : index
    %258 = vector.load %arg14[%c8_103, %c0_104] : memref<96x128xf32, #tpu.memory_space<vmem>>, vector<64x128xf32>
    %c1 = arith.constant 1 : index
    %c0_105 = arith.constant 0 : index
    %c0_106 = arith.constant 0 : index
    %259 = vector.load %arg5[%c1, %c0_105, %c0_106] : memref<5x128x128xf32, #tpu.memory_space<vmem>>, vector<1x128x128xf32>
    %260 = vector.shape_cast %259 : vector<1x128x128xf32> to vector<128x128xf32>
    %cst_107 = arith.constant dense<0.000000e+00> : vector<64x128xf32>
    %261 = tpu.matmul %258, %260, %cst_107 {dimension_numbers = #tpu.dot_dimension_numbers<[1], [0], [0], [1], [0, 0, 1, 1], [], []>} : vector<64x128xf32>, vector<128x128xf32>, vector<64x128xf32> -> vector<64x128xf32>
    %262 = arith.addf %257, %261 : vector<64x128xf32>
    %c16_108 = arith.constant 16 : index
    %c0_109 = arith.constant 0 : index
    %263 = vector.load %arg14[%c16_108, %c0_109] : memref<96x128xf32, #tpu.memory_space<vmem>>, vector<64x128xf32>
    %c2 = arith.constant 2 : index
    %c0_110 = arith.constant 0 : index
    %c0_111 = arith.constant 0 : index
    %264 = vector.load %arg5[%c2, %c0_110, %c0_111] : memref<5x128x128xf32, #tpu.memory_space<vmem>>, vector<1x128x128xf32>
    %265 = vector.shape_cast %264 : vector<1x128x128xf32> to vector<128x128xf32>
    %cst_112 = arith.constant dense<0.000000e+00> : vector<64x128xf32>
    %266 = tpu.matmul %263, %265, %cst_112 {dimension_numbers = #tpu.dot_dimension_numbers<[1], [0], [0], [1], [0, 0, 1, 1], [], []>} : vector<64x128xf32>, vector<128x128xf32>, vector<64x128xf32> -> vector<64x128xf32>
    %267 = arith.addf %262, %266 : vector<64x128xf32>
    %c24_113 = arith.constant 24 : index
    %c0_114 = arith.constant 0 : index
    %268 = vector.load %arg14[%c24_113, %c0_114] : memref<96x128xf32, #tpu.memory_space<vmem>>, vector<64x128xf32>
    %c3 = arith.constant 3 : index
    %c0_115 = arith.constant 0 : index
    %c0_116 = arith.constant 0 : index
    %269 = vector.load %arg5[%c3, %c0_115, %c0_116] : memref<5x128x128xf32, #tpu.memory_space<vmem>>, vector<1x128x128xf32>
    %270 = vector.shape_cast %269 : vector<1x128x128xf32> to vector<128x128xf32>
    %cst_117 = arith.constant dense<0.000000e+00> : vector<64x128xf32>
    %271 = tpu.matmul %268, %270, %cst_117 {dimension_numbers = #tpu.dot_dimension_numbers<[1], [0], [0], [1], [0, 0, 1, 1], [], []>} : vector<64x128xf32>, vector<128x128xf32>, vector<64x128xf32> -> vector<64x128xf32>
    %272 = arith.addf %267, %271 : vector<64x128xf32>
    %c32_118 = arith.constant 32 : index
    %c0_119 = arith.constant 0 : index
    %273 = vector.load %arg14[%c32_118, %c0_119] : memref<96x128xf32, #tpu.memory_space<vmem>>, vector<64x128xf32>
    %c4 = arith.constant 4 : index
    %c0_120 = arith.constant 0 : index
    %c0_121 = arith.constant 0 : index
    %274 = vector.load %arg5[%c4, %c0_120, %c0_121] : memref<5x128x128xf32, #tpu.memory_space<vmem>>, vector<1x128x128xf32>
    %275 = vector.shape_cast %274 : vector<1x128x128xf32> to vector<128x128xf32>
    %cst_122 = arith.constant dense<0.000000e+00> : vector<64x128xf32>
    %276 = tpu.matmul %273, %275, %cst_122 {dimension_numbers = #tpu.dot_dimension_numbers<[1], [0], [0], [1], [0, 0, 1, 1], [], []>} : vector<64x128xf32>, vector<128x128xf32>, vector<64x128xf32> -> vector<64x128xf32>
    %277 = arith.addf %272, %276 : vector<64x128xf32>
    %c0_123 = arith.constant 0 : index
    %c0_124 = arith.constant 0 : index
    %278 = vector.load %arg6[%c0_123, %c0_124] : memref<1x128xf32, #tpu.memory_space<vmem>>, vector<1x128xf32>
    %279 = vector.broadcast %278 : vector<1x128xf32> to vector<64x128xf32>
    %280 = arith.addf %277, %279 : vector<64x128xf32>
    %cst_125 = arith.constant 0.000000e+00 : f32
    %281 = vector.broadcast %cst_125 : f32 to vector<64x128xf32>
    %282 = arith.maximumf %280, %281 : vector<64x128xf32>
    %283 = vector.shape_cast %282 : vector<64x128xf32> to vector<8x8x128xf32>
    %cst_126 = arith.constant dense<0xFF800000> : vector<8x128xf32>
    %284 = vector.multi_reduction <maximumf>, %283, %cst_126 [0] : vector<8x8x128xf32> to vector<8x128xf32>
    %cst_127 = arith.constant 0.000000e+00 : f32
    %285 = vector.broadcast %cst_127 : f32 to vector<72x64xf32>
    %c0_128 = arith.constant 0 : index
    %c0_129 = arith.constant 0 : index
    %286 = vector.load %arg14[%c0_128, %c0_129] : memref<96x128xf32, #tpu.memory_space<vmem>>, vector<72x128xf32>
    %c0_130 = arith.constant 0 : index
    %c0_131 = arith.constant 0 : index
    %c0_132 = arith.constant 0 : index
    %287 = vector.load %arg7[%c0_130, %c0_131, %c0_132] : memref<4x128x64xf32, #tpu.memory_space<vmem>>, vector<1x128x64xf32>
    %288 = vector.shape_cast %287 : vector<1x128x64xf32> to vector<128x64xf32>
    %cst_133 = arith.constant dense<0.000000e+00> : vector<72x64xf32>
    %289 = tpu.matmul %286, %288, %cst_133 {dimension_numbers = #tpu.dot_dimension_numbers<[1], [0], [0], [1], [0, 0, 1, 1], [], []>} : vector<72x128xf32>, vector<128x64xf32>, vector<72x64xf32> -> vector<72x64xf32>
    %290 = arith.addf %285, %289 : vector<72x64xf32>
    %c8_134 = arith.constant 8 : index
    %c0_135 = arith.constant 0 : index
    %291 = vector.load %arg14[%c8_134, %c0_135] : memref<96x128xf32, #tpu.memory_space<vmem>>, vector<72x128xf32>
    %c1_136 = arith.constant 1 : index
    %c0_137 = arith.constant 0 : index
    %c0_138 = arith.constant 0 : index
    %292 = vector.load %arg7[%c1_136, %c0_137, %c0_138] : memref<4x128x64xf32, #tpu.memory_space<vmem>>, vector<1x128x64xf32>
    %293 = vector.shape_cast %292 : vector<1x128x64xf32> to vector<128x64xf32>
    %cst_139 = arith.constant dense<0.000000e+00> : vector<72x64xf32>
    %294 = tpu.matmul %291, %293, %cst_139 {dimension_numbers = #tpu.dot_dimension_numbers<[1], [0], [0], [1], [0, 0, 1, 1], [], []>} : vector<72x128xf32>, vector<128x64xf32>, vector<72x64xf32> -> vector<72x64xf32>
    %295 = arith.addf %290, %294 : vector<72x64xf32>
    %c16_140 = arith.constant 16 : index
    %c0_141 = arith.constant 0 : index
    %296 = vector.load %arg14[%c16_140, %c0_141] : memref<96x128xf32, #tpu.memory_space<vmem>>, vector<72x128xf32>
    %c2_142 = arith.constant 2 : index
    %c0_143 = arith.constant 0 : index
    %c0_144 = arith.constant 0 : index
    %297 = vector.load %arg7[%c2_142, %c0_143, %c0_144] : memref<4x128x64xf32, #tpu.memory_space<vmem>>, vector<1x128x64xf32>
    %298 = vector.shape_cast %297 : vector<1x128x64xf32> to vector<128x64xf32>
    %cst_145 = arith.constant dense<0.000000e+00> : vector<72x64xf32>
    %299 = tpu.matmul %296, %298, %cst_145 {dimension_numbers = #tpu.dot_dimension_numbers<[1], [0], [0], [1], [0, 0, 1, 1], [], []>} : vector<72x128xf32>, vector<128x64xf32>, vector<72x64xf32> -> vector<72x64xf32>
    %300 = arith.addf %295, %299 : vector<72x64xf32>
    %c24_146 = arith.constant 24 : index
    %c0_147 = arith.constant 0 : index
    %301 = vector.load %arg14[%c24_146, %c0_147] : memref<96x128xf32, #tpu.memory_space<vmem>>, vector<72x128xf32>
    %c3_148 = arith.constant 3 : index
    %c0_149 = arith.constant 0 : index
    %c0_150 = arith.constant 0 : index
    %302 = vector.load %arg7[%c3_148, %c0_149, %c0_150] : memref<4x128x64xf32, #tpu.memory_space<vmem>>, vector<1x128x64xf32>
    %303 = vector.shape_cast %302 : vector<1x128x64xf32> to vector<128x64xf32>
    %cst_151 = arith.constant dense<0.000000e+00> : vector<72x64xf32>
    %304 = tpu.matmul %301, %303, %cst_151 {dimension_numbers = #tpu.dot_dimension_numbers<[1], [0], [0], [1], [0, 0, 1, 1], [], []>} : vector<72x128xf32>, vector<128x64xf32>, vector<72x64xf32> -> vector<72x64xf32>
    %305 = arith.addf %300, %304 : vector<72x64xf32>
    %c0_152 = arith.constant 0 : index
    %c0_153 = arith.constant 0 : index
    %306 = vector.load %arg8[%c0_152, %c0_153] : memref<1x64xf32, #tpu.memory_space<vmem>>, vector<1x64xf32>
    %307 = vector.broadcast %306 : vector<1x64xf32> to vector<72x64xf32>
    %308 = arith.addf %305, %307 : vector<72x64xf32>
    %cst_154 = arith.constant 0.000000e+00 : f32
    %309 = vector.broadcast %cst_154 : f32 to vector<72x64xf32>
    %310 = arith.maximumf %308, %309 : vector<72x64xf32>
    %311 = vector.shape_cast %310 : vector<72x64xf32> to vector<9x8x64xf32>
    %cst_155 = arith.constant dense<0xFF800000> : vector<8x64xf32>
    %312 = vector.multi_reduction <maximumf>, %311, %cst_155 [0] : vector<9x8x64xf32> to vector<8x64xf32>
    %c0_156 = arith.constant 0 : index
    %c0_157 = arith.constant 0 : index
    %313 = vector.load %arg9[%c0_156, %c0_157] : memref<128x6xf32, #tpu.memory_space<vmem>>, vector<128x6xf32>
    %cst_158 = arith.constant dense<0.000000e+00> : vector<8x6xf32>
    %314 = tpu.matmul %284, %313, %cst_158 {dimension_numbers = #tpu.dot_dimension_numbers<[1], [0], [0], [1], [0, 0, 1, 1], [], []>} : vector<8x128xf32>, vector<128x6xf32>, vector<8x6xf32> -> vector<8x6xf32>
    %c0_159 = arith.constant 0 : index
    %c0_160 = arith.constant 0 : index
    %315 = vector.load %arg10[%c0_159, %c0_160] : memref<64x6xf32, #tpu.memory_space<vmem>>, vector<64x6xf32>
    %cst_161 = arith.constant dense<0.000000e+00> : vector<8x6xf32>
    %316 = tpu.matmul %312, %315, %cst_161 {dimension_numbers = #tpu.dot_dimension_numbers<[1], [0], [0], [1], [0, 0, 1, 1], [], []>} : vector<8x64xf32>, vector<64x6xf32>, vector<8x6xf32> -> vector<8x6xf32>
    %317 = arith.addf %314, %316 : vector<8x6xf32>
    %c0_162 = arith.constant 0 : index
    %c0_163 = arith.constant 0 : index
    %318 = vector.load %arg11[%c0_162, %c0_163] : memref<1x6xf32, #tpu.memory_space<vmem>>, vector<1x6xf32>
    %319 = vector.broadcast %318 : vector<1x6xf32> to vector<8x6xf32>
    %320 = arith.addf %317, %319 : vector<8x6xf32>
    %c0_164 = arith.constant 0 : index
    %c0_165 = arith.constant 0 : index
    %321 = vector.load %arg12[%c0_164, %c0_165] : memref<8x6xf32, #tpu.memory_space<vmem>>, vector<8x6xf32>
    tpu.vector_store %arg12[%c0_164, %c0_165], %320 {strides = array<i32>} : memref<8x6xf32, #tpu.memory_space<vmem>>, vector<8x6xf32>,
    return
  }
}

</mosaic_0001>

<bundles_post_ra>
// kernel: tpu_custom_call.1
= control target key start
LH: loop header
LB: loop body
LE: loop exit
PB: predicated region body
PF: predicated region fallthrough
CT: control target
= control target key end

     0   :  { %17 = vsyncpa [#allocation5], 0  ;;  %s7601_s0 = inlined_call_operand.vmem [shape: f32[64,300], index: 0, kind: input, shape index: {}]   ;;  %s7602_s1 = inlined_call_operand.hbm [shape: f32[300,512], index: 1, kind: input, shape index: {}]   ;;  %s7603_s2 = inlined_call_operand.vmem [shape: f32[1,512], index: 2, kind: input, shape index: {}]   ;;  %s7604_s3 = inlined_call_operand.hbm [shape: f32[128,512], index: 3, kind: input, shape index: {}]   ;;  %s7605_s4 = inlined_call_operand.vmem [shape: f32[1,128], index: 4, kind: input, shape index: {}]   ;;  %s7606_s5 = inlined_call_operand.vmem [shape: f32[5,128,128], index: 5, kind: input, shape index: {}]   ;;  %s7607_s6 = inlined_call_operand.vmem [shape: f32[1,128], index: 6, kind: input, shape index: {}]   ;;  %s7608_s7 = inlined_call_operand.vmem [shape: f32[4,128,64], index: 7, kind: input, shape index: {}]   ;;  %s7609_s8 = inlined_call_operand.vmem [shape: f32[1,64], index: 8, kind: input, shape index: {}]   ;;  %s7610_s9 = inlined_call_operand.vmem [shape: f32[128,6], index: 9, kind: input, shape index: {}]   ;;  %s7611_s10 = inlined_call_operand.vmem [shape: f32[64,6], index: 10, kind: input, shape index: {}]   ;;  %s7612_s11 = inlined_call_operand.vmem [shape: f32[1,6], index: 11, kind: input, shape index: {}]   ;;  %s7613_s12 = inlined_call_operand.hbm [shape: f32[8,6], index: 12, kind: output, shape index: {}]  }
   0x1   :  { %18 = vsyncpa [#allocation8], 0 }
   0x2   :  { %19 = vsyncpa [#allocation6], 0  ;;  %s5849_s21 = smov [#allocation4]   ;;  %s5777_s25 = scalar_lea.hbm %s7602_s1, 19456 }
   0x3   :  { %s27_s22 = sshll.u32 %s5849_s21, 4  ;;  %p5778_p0 = scmp.ne.s32.totalorder %s7602_s1, %s5777_s25  ;;  %s28_s22 = int_to_ptr.vmem [resolvable:$true] %s27_s22 }
   0x4   :  { %p5781_p1 = scmp.lt.u32.totalorder %s5777_s25, %s7602_s1 }
   0x6   :  { %p5783_p2 = pnand %p5781_p1, %p5778_p0 }
   0x8   :  { %5786 = shalt.err (!%p5783_p2)
}
   0x9   :  { %s5787_s30 = scalar_lea.vmem %s28_s22, 19456  ;;  %p5792_p4 = scmp.lt.s32.totalorder %s28_s22, %s28_s22 }
   0xa   :  { %p5788_p3 = scmp.ne.s32.totalorder %s28_s22, %s5787_s30  ;;  %p5793_p5 = scmp.lt.s32.totalorder %s5787_s30, %s5787_s30 }
   0xc   :  { %p5794_p6 = por %p5793_p5, %p5792_p4 }
   0xe   :  { %p5795_p7 = pnand %p5794_p6, %p5788_p3 }
  0x10   :  { %5798 = shalt.err (!%p5795_p7)
}
  0x11   :  { %s5850_s13 = smov 512   ;;  %s5851_s14 = smov 32  }
  0x12   :  { %33 = dma.hbm_to_vmem [thread:$0]  %s7602_s1, 19456, %s28_s22, [#allocation5], %s5850_s13, %s5850_s13, %s5851_s14  }
  0x13   :  { %s5852_s17 = smov [#allocation7]   ;;  %s5799_s21 = scalar_lea.hbm %s7604_s3, 8192 }
  0x14   :  { %s41_s18 = sshll.u32 %s5852_s17, 4  ;;  %p5800_p8 = scmp.ne.s32.totalorder %s7604_s3, %s5799_s21  ;;  %s42_s18 = int_to_ptr.vmem [resolvable:$true] %s41_s18 }
  0x15   :  { %p5803_p9 = scmp.lt.u32.totalorder %s5799_s21, %s7604_s3 }
  0x17   :  { %p5805_p10 = pnand %p5803_p9, %p5800_p8 }
  0x19   :  { %5808 = shalt.err (!%p5805_p10)
}
  0x1a   :  { %s5809_s27 = scalar_lea.vmem %s42_s18, 8192  ;;  %p5814_p12 = scmp.lt.s32.totalorder %s42_s18, %s42_s18 }
  0x1b   :  { %p5810_p11 = scmp.ne.s32.totalorder %s42_s18, %s5809_s27  ;;  %p5815_p13 = scmp.lt.s32.totalorder %s5809_s27, %s5809_s27 }
  0x1d   :  { %p5816_p0 = por %p5815_p13, %p5814_p12 }
  0x1f   :  { %p5817_p1 = pnand %p5816_p0, %p5810_p11 }
  0x21   :  { %5820 = shalt.err (!%p5817_p1)
}
  0x22   :  { %47 = dma.hbm_to_vmem [thread:$0]  %s7604_s3, 8192, %s42_s18, [#allocation8], %s5850_s13, %s5850_s13, %s5851_s14  }
  0x23   :  { %5843 = dma.done.wait [#allocation5], 19456  }
  0x24   :  { %5844 = vsyncadd [#allocation5], 4294947840 }
  0x25   :  { %5845 = dma.done.wait [#allocation8], 8192  }
  0x26   :  { %5846 = vsyncadd [#allocation8], 4294959104  ;;  %v95_v0 = vld [vmem:[#allocation4 + $0x8] sm:$0xff]  ;;  %v97_v2 = vld [vmem:[#allocation4 + $0x18] sm:$0xff]  ;;  %vm293_vm0 = vcmask 1043456   ;;  %vm5853_vm1 = vmmov 1  }
  0x27   :  { %v99_v1 = vld [vmem:[#allocation4 + $0x28] sm:$0xff]  ;;  %v101_v4 = vld [vmem:[#allocation4 + $0x38] sm:$0xff]  ;;  %v94_v5 = vld [vmem:[#allocation4] sm:$0xff]  ;;  %vm268_vm3 = vcmask 359424   ;;  %vm2262_vm8 = vcmask 523264   ;;  %vm5856_vm9 = vmmov 0  }
  0x28   :  { %v4632_v3 = vpack.c.bf16 %v99_v1, %v95_v0  ;;  %v98_v6 = vld [vmem:[#allocation4 + $0x20] sm:$0xff]  ;;  %v4710_v7 = vpack.c.bf16 %v101_v4, %v97_v2  ;;  %v96_v9 = vld [vmem:[#allocation4 + $0x10] sm:$0xff]  ;;  %v103_v11 = vld [vmem:[#allocation4 + $0x48] sm:$0xff]  ;;  %vm3721_vm10 = vcmask 48128  }
  0x29   :  { %v4634_v8 = vpack.c.bf16 %v98_v6, %v94_v5  ;;  %v100_v10 = vld [vmem:[#allocation4 + $0x30] sm:$0xff]  ;;  %v107_v13 = vld [vmem:[#allocation4 + $0x68] sm:$0xff]  ;;  %v105_v14 = vld [vmem:[#allocation4 + $0x58] sm:$0xff] }
  0x2a   :  { %4633 = vmatprep.subr.bf16.mxu0 %v4632_v3  ;;  %v4712_v12 = vpack.c.bf16 %v100_v10, %v96_v9  ;;  %v109_v15 = vld [vmem:[#allocation4 + $0x78] sm:$0xff]  ;;  %4711 = vmatprep.subr.bf16.mxu1 %v4710_v7  ;;  %v4636_v16 = vpack.c.bf16 %v107_v13, %v103_v11  ;;  %v102_v18 = vld [vmem:[#allocation4 + $0x40] sm:$0xff]  ;;  %v104_v20 = vld [vmem:[#allocation4 + $0x50] sm:$0xff] }
  0x2b   :  { %4635 = vmatpush1.bf16.msra.mxu0 %v4634_v8  ;;  %v4714_v17 = vpack.c.bf16 %v109_v15, %v105_v14  ;;  %v106_v19 = vld [vmem:[#allocation4 + $0x60] sm:$0xff]  ;;  %v108_v22 = vld [vmem:[#allocation4 + $0x70] sm:$0xff]  ;;  %v111_v23 = vld [vmem:[#allocation4 + $0x88] sm:$0xff] }
  0x2c   :  { %4713 = vmatpush1.bf16.msra.mxu1 %v4712_v12  ;;  %v4638_v21 = vpack.c.bf16 %v106_v19, %v102_v18  ;;  %v115_v24 = vld [vmem:[#allocation4 + $0xa8] sm:$0xff]  ;;  %4637 = vmatprep.subr.bf16.mxu0 %v4636_v16  ;;  %v4716_v25 = vpack.c.bf16 %v108_v22, %v104_v20  ;;  %v113_v27 = vld [vmem:[#allocation4 + $0x98] sm:$0xff]  ;;  %v110_v29 = vld [vmem:[#allocation4 + $0x80] sm:$0xff] }
  0x2d   :  { %4715 = vmatprep.subr.bf16.mxu1 %v4714_v17  ;;  %v4640_v26 = vpack.c.bf16 %v115_v24, %v111_v23  ;;  %v117_v28 = vld [vmem:[#allocation4 + $0xb8] sm:$0xff]  ;;  %v114_v31 = vld [vmem:[#allocation4 + $0xa0] sm:$0xff]  ;;  %v112_v32 = vld [vmem:[#allocation4 + $0x90] sm:$0xff] }
  0x2e   :  { %v4718_v30 = vpack.c.bf16 %v117_v28, %v113_v27  ;;  %v116_v33 = vld [vmem:[#allocation4 + $0xb0] sm:$0xff]  ;;  %v4642_v34 = vpack.c.bf16 %v114_v31, %v110_v29  ;;  %v119_v35 = vld [vmem:[#allocation4 + $0xc8] sm:$0xff]  ;;  %v121_v37 = vld [vmem:[#allocation4 + $0xd8] sm:$0xff] }
  0x2f   :  { %4639 = vmatpush1.bf16.msra.mxu0 %v4638_v21  ;;  %v123_v36 = vld [vmem:[#allocation4 + $0xe8] sm:$0xff]  ;;  %v4720_v38 = vpack.c.bf16 %v116_v33, %v112_v32  ;;  %v125_v40 = vld [vmem:[#allocation4 + $0xf8] sm:$0xff]  ;;  %v118_v41 = vld [vmem:[#allocation4 + $0xc0] sm:$0xff] }
  0x30   :  { %4717 = vmatpush1.bf16.msra.mxu1 %v4716_v25  ;;  %4641 = vmatprep.subr.bf16.mxu0 %v4640_v26  ;;  %v4644_v39 = vpack.c.bf16 %v123_v36, %v119_v35  ;;  %v122_v42 = vld [vmem:[#allocation4 + $0xe0] sm:$0xff]  ;;  %v4722_v43 = vpack.c.bf16 %v125_v40, %v121_v37  ;;  %v120_v44 = vld [vmem:[#allocation4 + $0xd0] sm:$0xff]  ;;  %v127_v46 = vld [vmem:[#allocation4 + $0x108] sm:$0xff] }
  0x31   :  { %4719 = vmatprep.subr.bf16.mxu1 %v4718_v30  ;;  %v124_v45 = vld [vmem:[#allocation4 + $0xf0] sm:$0xff]  ;;  %v131_v47 = vld [vmem:[#allocation4 + $0x128] sm:$0xff]  ;;  %v129_v48 = vld [vmem:[#allocation4 + $0x118] sm:$0xff]  ;;  %v4646_v50 = vpack.c.bf16 %v122_v42, %v118_v41 }
  0x32   :  { %v133_v49 = vld [vmem:[#allocation4 + $0x138] sm:$0xff]  ;;  %v4724_v51 = vpack.c.bf16 %v124_v45, %v120_v44  ;;  %v4648_v52 = vpack.c.bf16 %v131_v47, %v127_v46  ;;  %v126_v53 = vld [vmem:[#allocation4 + $0x100] sm:$0xff]  ;;  %v128_v55 = vld [vmem:[#allocation4 + $0x110] sm:$0xff] }
  0x33   :  { %4643 = vmatpush1.bf16.msra.mxu0 %v4642_v34  ;;  %v130_v54 = vld [vmem:[#allocation4 + $0x120] sm:$0xff]  ;;  %v4726_v56 = vpack.c.bf16 %v133_v49, %v129_v48  ;;  %v132_v57 = vld [vmem:[#allocation4 + $0x130] sm:$0xff]  ;;  %v135_v58 = vld [vmem:[#allocation4 + $0x148] sm:$0xff] }
  0x34   :  { %4721 = vmatpush1.bf16.msra.mxu1 %v4720_v38  ;;  %4645 = vmatprep.subr.bf16.mxu0 %v4644_v39  ;;  %v139_v59 = vld [vmem:[#allocation4 + $0x168] sm:$0xff]  ;;  %v137_v60 = vld [vmem:[#allocation4 + $0x158] sm:$0xff]  ;;  %v4650_v62 = vpack.c.bf16 %v130_v54, %v126_v53  ;;  %v4728_v63 = vpack.c.bf16 %v132_v57, %v128_v55  ;;  %v134_v1 = vld [vmem:[#allocation4 + $0x140] sm:$0xff] }
  0x35   :  { %4723 = vmatprep.subr.bf16.mxu1 %v4722_v43  ;;  %v141_v61 = vld [vmem:[#allocation4 + $0x178] sm:$0xff]  ;;  %v4652_v0 = vpack.c.bf16 %v139_v59, %v135_v58  ;;  %v138_v2 = vld [vmem:[#allocation4 + $0x160] sm:$0xff]  ;;  %v136_v3 = vld [vmem:[#allocation4 + $0x150] sm:$0xff] }
  0x36   :  { %v4730_v4 = vpack.c.bf16 %v141_v61, %v137_v60  ;;  %v140_v5 = vld [vmem:[#allocation4 + $0x170] sm:$0xff]  ;;  %v143_v6 = vld [vmem:[#allocation4 + $0x188] sm:$0xff]  ;;  %v145_v8 = vld [vmem:[#allocation4 + $0x198] sm:$0xff]  ;;  %v4654_v10 = vpack.c.bf16 %v138_v2, %v134_v1 }
  0x37   :  { %4647 = vmatpush1.bf16.msra.mxu0 %v4646_v50  ;;  %v147_v7 = vld [vmem:[#allocation4 + $0x1a8] sm:$0xff]  ;;  %v149_v9 = vld [vmem:[#allocation4 + $0x1b8] sm:$0xff]  ;;  %v4732_v11 = vpack.c.bf16 %v140_v5, %v136_v3  ;;  %v142_v13 = vld [vmem:[#allocation4 + $0x180] sm:$0xff] }
  0x38   :  { %4725 = vmatpush1.bf16.msra.mxu1 %v4724_v51  ;;  %4649 = vmatprep.subr.bf16.mxu0 %v4648_v52  ;;  %v4656_v12 = vpack.c.bf16 %v147_v7, %v143_v6  ;;  %v146_v14 = vld [vmem:[#allocation4 + $0x1a0] sm:$0xff]  ;;  %v144_v15 = vld [vmem:[#allocation4 + $0x190] sm:$0xff]  ;;  %v4734_v16 = vpack.c.bf16 %v149_v9, %v145_v8  ;;  %v151_v18 = vld [vmem:[#allocation4 + $0x1c8] sm:$0xff] }
  0x39   :  { %4727 = vmatprep.subr.bf16.mxu1 %v4726_v56  ;;  %v148_v17 = vld [vmem:[#allocation4 + $0x1b0] sm:$0xff]  ;;  %v155_v19 = vld [vmem:[#allocation4 + $0x1e8] sm:$0xff]  ;;  %v153_v20 = vld [vmem:[#allocation4 + $0x1d8] sm:$0xff]  ;;  %v4658_v22 = vpack.c.bf16 %v146_v14, %v142_v13 }
  0x3a   :  { %v157_v21 = vld [vmem:[#allocation4 + $0x1f8] sm:$0xff]  ;;  %v4736_v23 = vpack.c.bf16 %v148_v17, %v144_v15  ;;  %v4660_v24 = vpack.c.bf16 %v155_v19, %v151_v18  ;;  %v150_v25 = vld [vmem:[#allocation4 + $0x1c0] sm:$0xff]  ;;  %v152_v27 = vld [vmem:[#allocation4 + $0x1d0] sm:$0xff] }
  0x3b   :  { %4651 = vmatpush1.bf16.msra.mxu0 %v4650_v62  ;;  %v154_v26 = vld [vmem:[#allocation4 + $0x1e0] sm:$0xff]  ;;  %v4738_v28 = vpack.c.bf16 %v157_v21, %v153_v20  ;;  %v156_v29 = vld [vmem:[#allocation4 + $0x1f0] sm:$0xff]  ;;  %v159_v30 = vld [vmem:[#allocation4 + $0x208] sm:$0xff] }
  0x3c   :  { %4729 = vmatpush1.bf16.msra.mxu1 %v4728_v63  ;;  %4653 = vmatprep.subr.bf16.mxu0 %v4652_v0  ;;  %v163_v31 = vld [vmem:[#allocation4 + $0x228] sm:$0xff]  ;;  %v161_v32 = vld [vmem:[#allocation4 + $0x218] sm:$0xff]  ;;  %v4662_v34 = vpack.c.bf16 %v154_v26, %v150_v25  ;;  %v4740_v35 = vpack.c.bf16 %v156_v29, %v152_v27  ;;  %v158_v37 = vld [vmem:[#allocation4 + $0x200] sm:$0xff] }
  0x3d   :  { %4731 = vmatprep.subr.bf16.mxu1 %v4730_v4  ;;  %v165_v33 = vld [vmem:[#allocation4 + $0x238] sm:$0xff]  ;;  %v4664_v36 = vpack.c.bf16 %v163_v31, %v159_v30  ;;  %v162_v38 = vld [vmem:[#allocation4 + $0x220] sm:$0xff]  ;;  %v160_v39 = vld [vmem:[#allocation4 + $0x210] sm:$0xff] }
  0x3e   :  { %v4742_v40 = vpack.c.bf16 %v165_v33, %v161_v32  ;;  %v164_v41 = vld [vmem:[#allocation4 + $0x230] sm:$0xff]  ;;  %v167_v42 = vld [vmem:[#allocation4 + $0x248] sm:$0xff]  ;;  %v169_v44 = vld [vmem:[#allocation4 + $0x258] sm:$0xff]  ;;  %v4666_v46 = vpack.c.bf16 %v162_v38, %v158_v37 }
  0x3f   :  { %4655 = vmatpush1.bf16.msra.mxu0 %v4654_v10  ;;  %v171_v43 = vld [vmem:[#allocation4 + $0x268] sm:$0xff]  ;;  %v173_v45 = vld [vmem:[#allocation4 + $0x278] sm:$0xff]  ;;  %v4744_v47 = vpack.c.bf16 %v164_v41, %v160_v39  ;;  %v166_v49 = vld [vmem:[#allocation4 + $0x240] sm:$0xff] }
  0x40   :  { %4733 = vmatpush1.bf16.msra.mxu1 %v4732_v11  ;;  %4657 = vmatprep.subr.bf16.mxu0 %v4656_v12  ;;  %v4668_v48 = vpack.c.bf16 %v171_v43, %v167_v42  ;;  %v170_v50 = vld [vmem:[#allocation4 + $0x260] sm:$0xff]  ;;  %v168_v51 = vld [vmem:[#allocation4 + $0x250] sm:$0xff]  ;;  %v4746_v52 = vpack.c.bf16 %v173_v45, %v169_v44  ;;  %v175_v54 = vld [vmem:[#allocation4 + $0x288] sm:$0xff] }
  0x41   :  { %4735 = vmatprep.subr.bf16.mxu1 %v4734_v16  ;;  %v172_v53 = vld [vmem:[#allocation4 + $0x270] sm:$0xff]  ;;  %v179_v55 = vld [vmem:[#allocation4 + $0x2a8] sm:$0xff]  ;;  %v177_v56 = vld [vmem:[#allocation4 + $0x298] sm:$0xff]  ;;  %v4670_v58 = vpack.c.bf16 %v170_v50, %v166_v49 }
  0x42   :  { %v181_v57 = vld [vmem:[#allocation4 + $0x2b8] sm:$0xff]  ;;  %v4748_v59 = vpack.c.bf16 %v172_v53, %v168_v51  ;;  %v4672_v60 = vpack.c.bf16 %v179_v55, %v175_v54  ;;  %v174_v61 = vld [vmem:[#allocation4 + $0x280] sm:$0xff]  ;;  %v176_v63 = vld [vmem:[#allocation4 + $0x290] sm:$0xff] }
  0x43   :  { %4659 = vmatpush1.bf16.msra.mxu0 %v4658_v22  ;;  %v178_v62 = vld [vmem:[#allocation4 + $0x2a0] sm:$0xff]  ;;  %v4750_v0 = vpack.c.bf16 %v181_v57, %v177_v56  ;;  %v180_v1 = vld [vmem:[#allocation4 + $0x2b0] sm:$0xff]  ;;  %v183_v2 = vld [vmem:[#allocation4 + $0x2c8] sm:$0xff] }
  0x44   :  { %4737 = vmatpush1.bf16.msra.mxu1 %v4736_v23  ;;  %4661 = vmatprep.subr.bf16.mxu0 %v4660_v24  ;;  %v187_v3 = vld [vmem:[#allocation4 + $0x2e8] sm:$0xff]  ;;  %v185_v4 = vld [vmem:[#allocation4 + $0x2d8] sm:$0xff]  ;;  %v4674_v6 = vpack.c.bf16 %v178_v62, %v174_v61  ;;  %v182_v7 = vld [vmem:[#allocation4 + $0x2c0] sm:$0xff]  ;;  %v4752_v8 = vpack.c.bf16 %v180_v1, %v176_v63 }
  0x45   :  { %4739 = vmatprep.subr.bf16.mxu1 %v4738_v28  ;;  %v189_v5 = vld [vmem:[#allocation4 + $0x2f8] sm:$0xff]  ;;  %v4676_v9 = vpack.c.bf16 %v187_v3, %v183_v2  ;;  %v186_v10 = vld [vmem:[#allocation4 + $0x2e0] sm:$0xff]  ;;  %v184_v11 = vld [vmem:[#allocation4 + $0x2d0] sm:$0xff] }
  0x46   :  { %v188_v12 = vld [vmem:[#allocation4 + $0x2f0] sm:$0xff]  ;;  %v4754_v13 = vpack.c.bf16 %v189_v5, %v185_v4  ;;  %v191_v14 = vld [vmem:[#allocation4 + $0x308] sm:$0xff]  ;;  %v193_v17 = vld [vmem:[#allocation4 + $0x318] sm:$0xff]  ;;  %v4678_v19 = vpack.c.bf16 %v186_v10, %v182_v7 }
  0x47   :  { %4663 = vmatpush1.bf16.msra.mxu0 %v4662_v34  ;;  %v195_v15 = vld [vmem:[#allocation4 + $0x328] sm:$0xff]  ;;  %v197_v18 = vld [vmem:[#allocation4 + $0x338] sm:$0xff]  ;;  %v4756_v20 = vpack.c.bf16 %v188_v12, %v184_v11  ;;  %v190_v22 = vld [vmem:[#allocation4 + $0x300] sm:$0xff] }
  0x48   :  { %4741 = vmatpush1.bf16.msra.mxu1 %v4740_v35  ;;  %4665 = vmatprep.subr.bf16.mxu0 %v4664_v36  ;;  %v71_v16 = vld [vmem:[%s7601_s0 + $0x8] sm:$0xff]  ;;  %v4680_v21 = vpack.c.bf16 %v195_v15, %v191_v14  ;;  %v194_v23 = vld [vmem:[#allocation4 + $0x320] sm:$0xff]  ;;  %v192_v24 = vld [vmem:[#allocation4 + $0x310] sm:$0xff]  ;;  %v4758_v25 = vpack.c.bf16 %v197_v18, %v193_v17 }
  0x49   :  { %4743 = vmatprep.subr.bf16.mxu1 %v4742_v40  ;;  %370 = vmatprep.mubr.f32.mxu0 %v71_v16  ;;  %v196_v26 = vld [vmem:[#allocation4 + $0x330] sm:$0xff]  ;;  %v199_v27 = vld [vmem:[#allocation4 + $0x348] sm:$0xff]  ;;  %v201_v29 = vld [vmem:[#allocation4 + $0x358] sm:$0xff]  ;;  %v4682_v31 = vpack.c.bf16 %v194_v23, %v190_v22 }
  0x4a   :  { %596 = vmatprep.mubr.f32.mxu1 %v71_v16  ;;  %v203_v28 = vld [vmem:[#allocation4 + $0x368] sm:$0xff]  ;;  %v205_v30 = vld [vmem:[#allocation4 + $0x378] sm:$0xff]  ;;  %v4760_v32 = vpack.c.bf16 %v196_v26, %v192_v24  ;;  %v198_v34 = vld [vmem:[#allocation4 + $0x340] sm:$0xff] }
  0x4b   :  { %4667 = vmatpush1.bf16.msra.mxu0 %v4666_v46  ;;  %v4684_v33 = vpack.c.bf16 %v203_v28, %v199_v27  ;;  %v202_v35 = vld [vmem:[#allocation4 + $0x360] sm:$0xff]  ;;  %v200_v36 = vld [vmem:[#allocation4 + $0x350] sm:$0xff]  ;;  %v4762_v37 = vpack.c.bf16 %v205_v30, %v201_v29  ;;  %v207_v39 = vld [vmem:[#allocation4 + $0x388] sm:$0xff] }
  0x4c   :  { %4745 = vmatpush1.bf16.msra.mxu1 %v4744_v47  ;;  %4669 = vmatprep.subr.bf16.mxu0 %v4668_v48  ;;  %v204_v38 = vld [vmem:[#allocation4 + $0x370] sm:$0xff]  ;;  %v211_v40 = vld [vmem:[#allocation4 + $0x3a8] sm:$0xff]  ;;  %v209_v41 = vld [vmem:[#allocation4 + $0x398] sm:$0xff]  ;;  %v4686_v43 = vpack.c.bf16 %v202_v35, %v198_v34 }
  0x4d   :  { %4747 = vmatprep.subr.bf16.mxu1 %v4746_v52  ;;  %v213_v42 = vld [vmem:[#allocation4 + $0x3b8] sm:$0xff]  ;;  %v4764_v44 = vpack.c.bf16 %v204_v38, %v200_v36  ;;  %v4688_v45 = vpack.c.bf16 %v211_v40, %v207_v39  ;;  %v206_v46 = vld [vmem:[#allocation4 + $0x380] sm:$0xff]  ;;  %v208_v48 = vld [vmem:[#allocation4 + $0x390] sm:$0xff] }
  0x4e   :  { %v210_v47 = vld [vmem:[#allocation4 + $0x3a0] sm:$0xff]  ;;  %v4766_v49 = vpack.c.bf16 %v213_v42, %v209_v41  ;;  %v212_v50 = vld [vmem:[#allocation4 + $0x3b0] sm:$0xff]  ;;  %v215_v51 = vld [vmem:[#allocation4 + $0x3c8] sm:$0xff] }
  0x4f   :  { %4671 = vmatpush1.bf16.msra.mxu0 %v4670_v58  ;;  %v219_v52 = vld [vmem:[#allocation4 + $0x3e8] sm:$0xff]  ;;  %v217_v53 = vld [vmem:[#allocation4 + $0x3d8] sm:$0xff]  ;;  %v4690_v55 = vpack.c.bf16 %v210_v47, %v206_v46  ;;  %v4768_v56 = vpack.c.bf16 %v212_v50, %v208_v48  ;;  %v214_v58 = vld [vmem:[#allocation4 + $0x3c0] sm:$0xff] }
  0x50   :  { %4749 = vmatpush1.bf16.msra.mxu1 %v4748_v59  ;;  %4673 = vmatprep.subr.bf16.mxu0 %v4672_v60  ;;  %v221_v54 = vld [vmem:[#allocation4 + $0x3f8] sm:$0xff]  ;;  %v4692_v57 = vpack.c.bf16 %v219_v52, %v215_v51  ;;  %v218_v59 = vld [vmem:[#allocation4 + $0x3e0] sm:$0xff]  ;;  %v216_v60 = vld [vmem:[#allocation4 + $0x3d0] sm:$0xff] }
  0x51   :  { %4751 = vmatprep.subr.bf16.mxu1 %v4750_v0  ;;  %v4770_v61 = vpack.c.bf16 %v221_v54, %v217_v53  ;;  %v220_v62 = vld [vmem:[#allocation4 + $0x3f0] sm:$0xff]  ;;  %v223_v63 = vld [vmem:[#allocation4 + $0x408] sm:$0xff]  ;;  %v225_v1 = vld [vmem:[#allocation4 + $0x418] sm:$0xff]  ;;  %v4694_v3 = vpack.c.bf16 %v218_v59, %v214_v58 }
  0x52   :  { %v227_v0 = vld [vmem:[#allocation4 + $0x428] sm:$0xff]  ;;  %v229_v2 = vld [vmem:[#allocation4 + $0x438] sm:$0xff]  ;;  %v4772_v4 = vpack.c.bf16 %v220_v62, %v216_v60  ;;  %v226_v7 = vld [vmem:[#allocation4 + $0x420] sm:$0xff] }
  0x53   :  { %4675 = vmatpush1.bf16.msra.mxu0 %v4674_v6  ;;  %v4696_v5 = vpack.c.bf16 %v227_v0, %v223_v63  ;;  %v222_v6 = vld [vmem:[#allocation4 + $0x400] sm:$0xff]  ;;  %v228_v10 = vld [vmem:[#allocation4 + $0x430] sm:$0xff]  ;;  %v231_v11 = vld [vmem:[#allocation4 + $0x448] sm:$0xff] }
  0x54   :  { %4753 = vmatpush1.bf16.msra.mxu1 %v4752_v8  ;;  %4677 = vmatprep.subr.bf16.mxu0 %v4676_v9  ;;  %v4774_v8 = vpack.c.bf16 %v229_v2, %v225_v1  ;;  %v224_v9 = vld [vmem:[#allocation4 + $0x410] sm:$0xff]  ;;  %v235_v12 = vld [vmem:[#allocation4 + $0x468] sm:$0xff]  ;;  %v4698_v14 = vpack.c.bf16 %v226_v7, %v222_v6  ;;  %v233_v15 = vld [vmem:[#allocation4 + $0x458] sm:$0xff]  ;;  %v7614_v1 = vmov 0.0  }
  0x55   :  { %4755 = vmatprep.subr.bf16.mxu1 %v4754_v13  ;;  %v70_v13 = vld [vmem:[%s7601_s0] sm:$0xff]  ;;  %v237_v16 = vld [vmem:[#allocation4 + $0x478] sm:$0xff]  ;;  %v4776_v18 = vpack.c.bf16 %v228_v10, %v224_v9  ;;  %v232_v22 = vld [vmem:[#allocation4 + $0x450] sm:$0xff] }
  0x56   :  { %v74_v17 = vld [vmem:[%s7601_s0 + $0x20] sm:$0xff]  ;;  %v4778_v23 = vpack.c.bf16 %v237_v16, %v233_v15  ;;  %v236_v24 = vld [vmem:[#allocation4 + $0x470] sm:$0xff]  ;;  %v243_v26 = vld [vmem:[#allocation4 + $0x4a8] sm:$0xf] }
  0x57   :  { %4679 = vmatpush1.bf16.msra.mxu0 %v4678_v19  ;;  %v4700_v19 = vpack.c.bf16 %v235_v12, %v231_v11  ;;  %v73_v27 = vld [vmem:[%s7601_s0 + $0x18] sm:$0xff]  ;;  %vm5963_vm2 = vmpackc.low %vm293_vm0, %vm5853_vm1  ;;  %v238_v35 = vld [vmem:[#allocation4 + $0x480] sm:$0xff] }
  0x58   :  { %4757 = vmatpush1.bf16.msra.mxu1 %v4756_v20  ;;  %4681 = vmatprep.subr.bf16.mxu0 %v4680_v21  ;;  %v230_v20 = vld [vmem:[#allocation4 + $0x440] sm:$0xff]  ;;  %v241_v28 = vld [vmem:[#allocation4 + $0x498] sm:$0xff]  ;;  %v244_v39 = vld [vmem:[#allocation4 + $0x4b0] sm:$0xf] }
  0x59   :  { %4759 = vmatprep.subr.bf16.mxu1 %v4758_v25  ;;  %v234_v21 = vld [vmem:[#allocation4 + $0x460] sm:$0xff]  ;;  %v239_v25 = vld [vmem:[#allocation4 + $0x488] sm:$0xff]  ;;  %v245_v29 = vld [vmem:[#allocation4 + $0x4b8] sm:$0xf] }
  0x5a   :  { %v77_v30 = vld [vmem:[%s7601_s0 + $0x38] sm:$0xff]  ;;  %v4704_v34 = vpack.c.bf16 %v243_v26, %v239_v25  ;;  %v242_v36 = vld [vmem:[#allocation4 + $0x4a0] sm:$0xf]  ;;  %v4782_v38 = vpack.c.bf16 %v245_v29, %v241_v28  ;;  %v827_v40 = vld [vmem:[#allocation7 + $0x8] sm:$0xff] }
  0x5b   :  { %4683 = vmatpush1.bf16.msra.mxu0 %v4682_v31  ;;  %v4702_v31 = vpack.c.bf16 %v234_v21, %v230_v20  ;;  %v831_v41 = vld [vmem:[#allocation7 + $0x28] sm:$0xff]  ;;  %v76_v42 = vld [vmem:[%s7601_s0 + $0x30] sm:$0xff]  ;;  %v4707_v46 = vpack.c.bf16 %v242_v36, %v238_v35  ;;  %v82_v52 = vld [vmem:[%s7601_s0 + $0x60] sm:$0xff] }
  0x5c   :  { %4761 = vmatpush1.bf16.msra.mxu1 %v4760_v32  ;;  %4685 = vmatprep.subr.bf16.mxu0 %v4684_v33  ;;  %v4780_v33 = vpack.c.bf16 %v236_v24, %v232_v22  ;;  %v5975_v48 = vpack.c.bf16 %v831_v41, %v827_v40  ;;  %v79_v50 = vld [vmem:[%s7601_s0 + $0x48] sm:$0xff]  ;;  %v86_v53 = vld [vmem:[%s7601_s0 + $0x80] sm:$0xff]  ;;  %v85_v54 = vld [vmem:[%s7601_s0 + $0x78] sm:$0xff] }
  0x5d   :  { %4763 = vmatprep.subr.bf16.mxu1 %v4762_v37  ;;  %v240_v37 = vld [vmem:[#allocation4 + $0x490] sm:$0xff]  ;;  %v83_v51 = vld [vmem:[%s7601_s0 + $0x68] sm:$0xff]  ;;  %v826_v59 = vld [vmem:[#allocation7] sm:$0xff] }
  0x5e   :  { %v4785_v47 = vpack.c.bf16 %v244_v39, %v240_v37  ;;  %7663 = vst [vmem:[#allocation13_spill] sm:$0xff] %v5975_v48  ;;  %v91_v58 = vld [vmem:[%s7601_s0 + $0xa8] sm:$0xff]  ;;  %v830_v60 = vld [vmem:[#allocation7 + $0x20] sm:$0xff]  ;;  %v832_v62 = vld [vmem:[#allocation7 + $0x30] sm:$0xff] }
  0x5f   :  { %4687 = vmatpush1.bf16.msra.mxu0 %v4686_v43  ;;  %v829_v43 = vld [vmem:[#allocation7 + $0x18] sm:$0xff]  ;;  %v835_v63 = vld [vmem:[#allocation7 + $0x48] sm:$0xff]  ;;  %v72_v2 = vld [vmem:[%s7601_s0 + $0x10] sm:$0xff] }
  0x60   :  { %4765 = vmatpush1.bf16.msra.mxu1 %v4764_v44  ;;  %4689 = vmatprep.subr.bf16.mxu0 %v4688_v45  ;;  %v833_v44 = vld [vmem:[#allocation7 + $0x38] sm:$0xff]  ;;  %v80_v45 = vld [vmem:[%s7601_s0 + $0x50] sm:$0xff]  ;;  %v839_v0 = vld [vmem:[#allocation7 + $0x68] sm:$0xff] }
  0x61   :  { %4767 = vmatprep.subr.bf16.mxu1 %v4766_v49  ;;  %v5979_v49 = vpack.c.bf16 %v833_v44, %v829_v43  ;;  %v834_v7 = vld [vmem:[#allocation7 + $0x40] sm:$0xff]  ;;  %v6023_v9 = vpack.c.bf16 %v839_v0, %v835_v63  ;;  %v836_v10 = vld [vmem:[#allocation7 + $0x50] sm:$0xff]  ;;  %v75_v15 = vld [vmem:[%s7601_s0 + $0x28] sm:$0xff] }
  0x62   :  { %v840_v11 = vld [vmem:[#allocation7 + $0x70] sm:$0xff]  ;;  %v842_v20 = vld [vmem:[#allocation7 + $0x80] sm:$0xff]  ;;  %v851_v26 = vld [vmem:[#allocation7 + $0xc8] sm:$0xff] }
  0x63   :  { %4691 = vmatpush1.bf16.msra.mxu0 %v4690_v55  ;;  %7664 = vst [vmem:[#allocation14_spill] sm:$0xff] %v5979_v49  ;;  %v89_v55 = vld [vmem:[%s7601_s0 + $0x98] sm:$0xff]  ;;  %v846_v21 = vld [vmem:[#allocation7 + $0xa0] sm:$0xff]  ;;  %v848_v24 = vld [vmem:[#allocation7 + $0xb0] sm:$0xff] }
  0x64   :  { %4769 = vmatpush1.bf16.msra.mxu1 %v4768_v56  ;;  %4693 = vmatprep.subr.bf16.mxu0 %v4692_v57  ;;  %v88_v56 = vld [vmem:[%s7601_s0 + $0x90] sm:$0xff]  ;;  %v78_v28 = vld [vmem:[%s7601_s0 + $0x40] sm:$0xff]  ;;  %v6052_v29 = vpack.c.bf16 %v846_v21, %v842_v20  ;;  %v859_v39 = vld [vmem:[#allocation7 + $0x108] sm:$0xff] }
  0x65   :  { %4771 = vmatprep.subr.bf16.mxu1 %v4770_v61  ;;  %v92_v57 = vld [vmem:[%s7601_s0 + $0xb0] sm:$0xff]  ;;  %v863_v40 = vld [vmem:[#allocation7 + $0x128] sm:$0xff]  ;;  %v81_v41 = vld [vmem:[%s7601_s0 + $0x58] sm:$0xff] }
  0x66   :  { %v828_v61 = vld [vmem:[#allocation7 + $0x10] sm:$0xff]  ;;  %v861_v43 = vld [vmem:[#allocation7 + $0x118] sm:$0xff] }
  0x67   :  { %4695 = vmatpush1.bf16.msra.mxu0 %v4694_v3  ;;  %v6018_v3 = vpack.c.bf16 %v830_v60, %v826_v59  ;;  %v6021_v6 = vpack.c.bf16 %v832_v62, %v828_v61  ;;  %v852_v36 = vld [vmem:[#allocation7 + $0xd0] sm:$0xff]  ;;  %v865_v44 = vld [vmem:[#allocation7 + $0x138] sm:$0xff]  ;;  %v866_v61 = vld [vmem:[#allocation7 + $0x140] sm:$0xff] }
  0x68   :  { %4773 = vmatpush1.bf16.msra.mxu1 %v4772_v4  ;;  %4697 = vmatprep.subr.bf16.mxu0 %v4696_v5  ;;  %v837_v4 = vld [vmem:[#allocation7 + $0x58] sm:$0xff]  ;;  %v856_v37 = vld [vmem:[#allocation7 + $0xf0] sm:$0xff]  ;;  %v870_v62 = vld [vmem:[#allocation7 + $0x160] sm:$0xff] }
  0x69   :  { %4775 = vmatprep.subr.bf16.mxu1 %v4774_v8  ;;  %v841_v5 = vld [vmem:[#allocation7 + $0x78] sm:$0xff]  ;;  %v838_v8 = vld [vmem:[#allocation7 + $0x60] sm:$0xff]  ;;  %v868_v0 = vld [vmem:[#allocation7 + $0x150] sm:$0xff] }
  0x6a   :  { %371 = vmatmul.mubr.f32.vlgmr.msra.gmra.mrb[0].mxu0 %v70_v13  ;;  %v6026_v12 = vpack.c.bf16 %v841_v5, %v837_v4  ;;  %v6033_v16 = vpack.c.bf16 %v838_v8, %v834_v7  ;;  %v873_v59 = vld [vmem:[#allocation7 + $0x178] sm:$0xff]  ;;  %v875_v5 = vld [vmem:[#allocation7 + $0x188] sm:$0xff]  ;;  %v876_v20 = vld [vmem:[#allocation7 + $0x190] sm:$0xff] }
  0x6b   :  { %597 = vmatmul.mubr.f32.vlgmr.msra.gmra.mrb[0].mxu1 %v70_v13  ;;  %4699 = vmatpush1.bf16.msra.mxu0 %v4698_v14  ;;  %v843_v13 = vld [vmem:[#allocation7 + $0x88] sm:$0xff]  ;;  %v880_v21 = vld [vmem:[#allocation7 + $0x1b0] sm:$0xff] }
  0x6c   :  { %376 = vmatprep.mubr.f32.mxu0 %v74_v17  ;;  %602 = vmatprep.mubr.f32.mxu1 %v74_v17  ;;  %v847_v14 = vld [vmem:[#allocation7 + $0xa8] sm:$0xff]  ;;  %v845_v17 = vld [vmem:[#allocation7 + $0x98] sm:$0xff] }
  0x6d   :  { %4777 = vmatpush1.bf16.msra.mxu1 %v4776_v18  ;;  %4701 = vmatprep.subr.bf16.mxu0 %v4700_v19  ;;  %v849_v18 = vld [vmem:[#allocation7 + $0xb8] sm:$0xff]  ;;  %v6037_v19 = vpack.c.bf16 %v840_v11, %v836_v10  ;;  %v6041_v22 = vpack.c.bf16 %v847_v14, %v843_v13  ;;  %v879_v7 = vld [vmem:[#allocation7 + $0x1a8] sm:$0xff]  ;;  %v6109_v10 = vpack.c.bf16 %v870_v62, %v866_v61 }
  0x6e   :  { %377 = vmatmul.mubr.f32.gmra.mrb[2].mxu0 %v73_v27  ;;  %4779 = vmatprep.subr.bf16.mxu1 %v4778_v23  ;;  %v844_v23 = vld [vmem:[#allocation7 + $0x90] sm:$0xff]  ;;  %v6045_v25 = vpack.c.bf16 %v849_v18, %v845_v17  ;;  %v87_v8 = vld [vmem:[%s7601_s0 + $0x88] sm:$0xff]  ;;  %v877_v11 = vld [vmem:[#allocation7 + $0x198] sm:$0xff]  ;;  %v6117_v18 = vpack.c.bf16 %v879_v7, %v875_v5 }
  0x6f   :  { %603 = vmatmul.mubr.f32.gmra.mrb[2].mxu1 %v73_v27  ;;  %382 = vmatprep.mubr.f32.mxu0 %v77_v30  ;;  %v855_v27 = vld [vmem:[#allocation7 + $0xe8] sm:$0xff]  ;;  %v6056_v32 = vpack.c.bf16 %v848_v24, %v844_v23  ;;  %v881_v13 = vld [vmem:[#allocation7 + $0x1b8] sm:$0xff]  ;;  %v878_v17 = vld [vmem:[#allocation7 + $0x1a0] sm:$0xff] }
  0x70   :  { %608 = vmatprep.mubr.f32.mxu1 %v77_v30  ;;  %4703 = vmatpush1.bf16.msra.mxu0 %v4702_v31  ;;  %v853_v30 = vld [vmem:[#allocation7 + $0xd8] sm:$0xff]  ;;  %v6060_v35 = vpack.c.bf16 %v855_v27, %v851_v26  ;;  %v6121_v23 = vpack.c.bf16 %v881_v13, %v877_v11  ;;  %v883_v24 = vld [vmem:[#allocation7 + $0x1c8] sm:$0xff]  ;;  %v90_v27 = vld [vmem:[%s7601_s0 + $0xa0] sm:$0xff] }
  0x71   :  { %4781 = vmatpush1.bf16.msra.mxu1 %v4780_v33  ;;  %4706 = vmatprep.subr.msk.bf16.mxu0 %vm5963_vm2, %v4704_v34  ;;  %v857_v31 = vld [vmem:[#allocation7 + $0xf8] sm:$0xff]  ;;  %v850_v33 = vld [vmem:[#allocation7 + $0xc0] sm:$0xff]  ;;  %v887_v26 = vld [vmem:[#allocation7 + $0x1e8] sm:$0xff] }
  0x72   :  { %383 = vmatmul.mubr.f32.gmra.mrb[4].mxu0 %v76_v42  ;;  %4784 = vmatprep.subr.msk.bf16.mxu1 %vm5963_vm2, %v4782_v38  ;;  %v854_v34 = vld [vmem:[#allocation7 + $0xe0] sm:$0xff]  ;;  %v6064_v38 = vpack.c.bf16 %v857_v31, %v853_v30  ;;  %v885_v30 = vld [vmem:[#allocation7 + $0x1d8] sm:$0xff] }
  0x73   :  { %609 = vmatmul.mubr.f32.gmra.mrb[4].mxu1 %v76_v42  ;;  %388 = vmatprep.mubr.f32.mxu0 %v80_v45  ;;  %v6071_v42 = vpack.c.bf16 %v854_v34, %v850_v33  ;;  %v889_v31 = vld [vmem:[#allocation7 + $0x1f8] sm:$0xff]  ;;  %v6132_v33 = vpack.c.bf16 %v880_v21, %v876_v20  ;;  %v882_v34 = vld [vmem:[#allocation7 + $0x1c0] sm:$0xff] }
  0x74   :  { %614 = vmatprep.mubr.f32.mxu1 %v80_v45  ;;  %4709 = vmatpush1.bf16.msk.msra.mxu0 %vm5963_vm2, %v4707_v46  ;;  %v6075_v45 = vpack.c.bf16 %v856_v37, %v852_v36  ;;  %v858_v46 = vld [vmem:[#allocation7 + $0x100] sm:$0xff]  ;;  %v6136_v37 = vpack.c.bf16 %v887_v26, %v883_v24 }
  0x75   :  { %4787 = vmatpush1.bf16.msk.msra.mxu1 %vm5963_vm2, %v4785_v47  ;;  %4789 = vmatprep.subr.bf16.mxu0 %v5975_v48  ;;  %v862_v47 = vld [vmem:[#allocation7 + $0x120] sm:$0xff] }
  0x76   :  { %389 = vmatmul.mubr.f32.gmra.mrb[6].mxu0 %v79_v50  ;;  %4821 = vmatprep.subr.bf16.mxu1 %v5979_v49  ;;  %v886_v36 = vld [vmem:[#allocation7 + $0x1e0] sm:$0xff] }
  0x77   :  { %615 = vmatmul.mubr.f32.gmra.mrb[6].mxu1 %v79_v50  ;;  %394 = vmatprep.mubr.f32.mxu0 %v83_v51  ;;  %v6079_v50 = vpack.c.bf16 %v863_v40, %v859_v39  ;;  %v884_v39 = vld [vmem:[#allocation7 + $0x1d0] sm:$0xff] }
  0x78   :  { %620 = vmatprep.mubr.f32.mxu1 %v83_v51  ;;  %v860_v51 = vld [vmem:[#allocation7 + $0x110] sm:$0xff] }
  0x79   :  { %v888_v40 = vld [vmem:[#allocation7 + $0x1f0] sm:$0xff] }
  0x7a   :  { %395 = vmatmul.mubr.f32.gmra.mrb[8].mxu0 %v82_v52 }
  0x7b   :  { %621 = vmatmul.mubr.f32.gmra.mrb[8].mxu1 %v82_v52  ;;  %400 = vmatprep.mubr.f32.mxu0 %v86_v53  ;;  %v864_v52 = vld [vmem:[#allocation7 + $0x130] sm:$0xff] }
  0x7c   :  { %626 = vmatprep.mubr.f32.mxu1 %v86_v53  ;;  %v6083_v53 = vpack.c.bf16 %v865_v44, %v861_v43  ;;  %v6094_v60 = vpack.c.bf16 %v864_v52, %v860_v51  ;;  %v93_v43 = vld [vmem:[%s7601_s0 + $0xb8] sm:$0xff]  ;;  %v6147_v44 = vpack.c.bf16 %v886_v36, %v882_v34  ;;  %v248_v51 = vlaneseq }
  0x7e   :  { %401 = vmatmul.mubr.f32.gmra.mrb[10].mxu0 %v85_v54  ;;  %v249_v52 = vshrl.u32 %v248_v51, 7  ;;  %v6227_v21 = vand.u32 127, %v248_v51 }
  0x7f   :  { %627 = vmatmul.mubr.f32.gmra.mrb[10].mxu1 %v85_v54  ;;  %406 = vmatprep.mubr.f32.mxu0 %v89_v55  ;;  %v867_v54 = vld [vmem:[#allocation7 + $0x148] sm:$0xff] }
  0x80   :  { %632 = vmatprep.mubr.f32.mxu1 %v89_v55  ;;  %v871_v55 = vld [vmem:[#allocation7 + $0x168] sm:$0xff]  ;;  %vm803_vm4 = vcmp.lt.s32.totalorder %v6227_v21, 64 }
  0x81   :  { %v6098_v63 = vpack.c.bf16 %v871_v55, %v867_v54  ;;  %v250_v54 = vsub.s32 0, %v249_v52  ;;  %v246_v55 = vld [vmem:[%s7603_s2] sm:$0xf] }
  0x82   :  { %407 = vmatmul.mubr.f32.gmra.mrb[12].mxu0 %v88_v56 }
  0x83   :  { %633 = vmatmul.mubr.f32.gmra.mrb[12].mxu1 %v88_v56  ;;  %412 = vmatprep.mubr.f32.mxu0 %v92_v57  ;;  %v84_v56 = vld [vmem:[%s7601_s0 + $0x70] sm:$0xff]  ;;  %v6216_v5 = vrot.slane %v246_v55, %v250_v54 }
  0x84   :  { %638 = vmatprep.mubr.f32.mxu1 %v92_v57  ;;  %v6090_v57 = vpack.c.bf16 %v862_v47, %v858_v46  ;;  %v6151_v46 = vpack.c.bf16 %v888_v40, %v884_v39  ;;  %v6162_v47 = vld [vmem:[%s7605_s4] ss:$0 sm:$0xff]  ;;  %v797_v40 = vadd.s32 256, %v6227_v21 }
  0x86   :  { %413 = vmatmul.mubr.f32.gmra.mrb[14].mxu0 %v91_v58  ;;  %7665 = vst [vmem:[#allocation15_spill] sm:$0xff] %v6151_v46 }
  0x87   :  { %639 = vmatmul.mubr.f32.gmra.mrb[14].mxu1 %v91_v58  ;;  %483 = vmatprep.mubr.f32.mxu0 %v7614_v1  ;;  %v869_v58 = vld [vmem:[#allocation7 + $0x158] sm:$0xff] }
  0x88   :  { %709 = vmatprep.mubr.f32.mxu1 %v7614_v1  ;;  %v6102_v4 = vpack.c.bf16 %v873_v59, %v869_v58  ;;  %v258_v58 = vsub.s32 2, %v249_v52  ;;  %v254_v59 = vsub.s32 1, %v249_v52 }
  0x8a   :  { %3741 = vmatmul.mubr.msk.f32.vlgmr.msra.gmra.mrb[0].mxu0 %vm268_vm3, %v72_v2  ;;  %v6218_v7 = vrot.slane %v246_v55, %v258_v58 }
  0x8b   :  { %3751 = vmatmul.mubr.msk.f32.vlgmr.msra.gmra.mrb[0].mxu1 %vm268_vm3, %v72_v2  ;;  %4791 = vmatpush1.bf16.msra.mxu0 %v6018_v3  ;;  %v872_v2 = vld [vmem:[#allocation7 + $0x170] sm:$0xff] }
  0x8c   :  { %4823 = vmatpush1.bf16.msra.mxu1 %v6021_v6  ;;  %489 = vmatprep.mubr.f32.mxu0 %v7614_v1  ;;  %v6113_v14 = vpack.c.bf16 %v872_v2, %v868_v0  ;;  %v262_v0 = vsub.s32 3, %v249_v52 }
  0x8d   :  { %715 = vmatprep.mubr.f32.mxu1 %v7614_v1  ;;  %4793 = vmatprep.subr.bf16.mxu0 %v6023_v9 }
  0x8e   :  { %3742 = vmatmul.mubr.msk.f32.gmra.mrb[2].mxu0 %vm268_vm3, %v75_v15  ;;  %4825 = vmatprep.subr.bf16.mxu1 %v6026_v12  ;;  %v6222_v13 = vrot.slane %v246_v55, %v262_v0 }
  0x8f   :  { %3752 = vmatmul.mubr.msk.f32.gmra.mrb[2].mxu1 %vm268_vm3, %v75_v15  ;;  %4795 = vmatpush1.bf16.msra.mxu0 %v6033_v16  ;;  %v874_v15 = vld [vmem:[#allocation7 + $0x180] sm:$0xff] }
  0x90   :  { %4827 = vmatpush1.bf16.msra.mxu1 %v6037_v19  ;;  %495 = vmatprep.mubr.f32.mxu0 %v7614_v1 }
  0x91   :  { %721 = vmatprep.mubr.f32.mxu1 %v7614_v1  ;;  %4797 = vmatprep.subr.bf16.mxu0 %v6041_v22 }
  0x92   :  { %3743 = vmatmul.mubr.msk.f32.gmra.mrb[4].mxu0 %vm268_vm3, %v78_v28  ;;  %4829 = vmatprep.subr.bf16.mxu1 %v6045_v25 }
  0x93   :  { %3753 = vmatmul.mubr.msk.f32.gmra.mrb[4].mxu1 %vm268_vm3, %v78_v28  ;;  %4799 = vmatpush1.bf16.msra.mxu0 %v6052_v29  ;;  %v6128_v28 = vpack.c.bf16 %v878_v17, %v874_v15 }
  0x94   :  { %4831 = vmatpush1.bf16.msra.mxu1 %v6056_v32  ;;  %501 = vmatprep.mubr.f32.mxu0 %v7614_v1 }
  0x95   :  { %727 = vmatprep.mubr.f32.mxu1 %v7614_v1  ;;  %4801 = vmatprep.subr.bf16.mxu0 %v6060_v35 }
  0x96   :  { %3744 = vmatmul.mubr.msk.f32.gmra.mrb[6].mxu0 %vm268_vm3, %v81_v41  ;;  %4833 = vmatprep.subr.bf16.mxu1 %v6064_v38 }
  0x97   :  { %3754 = vmatmul.mubr.msk.f32.gmra.mrb[6].mxu1 %vm268_vm3, %v81_v41  ;;  %4803 = vmatpush1.bf16.msra.mxu0 %v6071_v42  ;;  %v6140_v41 = vpack.c.bf16 %v889_v31, %v885_v30 }
  0x98   :  { %4835 = vmatpush1.bf16.msra.mxu1 %v6075_v45  ;;  %507 = vmatprep.mubr.f32.mxu0 %v7614_v1 }
  0x99   :  { %733 = vmatprep.mubr.f32.mxu1 %v7614_v1  ;;  %4805 = vmatprep.subr.bf16.mxu0 %v6079_v50 }
  0x9a   :  { %3745 = vmatmul.mubr.msk.f32.gmra.mrb[8].mxu0 %vm268_vm3, %v84_v56  ;;  %4837 = vmatprep.subr.bf16.mxu1 %v6083_v53 }
  0x9b   :  { %3755 = vmatmul.mubr.msk.f32.gmra.mrb[8].mxu1 %vm268_vm3, %v84_v56  ;;  %4807 = vmatpush1.bf16.msra.mxu0 %v6090_v57 }
  0x9c   :  { %4839 = vmatpush1.bf16.msra.mxu1 %v6094_v60  ;;  %513 = vmatprep.mubr.f32.mxu0 %v7614_v1 }
  0x9d   :  { %739 = vmatprep.mubr.f32.mxu1 %v7614_v1  ;;  %4809 = vmatprep.subr.bf16.mxu0 %v6098_v63 }
  0x9e   :  { %3746 = vmatmul.mubr.msk.f32.gmra.mrb[10].mxu0 %vm268_vm3, %v87_v8  ;;  %4841 = vmatprep.subr.bf16.mxu1 %v6102_v4 }
  0x9f   :  { %3756 = vmatmul.mubr.msk.f32.gmra.mrb[10].mxu1 %vm268_vm3, %v87_v8  ;;  %4811 = vmatpush1.bf16.msra.mxu0 %v6109_v10  ;;  %v6220_v8 = vrot.slane %v246_v55, %v254_v59  ;;  %v798_v55 = vadd.s32 384, %v6227_v21 }
  0xa0   :  { %4843 = vmatpush1.bf16.msra.mxu1 %v6113_v14  ;;  %519 = vmatprep.mubr.f32.mxu0 %v7614_v1 }
  0xa1   :  { %745 = vmatprep.mubr.f32.mxu1 %v7614_v1  ;;  %4813 = vmatprep.subr.bf16.mxu0 %v6117_v18 }
  0xa2   :  { %3747 = vmatmul.mubr.msk.f32.gmra.mrb[12].mxu0 %vm268_vm3, %v90_v27  ;;  %4845 = vmatprep.subr.bf16.mxu1 %v6121_v23 }
  0xa3   :  { %3757 = vmatmul.mubr.msk.f32.gmra.mrb[12].mxu1 %vm268_vm3, %v90_v27  ;;  %4815 = vmatpush1.bf16.msra.mxu0 %v6128_v28 }
  0xa4   :  { %4847 = vmatpush1.bf16.msra.mxu1 %v6132_v33  ;;  %525 = vmatprep.mubr.f32.mxu0 %v7614_v1 }
  0xa5   :  { %751 = vmatprep.mubr.f32.mxu1 %v7614_v1  ;;  %4817 = vmatprep.subr.bf16.mxu0 %v6136_v37 }
  0xa6   :  { %3748 = vmatmul.mubr.msk.f32.gmra.mrb[14].mxu0 %vm268_vm3, %v93_v43  ;;  %4849 = vmatprep.subr.bf16.mxu1 %v6140_v41 }
  0xa7   :  { %3758 = vmatmul.mubr.msk.f32.gmra.mrb[14].mxu1 %vm268_vm3, %v93_v43  ;;  %4819 = vmatpush1.bf16.msra.mxu0 %v6147_v44  ;;  %v796_v43 = vadd.s32 128, %v6227_v21 }
  0xa8   :  { %4851 = vmatpush1.bf16.msra.mxu1 %v6151_v46  ;;  %954 = vmatprep.mubr.f32.mxu0 %v7614_v1 }
  0xa9   :  { %1025 = vmatprep.mubr.f32.mxu1 %v7614_v1  ;;  %4853 = vmatprep.subr.bf16.mxu0 %v5975_v48 }
  0xaa   :  { %955 = vmatmul.mubr.f32.vlgmr.msra.gmra.mrb[16].mxu0 %v6162_v47  ;;  %4885 = vmatprep.subr.bf16.mxu1 %v5979_v49 }
  0xab   :  { %1026 = vmatmul.mubr.f32.vlgmr.msra.gmra.mrb[16].mxu1 %v6162_v47  ;;  %4855 = vmatpush1.bf16.msra.mxu0 %v6018_v3 }
  0xac   :  { %4887 = vmatpush1.bf16.msra.mxu1 %v6021_v6  ;;  %4857 = vmatprep.subr.bf16.mxu0 %v6023_v9 }
  0xad   :  { %4889 = vmatprep.subr.bf16.mxu1 %v6026_v12  ;;  %1131 = vmatprep.mubr.f32.mxu0 %v7614_v1 }
  0xae   :  { %1202 = vmatprep.mubr.f32.mxu1 %v7614_v1  ;;  %v802_v1 = vand.u32 127, %v798_v55 }
  0xaf   :  { %4859 = vmatpush1.bf16.msra.mxu0 %v6033_v16 }
  0xb0   :  { %4891 = vmatpush1.bf16.msra.mxu1 %v6037_v19  ;;  %4861 = vmatprep.subr.bf16.mxu0 %v6041_v22  ;;  %vm6277_vm7 = vcmp.lt.s32.totalorder %v802_v1, 64 }
  0xb1   :  { %4893 = vmatprep.subr.bf16.mxu1 %v6045_v25 }
  0xb3   :  { %4863 = vmatpush1.bf16.msra.mxu0 %v6052_v29 }
  0xb4   :  { %4895 = vmatpush1.bf16.msra.mxu1 %v6056_v32  ;;  %4865 = vmatprep.subr.bf16.mxu0 %v6060_v35 }
  0xb5   :  { %4897 = vmatprep.subr.bf16.mxu1 %v6064_v38 }
  0xb7   :  { %4867 = vmatpush1.bf16.msra.mxu0 %v6071_v42 }
  0xb8   :  { %4899 = vmatpush1.bf16.msra.mxu1 %v6075_v45  ;;  %4869 = vmatprep.subr.bf16.mxu0 %v6079_v50 }
  0xb9   :  { %4901 = vmatprep.subr.bf16.mxu1 %v6083_v53 }
  0xbb   :  { %4871 = vmatpush1.bf16.msra.mxu0 %v6090_v57 }
  0xbc   :  { %4903 = vmatpush1.bf16.msra.mxu1 %v6094_v60  ;;  %4873 = vmatprep.subr.bf16.mxu0 %v6098_v63 }
  0xbd   :  { %4905 = vmatprep.subr.bf16.mxu1 %v6102_v4 }
  0xbf   :  { %4875 = vmatpush1.bf16.msra.mxu0 %v6109_v10 }
  0xc0   :  { %4907 = vmatpush1.bf16.msra.mxu1 %v6113_v14  ;;  %4877 = vmatprep.subr.bf16.mxu0 %v6117_v18 }
  0xc1   :  { %4909 = vmatprep.subr.bf16.mxu1 %v6121_v23 }
  0xc3   :  { %4879 = vmatpush1.bf16.msra.mxu0 %v6128_v28 }
  0xc4   :  { %4911 = vmatpush1.bf16.msra.mxu1 %v6132_v33  ;;  %4881 = vmatprep.subr.bf16.mxu0 %v6136_v37 }
  0xc5   :  { %4913 = vmatprep.subr.bf16.mxu1 %v6140_v41 }
  0xc7   :  { %4883 = vmatpush1.bf16.msra.mxu0 %v6147_v44 }
  0xc8   :  { %4915 = vmatpush1.bf16.msra.mxu1 %v6151_v46  ;;  %4917 = vmatprep.subr.bf16.mxu0 %v5975_v48 }
  0xc9   :  { %4949 = vmatprep.subr.bf16.mxu1 %v5979_v49 }
 0x15d   :  { %v6208_v56 = vpop.f32.mrb[0].mxu0 }
 0x15e   :  { %v6210_v61 = vpop.f32.mrb[0].mxu1  ;;  %v6212_v62 = vpop.f32.mrb[1].mxu0 }
 0x15f   :  { %v6214_v2 = vpop.f32.mrb[1].mxu1 }
 0x161   :  { %v491_v11 = vpop.f32.mrb[2].mxu0 }
 0x162   :  { %v6225_v15 = vadd.f32 %v491_v11, %v6216_v5  ;;  %v717_v17 = vpop.f32.mrb[2].mxu1  ;;  %v493_v20 = vpop.f32.mrb[3].mxu0 }
 0x163   :  { %v6230_v24 = vadd.f32 %v717_v17, %v6218_v7  ;;  %v6233_v26 = vadd.f32 %v493_v20, %v6220_v8  ;;  %v719_v27 = vpop.f32.mrb[3].mxu1  ;;  %v801_v20 = vand.u32 127, %v797_v40 }
 0x164   :  { %v6236_v30 = vadd.f32 %v719_v27, %v6222_v13  ;;  %v800_v27 = vand.u32 127, %v796_v43 }
 0x165   :  { %7666 = vst [vmem:[#allocation16_spill] sm:$0xff] %v6230_v24  ;;  %7667 = vst [vmem:[#allocation17_spill] sm:$0xff] %v6233_v26  ;;  %v497_v31 = vpop.f32.mrb[4].mxu0  ;;  %vm6263_vm5 = vcmp.lt.s32.totalorder %v801_v20, 64 }
 0x166   :  { %7668 = vst [vmem:[#allocation18_spill] sm:$0xff] %v6236_v30  ;;  %v5596_v34 = vadd.f32 %v497_v31, %v6216_v5  ;;  %v723_v36 = vpop.f32.mrb[4].mxu1  ;;  %v499_v39 = vpop.f32.mrb[5].mxu0  ;;  %vm6267_vm6 = vcmp.lt.s32.totalorder %v800_v27, 64 }
 0x167   :  { %v6242_v51 = vadd.f32 %v723_v36, %v6218_v7  ;;  %v6245_v52 = vadd.f32 %v499_v39, %v6220_v8  ;;  %v725_v54 = vpop.f32.mrb[5].mxu1 }
 0x168   :  { %v6249_v58 = vadd.f32 %v725_v54, %v6222_v13 }
 0x169   :  { %7669 = vst [vmem:[#allocation19_spill] sm:$0xff] %v6242_v51  ;;  %7670 = vst [vmem:[#allocation20_spill] sm:$0xff] %v6245_v52  ;;  %v503_v59 = vpop.f32.mrb[6].mxu0 }
 0x16a   :  { %7671 = vst [vmem:[#allocation21_spill] sm:$0xff] %v6249_v58  ;;  %v5598_v0 = vadd.f32 %v503_v59, %v6216_v5  ;;  %v729_v11 = vpop.f32.mrb[6].mxu1  ;;  %v505_v17 = vpop.f32.mrb[7].mxu0 }
 0x16b   :  { %v6253_v31 = vadd.f32 %v729_v11, %v6218_v7  ;;  %v6256_v36 = vadd.f32 %v505_v17, %v6220_v8  ;;  %v731_v39 = vpop.f32.mrb[7].mxu1 }
 0x16c   :  { %v6259_v49 = vadd.f32 %v731_v39, %v6222_v13 }
 0x16d   :  { %7672 = vst [vmem:[#allocation22_spill] sm:$0xff] %v6253_v31  ;;  %7673 = vst [vmem:[#allocation23_spill] sm:$0xff] %v6256_v36  ;;  %v509_v54 = vpop.f32.mrb[8].mxu0 }
 0x16e   :  { %7674 = vst [vmem:[#allocation24_spill] sm:$0xff] %v6259_v49  ;;  %v5600_v59 = vadd.f32 %v509_v54, %v6216_v5  ;;  %v735_v48 = vpop.f32.mrb[8].mxu1  ;;  %v511_v46 = vpop.f32.mrb[9].mxu0 }
 0x16f   :  { %v6272_v55 = vadd.f32 %v735_v48, %v6218_v7  ;;  %v6275_v11 = vadd.f32 %v511_v46, %v6220_v8  ;;  %v737_v17 = vpop.f32.mrb[9].mxu1 }
 0x170   :  { %v6282_v20 = vadd.f32 %v737_v17, %v6222_v13  ;;  %v6286_v27 = vsel %vm803_vm4, %v5598_v0, %v5600_v59  ;;  %v6290_v54 = vsel %vm803_vm4, %v5600_v59, %v5598_v0 }
 0x171   :  { %7679 = vst [vmem:[#allocation25_spill] sm:$0xff] %v6272_v55  ;;  %7680 = vst [vmem:[#allocation26_spill] sm:$0xff] %v6275_v11  ;;  %v515_v48 = vpop.f32.mrb[10].mxu0 }
 0x172   :  { %7683 = vst [vmem:[#allocation27_spill] sm:$0xff] %v6282_v20  ;;  %7684 = vst [vmem:[#allocation28_spill] sm:$0xff] %v6286_v27  ;;  %v5602_v59 = vadd.f32 %v515_v48, %v6216_v5  ;;  %v517_v27 = vpop.f32.mrb[11].mxu0 }
 0x173   :  { %7685 = vst [vmem:[#allocation29_spill] sm:$0xff] %v6290_v54  ;;  %v741_v54 = vpop.f32.mrb[10].mxu1  ;;  %v6321_v55 = vadd.f32 %v517_v27, %v6220_v8 }
 0x174   :  { %v6318_v17 = vadd.f32 %v741_v54, %v6218_v7  ;;  %v743_v0 = vpop.f32.mrb[11].mxu1  ;;  %v6328_v11 = vsel %vm803_vm4, %v5596_v34, %v5602_v59  ;;  %v6332_v1 = vsel %vm803_vm4, %v5602_v59, %v5596_v34 }
 0x175   :  { %7687 = vst [vmem:[#allocation31_spill] sm:$0xff] %v6321_v55  ;;  %v6324_v48 = vadd.f32 %v743_v0, %v6222_v13  ;;  %7689 = vst [vmem:[#allocation33_spill] sm:$0xff] %v6328_v11  ;;  %v521_v36 = vpop.f32.mrb[12].mxu0 }
 0x176   :  { %7686 = vst [vmem:[#allocation30_spill] sm:$0xff] %v6318_v17  ;;  %7690 = vst [vmem:[#allocation34_spill] sm:$0xff] %v6332_v1  ;;  %v5604_v59 = vadd.f32 %v521_v36, %v6216_v5  ;;  %v747_v46 = vpop.f32.mrb[12].mxu1  ;;  %v523_v1 = vpop.f32.mrb[13].mxu0 }
 0x177   :  { %7688 = vst [vmem:[#allocation32_spill] sm:$0xff] %v6324_v48  ;;  %v6360_v0 = vadd.f32 %v747_v46, %v6218_v7  ;;  %v6363_v20 = vadd.f32 %v523_v1, %v6220_v8  ;;  %v749_v34 = vpop.f32.mrb[13].mxu1  ;;  %v6421_v48 = vadd.f32 %v6214_v2, %v6222_v13 }
 0x178   :  { %v6366_v36 = vadd.f32 %v749_v34, %v6222_v13  ;;  %v6371_v49 = vsel %vm803_vm4, %v6225_v15, %v5604_v59  ;;  %v6376_v54 = vsel %vm803_vm4, %v5604_v59, %v6225_v15  ;;  %v5592_v59 = vadd.f32 %v6208_v56, %v6216_v5 }
 0x179   :  { %7691 = vst [vmem:[#allocation35_spill] sm:$0xff] %v6360_v0  ;;  %7692 = vst [vmem:[#allocation36_spill] sm:$0xff] %v6363_v20  ;;  %v527_v27 = vpop.f32.mrb[14].mxu0  ;;  %v6407_v15 = vadd.f32 %v6210_v61, %v6218_v7  ;;  %v6411_v56 = vadd.f32 %v6212_v62, %v6220_v8 }
 0x17a   :  { %7693 = vst [vmem:[#allocation37_spill] sm:$0xff] %v6366_v36  ;;  %7694 = vst [vmem:[#allocation38_spill] sm:$0xff] %v6376_v54  ;;  %v5606_v1 = vadd.f32 %v527_v27, %v6216_v5  ;;  %v753_v54 = vpop.f32.mrb[14].mxu1  ;;  %v529_v31 = vpop.f32.mrb[15].mxu0 }
 0x17b   :  { %7695 = vst [vmem:[#allocation39_spill] sm:$0xff] %v6407_v15  ;;  %7696 = vst [vmem:[#allocation40_spill] sm:$0xff] %v6411_v56  ;;  %v6414_v5 = vadd.f32 %v753_v54, %v6218_v7  ;;  %v6417_v27 = vadd.f32 %v529_v31, %v6220_v8  ;;  %v755_v46 = vpop.f32.mrb[15].mxu1 }
 0x17c   :  { %7699 = vst [vmem:[#allocation43_spill] sm:$0xff] %v6421_v48  ;;  %v6424_v34 = vadd.f32 %v755_v46, %v6222_v13  ;;  %v822_v61 = vsel %vm803_vm4, %v5592_v59, %v5606_v1  ;;  %v6430_v62 = vsel %vm803_vm4, %v5606_v1, %v5592_v59 }
 0x17d   :  { %7697 = vst [vmem:[#allocation41_spill] sm:$0xff] %v6414_v5  ;;  %7698 = vst [vmem:[#allocation42_spill] sm:$0xff] %v6417_v27  ;;  %v956_v7 = vpop.f32.mrb[16].mxu0  ;;  %v824_v8 = vsel %vm6263_vm5, %v6407_v15, %v6414_v5  ;;  %v823_v2 = vsel %vm6267_vm6, %v6411_v56, %v6417_v27 }
 0x17e   :  { %7700 = vst [vmem:[#allocation44_spill] sm:$0xff] %v6424_v34  ;;  %7701 = vst [vmem:[#allocation45_spill] sm:$0xff] %v6430_v62  ;;  %v1032_v31 = vadd.f32 %v956_v7, %v822_v61  ;;  %v1027_v54 = vpop.f32.mrb[16].mxu1  ;;  %v958_v1 = vpop.f32.mrb[17].mxu0  ;;  %v825_v46 = vsel %vm6277_vm7, %v6421_v48, %v6424_v34 }
 0x17f   :  { %v1034_v62 = vadd.f32 %v1027_v54, %v824_v8  ;;  %v1033_v13 = vadd.f32 %v958_v1, %v823_v2  ;;  %v1029_v15 = vpop.f32.mrb[17].mxu1  ;;  %v7708_v1 = vsel %vm6267_vm6, %v6233_v26, %v6363_v20 }
 0x180   :  { %v1036_v5 = vmul.f32 0.5, %v1032_v31  ;;  %v1035_v58 = vadd.f32 %v1029_v15, %v825_v46 }
 0x181   :  { %v1037_v55 = vmul.f32 0.5, %v1033_v13  ;;  %v1038_v61 = vmul.f32 0.5, %v1034_v62  ;;  %v7707_v13 = vsel %vm6263_vm5, %v6230_v24, %v6360_v0 }
 0x182   :  { %5697 = vtanh.f32 %v1036_v5 }
 0x183   :  { %5699 = vtanh.f32 %v1037_v55 }
 0x184   :  { %5701 = vtanh.f32 %v1035_v58 }
 0x185   :  { %5703 = vtanh.f32 %v1038_v61  ;;  %v7709_v61 = vsel %vm6277_vm7, %v6236_v30, %v6366_v36 }
 0x18c   :  { %v5698_v7 = vpop.eup %5697 }
 0x18d   :  { %v1042_v21 = vadd.f32 1.0, %v5698_v7  ;;  %v5700_v56 = vpop.eup %5699 }
 0x18e   :  { %v1043_v52 = vadd.f32 1.0, %v5700_v56  ;;  %v5702_v17 = vpop.eup %5701 }
 0x18f   :  { %v1045_v27 = vmul.f32 0.5, %v1042_v21  ;;  %v5704_v15 = vpop.eup %5703 }
 0x190   :  { %v1046_v51 = vmul.f32 0.5, %v1043_v52  ;;  %v1044_v5 = vadd.f32 1.0, %v5704_v15  ;;  %v7705_v52 = vld [vmem:[#allocation13_spill] sm:$0xff] }
 0x191   :  { %v1050_v11 = vmul.f32 %v5702_v17, %v1045_v27 }
 0x192   :  { %v1049_v8 = vmul.f32 %v6162_v47, %v1046_v51  ;;  %v1047_v55 = vmul.f32 0.5, %v1044_v5  ;;  %v7703_v47 = vmov 0.0   ;;  %v7704_v51 = vld [vmem:[#allocation15_spill] sm:$0xff] }
 0x194   :  { %v6457_v2 = vadd.f32 %v1050_v11, %v1049_v8  ;;  %v7706_v11 = vld [vmem:[#allocation14_spill] sm:$0xff] }
 0x196   :  { %5705 = vtanh.f32 %v6457_v2 }
 0x1a0   :  { %v5706_v58 = vpop.eup %5705 }
 0x1a1   :  { %v6460_v62 = vmul.f32 %v5706_v58, %v1047_v55 }
 0x1a3   :  { %7702 = vst [vmem:[#allocation46_spill] sm:$0xff] %v6460_v62  ;;  %1132 = vmatmul.mubr.f32.vlgmr.msra.gmra.mrb[18].mxu0 %v6460_v62  ;;  %1203 = vmatmul.mubr.f32.vlgmr.msra.gmra.mrb[18].mxu1 %v6460_v62 }
 0x1a4   :  { %4919 = vmatpush1.bf16.msra.mxu0 %v6018_v3  ;;  %4951 = vmatpush1.bf16.msra.mxu1 %v6021_v6 }
 0x1a5   :  { %4921 = vmatprep.subr.bf16.mxu0 %v6023_v9  ;;  %4953 = vmatprep.subr.bf16.mxu1 %v6026_v12 }
 0x1a6   :  { %1308 = vmatprep.mubr.f32.mxu0 %v7703_v47  ;;  %1379 = vmatprep.mubr.f32.mxu1 %v7703_v47 }
 0x1a8   :  { %4923 = vmatpush1.bf16.msra.mxu0 %v6033_v16  ;;  %4955 = vmatpush1.bf16.msra.mxu1 %v6037_v19 }
 0x1a9   :  { %4925 = vmatprep.subr.bf16.mxu0 %v6041_v22  ;;  %4957 = vmatprep.subr.bf16.mxu1 %v6045_v25 }
 0x1ac   :  { %4927 = vmatpush1.bf16.msra.mxu0 %v6052_v29  ;;  %4959 = vmatpush1.bf16.msra.mxu1 %v6056_v32 }
 0x1ad   :  { %4929 = vmatprep.subr.bf16.mxu0 %v6060_v35  ;;  %4961 = vmatprep.subr.bf16.mxu1 %v6064_v38 }
 0x1b0   :  { %4931 = vmatpush1.bf16.msra.mxu0 %v6071_v42  ;;  %4963 = vmatpush1.bf16.msra.mxu1 %v6075_v45 }
 0x1b1   :  { %4933 = vmatprep.subr.bf16.mxu0 %v6079_v50  ;;  %4965 = vmatprep.subr.bf16.mxu1 %v6083_v53 }
 0x1b4   :  { %4935 = vmatpush1.bf16.msra.mxu0 %v6090_v57  ;;  %4967 = vmatpush1.bf16.msra.mxu1 %v6094_v60 }
 0x1b5   :  { %4937 = vmatprep.subr.bf16.mxu0 %v6098_v63  ;;  %4969 = vmatprep.subr.bf16.mxu1 %v6102_v4 }
 0x1b8   :  { %4939 = vmatpush1.bf16.msra.mxu0 %v6109_v10  ;;  %4971 = vmatpush1.bf16.msra.mxu1 %v6113_v14 }
 0x1b9   :  { %4941 = vmatprep.subr.bf16.mxu0 %v6117_v18  ;;  %4973 = vmatprep.subr.bf16.mxu1 %v6121_v23 }
 0x1bc   :  { %4943 = vmatpush1.bf16.msra.mxu0 %v6128_v28  ;;  %4975 = vmatpush1.bf16.msra.mxu1 %v6132_v33 }
 0x1bd   :  { %4945 = vmatprep.subr.bf16.mxu0 %v6136_v37  ;;  %4977 = vmatprep.subr.bf16.mxu1 %v6140_v41 }
 0x1c0   :  { %4947 = vmatpush1.bf16.msra.mxu0 %v6147_v44  ;;  %4979 = vmatpush1.bf16.msra.mxu1 %v7704_v51 }
 0x1c1   :  { %4981 = vmatprep.subr.bf16.mxu0 %v7705_v52  ;;  %5013 = vmatprep.subr.bf16.mxu1 %v7706_v11 }
 0x276   :  { %v1133_v17 = vpop.f32.mrb[18].mxu0  ;;  %v1204_v56 = vpop.f32.mrb[18].mxu1 }
 0x277   :  { %v1209_v27 = vadd.f32 %v1133_v17, %v6371_v49  ;;  %v1211_v21 = vadd.f32 %v1204_v56, %v7707_v13  ;;  %v1135_v31 = vpop.f32.mrb[19].mxu0  ;;  %v1206_v54 = vpop.f32.mrb[19].mxu1 }
 0x278   :  { %v1210_v46 = vadd.f32 %v1135_v31, %v7708_v1  ;;  %v1212_v49 = vadd.f32 %v1206_v54, %v7709_v61 }
 0x279   :  { %v1213_v7 = vmul.f32 0.5, %v1209_v27  ;;  %v1215_v15 = vmul.f32 0.5, %v1211_v21 }
 0x27a   :  { %v1214_v8 = vmul.f32 0.5, %v1210_v46 }
 0x27b   :  { %5707 = vtanh.f32 %v1213_v7 }
 0x27c   :  { %5709 = vtanh.f32 %v1214_v8  ;;  %v7712_v8 = vld [vmem:[#allocation19_spill] sm:$0xff] }
 0x27d   :  { %5711 = vtanh.f32 %v1212_v49  ;;  %v7711_v49 = vld [vmem:[#allocation33_spill] sm:$0xff] }
 0x27e   :  { %5713 = vtanh.f32 %v1215_v15  ;;  %v7713_v15 = vld [vmem:[#allocation30_spill] sm:$0xff] }
 0x285   :  { %v5708_v5 = vpop.eup %5707 }
 0x286   :  { %v1219_v55 = vadd.f32 1.0, %v5708_v5  ;;  %v5710_v58 = vpop.eup %5709  ;;  %v7714_v5 = vsel %vm6263_vm5, %v7712_v8, %v7713_v15 }
 0x287   :  { %v1220_v56 = vadd.f32 1.0, %v5710_v58  ;;  %v5712_v13 = vpop.eup %5711 }
 0x288   :  { %v1222_v17 = vmul.f32 0.5, %v1219_v55  ;;  %v5714_v27 = vpop.eup %5713 }
 0x289   :  { %v1223_v31 = vmul.f32 0.5, %v1220_v56  ;;  %v1221_v54 = vadd.f32 1.0, %v5714_v27  ;;  %v7715_v56 = vld [vmem:[#allocation20_spill] sm:$0xff]  ;;  %v7718_v27 = vld [vmem:[#allocation21_spill] sm:$0xff] }
 0x28a   :  { %v1227_v1 = vmul.f32 %v5712_v13, %v1222_v17  ;;  %v7716_v13 = vld [vmem:[#allocation31_spill] sm:$0xff] }
 0x28b   :  { %v1226_v59 = vmul.f32 %v1223_v31, %v6457_v2  ;;  %v1224_v46 = vmul.f32 0.5, %v1221_v54  ;;  %v7717_v31 = vsel %vm6267_vm6, %v7715_v56, %v7716_v13  ;;  %v7719_v54 = vld [vmem:[#allocation32_spill] sm:$0xff] }
 0x28d   :  { %v6515_v62 = vadd.f32 %v1227_v1, %v1226_v59 }
 0x28f   :  { %5715 = vtanh.f32 %v6515_v62 }
 0x299   :  { %v5716_v61 = vpop.eup %5715 }
 0x29a   :  { %v6518_v21 = vmul.f32 %v5716_v61, %v1224_v46  ;;  %v7720_v46 = vsel %vm6277_vm7, %v7718_v27, %v7719_v54 }
 0x29c   :  { %7710 = vst [vmem:[#allocation15_spill] sm:$0xff] %v6518_v21  ;;  %1309 = vmatmul.mubr.f32.vlgmr.msra.gmra.mrb[20].mxu0 %v6518_v21  ;;  %1380 = vmatmul.mubr.f32.vlgmr.msra.gmra.mrb[20].mxu1 %v6518_v21 }
 0x29d   :  { %4983 = vmatpush1.bf16.msra.mxu0 %v6018_v3  ;;  %5015 = vmatpush1.bf16.msra.mxu1 %v6021_v6 }
 0x29e   :  { %4985 = vmatprep.subr.bf16.mxu0 %v6023_v9  ;;  %5017 = vmatprep.subr.bf16.mxu1 %v6026_v12 }
 0x29f   :  { %1485 = vmatprep.mubr.f32.mxu0 %v7703_v47  ;;  %1556 = vmatprep.mubr.f32.mxu1 %v7703_v47 }
 0x2a1   :  { %4987 = vmatpush1.bf16.msra.mxu0 %v6033_v16  ;;  %5019 = vmatpush1.bf16.msra.mxu1 %v6037_v19 }
 0x2a2   :  { %4989 = vmatprep.subr.bf16.mxu0 %v6041_v22  ;;  %5021 = vmatprep.subr.bf16.mxu1 %v6045_v25 }
 0x2a5   :  { %4991 = vmatpush1.bf16.msra.mxu0 %v6052_v29  ;;  %5023 = vmatpush1.bf16.msra.mxu1 %v6056_v32 }
 0x2a6   :  { %4993 = vmatprep.subr.bf16.mxu0 %v6060_v35  ;;  %5025 = vmatprep.subr.bf16.mxu1 %v6064_v38 }
 0x2a9   :  { %4995 = vmatpush1.bf16.msra.mxu0 %v6071_v42  ;;  %5027 = vmatpush1.bf16.msra.mxu1 %v6075_v45 }
 0x2aa   :  { %4997 = vmatprep.subr.bf16.mxu0 %v6079_v50  ;;  %5029 = vmatprep.subr.bf16.mxu1 %v6083_v53 }
 0x2ad   :  { %4999 = vmatpush1.bf16.msra.mxu0 %v6090_v57  ;;  %5031 = vmatpush1.bf16.msra.mxu1 %v6094_v60 }
 0x2ae   :  { %5001 = vmatprep.subr.bf16.mxu0 %v6098_v63  ;;  %5033 = vmatprep.subr.bf16.mxu1 %v6102_v4 }
 0x2b1   :  { %5003 = vmatpush1.bf16.msra.mxu0 %v6109_v10  ;;  %5035 = vmatpush1.bf16.msra.mxu1 %v6113_v14 }
 0x2b2   :  { %5005 = vmatprep.subr.bf16.mxu0 %v6117_v18  ;;  %5037 = vmatprep.subr.bf16.mxu1 %v6121_v23 }
 0x2b5   :  { %5007 = vmatpush1.bf16.msra.mxu0 %v6128_v28  ;;  %5039 = vmatpush1.bf16.msra.mxu1 %v6132_v33 }
 0x2b6   :  { %5009 = vmatprep.subr.bf16.mxu0 %v6136_v37  ;;  %5041 = vmatprep.subr.bf16.mxu1 %v6140_v41 }
 0x2b9   :  { %5011 = vmatpush1.bf16.msra.mxu0 %v6147_v44  ;;  %5043 = vmatpush1.bf16.msra.mxu1 %v7704_v51 }
 0x2ba   :  { %5045 = vmatprep.subr.bf16.mxu0 %v7705_v52  ;;  %5077 = vmatprep.subr.bf16.mxu1 %v7706_v11 }
 0x36f   :  { %v1310_v59 = vpop.f32.mrb[20].mxu0  ;;  %v1381_v2 = vpop.f32.mrb[20].mxu1 }
 0x370   :  { %v1386_v7 = vadd.f32 %v1310_v59, %v7711_v49  ;;  %v1388_v55 = vadd.f32 %v1381_v2, %v7714_v5  ;;  %v1312_v58 = vpop.f32.mrb[21].mxu0  ;;  %v1383_v17 = vpop.f32.mrb[21].mxu1 }
 0x371   :  { %v1387_v1 = vadd.f32 %v1312_v58, %v7717_v31  ;;  %v1389_v61 = vadd.f32 %v1383_v17, %v7720_v46 }
 0x372   :  { %v1390_v59 = vmul.f32 0.5, %v1386_v7  ;;  %v1392_v2 = vmul.f32 0.5, %v1388_v55 }
 0x373   :  { %v1391_v49 = vmul.f32 0.5, %v1387_v1 }
 0x374   :  { %5717 = vtanh.f32 %v1390_v59 }
 0x375   :  { %5719 = vtanh.f32 %v1391_v49 }
 0x376   :  { %5721 = vtanh.f32 %v1389_v61 }
 0x377   :  { %5723 = vtanh.f32 %v1392_v2  ;;  %v7726_v2 = vld [vmem:[#allocation23_spill] sm:$0xff] }
 0x37e   :  { %v5718_v5 = vpop.eup %5717 }
 0x37f   :  { %v1396_v48 = vadd.f32 1.0, %v5718_v5  ;;  %v5720_v34 = vpop.eup %5719  ;;  %v7727_v5 = vld [vmem:[#allocation26_spill] sm:$0xff] }
 0x380   :  { %v1397_v30 = vadd.f32 1.0, %v5720_v34  ;;  %v5722_v36 = vpop.eup %5721  ;;  %v7723_v34 = vld [vmem:[#allocation22_spill] sm:$0xff] }
 0x381   :  { %v1399_v21 = vmul.f32 0.5, %v1396_v48  ;;  %v5724_v7 = vpop.eup %5723  ;;  %v7722_v48 = vld [vmem:[#allocation28_spill] sm:$0xff] }
 0x382   :  { %v1400_v58 = vmul.f32 0.5, %v1397_v30  ;;  %v1398_v17 = vadd.f32 1.0, %v5724_v7  ;;  %v7729_v7 = vld [vmem:[#allocation24_spill] sm:$0xff] }
 0x383   :  { %v1404_v31 = vmul.f32 %v5722_v36, %v1399_v21 }
 0x384   :  { %v1403_v26 = vmul.f32 %v1400_v58, %v6515_v62  ;;  %v1401_v1 = vmul.f32 0.5, %v1398_v17  ;;  %v7724_v62 = vld [vmem:[#allocation25_spill] sm:$0xff]  ;;  %v7728_v58 = vsel %vm6267_vm6, %v7726_v2, %v7727_v5  ;;  %v7730_v17 = vld [vmem:[#allocation27_spill] sm:$0xff] }
 0x385   :  { %v7725_v21 = vsel %vm6263_vm5, %v7723_v34, %v7724_v62 }
 0x386   :  { %v6573_v20 = vadd.f32 %v1404_v31, %v1403_v26 }
 0x388   :  { %5725 = vtanh.f32 %v6573_v20 }
 0x392   :  { %v5726_v46 = vpop.eup %5725 }
 0x393   :  { %v6576_v55 = vmul.f32 %v5726_v46, %v1401_v1  ;;  %v7731_v1 = vsel %vm6277_vm7, %v7729_v7, %v7730_v17 }
 0x395   :  { %7721 = vst [vmem:[#allocation13_spill] sm:$0xff] %v6576_v55  ;;  %1486 = vmatmul.mubr.f32.vlgmr.msra.gmra.mrb[22].mxu0 %v6576_v55  ;;  %1557 = vmatmul.mubr.f32.vlgmr.msra.gmra.mrb[22].mxu1 %v6576_v55 }
 0x396   :  { %5047 = vmatpush1.bf16.msra.mxu0 %v6018_v3  ;;  %5079 = vmatpush1.bf16.msra.mxu1 %v6021_v6 }
 0x397   :  { %5049 = vmatprep.subr.bf16.mxu0 %v6023_v9  ;;  %5081 = vmatprep.subr.bf16.mxu1 %v6026_v12 }
 0x398   :  { %1654 = vmatprep.mubr.f32.mxu0 %v7703_v47  ;;  %1725 = vmatprep.mubr.f32.mxu1 %v7703_v47 }
 0x39a   :  { %5051 = vmatpush1.bf16.msra.mxu0 %v6033_v16  ;;  %5083 = vmatpush1.bf16.msra.mxu1 %v6037_v19 }
 0x39b   :  { %5053 = vmatprep.subr.bf16.mxu0 %v6041_v22  ;;  %5085 = vmatprep.subr.bf16.mxu1 %v6045_v25 }
 0x39e   :  { %5055 = vmatpush1.bf16.msra.mxu0 %v6052_v29  ;;  %5087 = vmatpush1.bf16.msra.mxu1 %v6056_v32 }
 0x39f   :  { %5057 = vmatprep.subr.bf16.mxu0 %v6060_v35  ;;  %5089 = vmatprep.subr.bf16.mxu1 %v6064_v38 }
 0x3a2   :  { %5059 = vmatpush1.bf16.msra.mxu0 %v6071_v42  ;;  %5091 = vmatpush1.bf16.msra.mxu1 %v6075_v45 }
 0x3a3   :  { %5061 = vmatprep.subr.bf16.mxu0 %v6079_v50  ;;  %5093 = vmatprep.subr.bf16.mxu1 %v6083_v53 }
 0x3a6   :  { %5063 = vmatpush1.bf16.msra.mxu0 %v6090_v57  ;;  %5095 = vmatpush1.bf16.msra.mxu1 %v6094_v60 }
 0x3a7   :  { %5065 = vmatprep.subr.bf16.mxu0 %v6098_v63  ;;  %5097 = vmatprep.subr.bf16.mxu1 %v6102_v4 }
 0x3aa   :  { %5067 = vmatpush1.bf16.msra.mxu0 %v6109_v10  ;;  %5099 = vmatpush1.bf16.msra.mxu1 %v6113_v14 }
 0x3ab   :  { %5069 = vmatprep.subr.bf16.mxu0 %v6117_v18  ;;  %5101 = vmatprep.subr.bf16.mxu1 %v6121_v23 }
 0x3ae   :  { %5071 = vmatpush1.bf16.msra.mxu0 %v6128_v28  ;;  %5103 = vmatpush1.bf16.msra.mxu1 %v6132_v33 }
 0x3af   :  { %5073 = vmatprep.subr.bf16.mxu0 %v6136_v37  ;;  %5105 = vmatprep.subr.bf16.mxu1 %v6140_v41 }
 0x3b2   :  { %5075 = vmatpush1.bf16.msra.mxu0 %v6147_v44  ;;  %5107 = vmatpush1.bf16.msra.mxu1 %v7704_v51 }
 0x3b3   :  { %5109 = vmatprep.subr.bf16.mxu0 %v7705_v52  ;;  %5141 = vmatprep.subr.bf16.mxu1 %v7706_v11 }
 0x468   :  { %v1487_v26 = vpop.f32.mrb[22].mxu0  ;;  %v1558_v30 = vpop.f32.mrb[22].mxu1 }
 0x469   :  { %v1563_v36 = vadd.f32 %v1487_v26, %v7722_v48  ;;  %v1565_v61 = vadd.f32 %v1558_v30, %v7725_v21  ;;  %v1489_v59 = vpop.f32.mrb[23].mxu0  ;;  %v1560_v49 = vpop.f32.mrb[23].mxu1 }
 0x46a   :  { %v1564_v31 = vadd.f32 %v1489_v59, %v7728_v58  ;;  %v1566_v46 = vadd.f32 %v1560_v49, %v7731_v1 }
 0x46b   :  { %v1567_v26 = vmul.f32 0.5, %v1563_v36  ;;  %v1569_v30 = vmul.f32 0.5, %v1565_v61 }
 0x46c   :  { %v1568_v48 = vmul.f32 0.5, %v1564_v31 }
 0x46d   :  { %5727 = vtanh.f32 %v1567_v26  ;;  %v7734_v26 = vsel %vm6267_vm6, %v7727_v5, %v7726_v2 }
 0x46e   :  { %5729 = vtanh.f32 %v1568_v48 }
 0x46f   :  { %5731 = vtanh.f32 %v1566_v46 }
 0x470   :  { %5733 = vtanh.f32 %v1569_v30  ;;  %v7735_v30 = vsel %vm6277_vm7, %v7730_v17, %v7729_v7 }
 0x477   :  { %v5728_v21 = vpop.eup %5727 }
 0x478   :  { %v1573_v24 = vadd.f32 1.0, %v5728_v21  ;;  %v5730_v0 = vpop.eup %5729 }
 0x479   :  { %v1574_v27 = vadd.f32 1.0, %v5730_v0  ;;  %v5732_v54 = vpop.eup %5731  ;;  %v7732_v0 = vld [vmem:[#allocation29_spill] sm:$0xff] }
 0x47a   :  { %v1576_v55 = vmul.f32 0.5, %v1573_v24  ;;  %v5734_v36 = vpop.eup %5733 }
 0x47b   :  { %v1577_v59 = vmul.f32 0.5, %v1574_v27  ;;  %v1575_v49 = vadd.f32 1.0, %v5734_v36  ;;  %v7733_v27 = vsel %vm6263_vm5, %v7724_v62, %v7723_v34 }
 0x47c   :  { %v1581_v58 = vmul.f32 %v5732_v54, %v1576_v55 }
 0x47d   :  { %v1580_v56 = vmul.f32 %v1577_v59, %v6573_v20  ;;  %v1578_v31 = vmul.f32 0.5, %v1575_v49 }
 0x47f   :  { %v6631_v13 = vadd.f32 %v1581_v58, %v1580_v56 }
 0x481   :  { %5735 = vtanh.f32 %v6631_v13 }
 0x48b   :  { %v5736_v1 = vpop.eup %5735 }
 0x48c   :  { %v6634_v61 = vmul.f32 %v5736_v1, %v1578_v31 }
 0x48e   :  { %1655 = vmatmul.mubr.f32.vlgmr.msra.gmra.mrb[24].mxu0 %v6634_v61  ;;  %1726 = vmatmul.mubr.f32.vlgmr.msra.gmra.mrb[24].mxu1 %v6634_v61 }
 0x48f   :  { %5111 = vmatpush1.bf16.msra.mxu0 %v6018_v3  ;;  %5143 = vmatpush1.bf16.msra.mxu1 %v6021_v6 }
 0x490   :  { %5113 = vmatprep.subr.bf16.mxu0 %v6023_v9  ;;  %5145 = vmatprep.subr.bf16.mxu1 %v6026_v12 }
 0x491   :  { %1823 = vmatprep.mubr.f32.mxu0 %v7703_v47  ;;  %1894 = vmatprep.mubr.f32.mxu1 %v7703_v47 }
 0x493   :  { %5115 = vmatpush1.bf16.msra.mxu0 %v6033_v16  ;;  %5147 = vmatpush1.bf16.msra.mxu1 %v6037_v19 }
 0x494   :  { %5117 = vmatprep.subr.bf16.mxu0 %v6041_v22  ;;  %5149 = vmatprep.subr.bf16.mxu1 %v6045_v25 }
 0x497   :  { %5119 = vmatpush1.bf16.msra.mxu0 %v6052_v29  ;;  %5151 = vmatpush1.bf16.msra.mxu1 %v6056_v32 }
 0x498   :  { %5121 = vmatprep.subr.bf16.mxu0 %v6060_v35  ;;  %5153 = vmatprep.subr.bf16.mxu1 %v6064_v38 }
 0x49b   :  { %5123 = vmatpush1.bf16.msra.mxu0 %v6071_v42  ;;  %5155 = vmatpush1.bf16.msra.mxu1 %v6075_v45 }
 0x49c   :  { %5125 = vmatprep.subr.bf16.mxu0 %v6079_v50  ;;  %5157 = vmatprep.subr.bf16.mxu1 %v6083_v53 }
 0x49f   :  { %5127 = vmatpush1.bf16.msra.mxu0 %v6090_v57  ;;  %5159 = vmatpush1.bf16.msra.mxu1 %v6094_v60 }
 0x4a0   :  { %5129 = vmatprep.subr.bf16.mxu0 %v6098_v63  ;;  %5161 = vmatprep.subr.bf16.mxu1 %v6102_v4 }
 0x4a3   :  { %5131 = vmatpush1.bf16.msra.mxu0 %v6109_v10  ;;  %5163 = vmatpush1.bf16.msra.mxu1 %v6113_v14 }
 0x4a4   :  { %5133 = vmatprep.subr.bf16.mxu0 %v6117_v18  ;;  %5165 = vmatprep.subr.bf16.mxu1 %v6121_v23 }
 0x4a7   :  { %5135 = vmatpush1.bf16.msra.mxu0 %v6128_v28  ;;  %5167 = vmatpush1.bf16.msra.mxu1 %v6132_v33 }
 0x4a8   :  { %5137 = vmatprep.subr.bf16.mxu0 %v6136_v37  ;;  %5169 = vmatprep.subr.bf16.mxu1 %v6140_v41 }
 0x4ab   :  { %5139 = vmatpush1.bf16.msra.mxu0 %v6147_v44  ;;  %5171 = vmatpush1.bf16.msra.mxu1 %v7704_v51 }
 0x4ac   :  { %5173 = vmatprep.subr.bf16.mxu0 %v7705_v52  ;;  %5205 = vmatprep.subr.bf16.mxu1 %v7706_v11 }
 0x561   :  { %v1656_v24 = vpop.f32.mrb[24].mxu0  ;;  %v1727_v20 = vpop.f32.mrb[24].mxu1 }
 0x562   :  { %v1732_v56 = vadd.f32 %v1656_v24, %v7732_v0  ;;  %v1734_v54 = vadd.f32 %v1727_v20, %v7733_v27  ;;  %v1658_v55 = vpop.f32.mrb[25].mxu0  ;;  %v1729_v46 = vpop.f32.mrb[25].mxu1 }
 0x563   :  { %v1733_v48 = vadd.f32 %v1658_v55, %v7734_v26  ;;  %v1735_v21 = vadd.f32 %v1729_v46, %v7735_v30  ;;  %v1585_v55 = vmax.f32 %v6634_v61, 0.0  ;;  %v7736_v30 = vld [vmem:[#allocation34_spill] sm:$0xff] }
 0x564   :  { %v1736_v59 = vmul.f32 0.5, %v1732_v56  ;;  %v1738_v34 = vmul.f32 0.5, %v1734_v54 }
 0x565   :  { %v1737_v58 = vmul.f32 0.5, %v1733_v48 }
 0x566   :  { %5737 = vtanh.f32 %v1736_v59  ;;  %v7737_v59 = vsel %vm6263_vm5, %v7713_v15, %v7712_v8 }
 0x567   :  { %5739 = vtanh.f32 %v1737_v58 }
 0x568   :  { %5741 = vtanh.f32 %v1735_v21 }
 0x569   :  { %5743 = vtanh.f32 %v1738_v34 }
 0x570   :  { %v5738_v62 = vpop.eup %5737 }
 0x571   :  { %v1742_v36 = vadd.f32 1.0, %v5738_v62  ;;  %v5740_v49 = vpop.eup %5739 }
 0x572   :  { %v1743_v1 = vadd.f32 1.0, %v5740_v49  ;;  %v5742_v2 = vpop.eup %5741  ;;  %v7739_v49 = vld [vmem:[#allocation20_spill] sm:$0xff] }
 0x573   :  { %v1745_v31 = vmul.f32 0.5, %v1742_v36  ;;  %v5744_v7 = vpop.eup %5743  ;;  %v7738_v36 = vld [vmem:[#allocation31_spill] sm:$0xff] }
 0x574   :  { %v1746_v5 = vmul.f32 0.5, %v1743_v1  ;;  %v1744_v17 = vadd.f32 1.0, %v5744_v7  ;;  %v7742_v1 = vld [vmem:[#allocation21_spill] sm:$0xff] }
 0x575   :  { %v1750_v24 = vmul.f32 %v5742_v2, %v1745_v31  ;;  %v7740_v31 = vsel %vm6267_vm6, %v7738_v36, %v7739_v49 }
 0x576   :  { %v1749_v20 = vmul.f32 %v1746_v5, %v6631_v13  ;;  %v1747_v56 = vmul.f32 0.5, %v1744_v17 }
 0x578   :  { %v6689_v0 = vadd.f32 %v1750_v24, %v1749_v20 }
 0x57a   :  { %5745 = vtanh.f32 %v6689_v0 }
 0x584   :  { %v5746_v27 = vpop.eup %5745 }
 0x585   :  { %v1753_v54 = vmul.f32 %v5746_v27, %v1747_v56 }
 0x587   :  { %v1754_v46 = vmax.f32 %v1753_v54, 0.0  ;;  %1824 = vmatmul.mubr.f32.vlgmr.msra.gmra.mrb[26].mxu0 %v1753_v54  ;;  %1895 = vmatmul.mubr.f32.vlgmr.msra.gmra.mrb[26].mxu1 %v1753_v54 }
 0x588   :  { %5175 = vmatpush1.bf16.msra.mxu0 %v6018_v3  ;;  %5207 = vmatpush1.bf16.msra.mxu1 %v6021_v6 }
 0x589   :  { %v6696_v13 = vsel %vm2262_vm8, %v1585_v55, %v1754_v46  ;;  %v6699_v26 = vsel %vm2262_vm8, %v1754_v46, %v1585_v55  ;;  %5177 = vmatprep.subr.bf16.mxu0 %v6023_v9  ;;  %5209 = vmatprep.subr.bf16.mxu1 %v6026_v12 }
 0x58a   :  { %1992 = vmatprep.mubr.f32.mxu0 %v7703_v47  ;;  %2063 = vmatprep.mubr.f32.mxu1 %v7703_v47 }
 0x58c   :  { %5179 = vmatpush1.bf16.msra.mxu0 %v6033_v16  ;;  %5211 = vmatpush1.bf16.msra.mxu1 %v6037_v19 }
 0x58d   :  { %5181 = vmatprep.subr.bf16.mxu0 %v6041_v22  ;;  %5213 = vmatprep.subr.bf16.mxu1 %v6045_v25 }
 0x590   :  { %5183 = vmatpush1.bf16.msra.mxu0 %v6052_v29  ;;  %5215 = vmatpush1.bf16.msra.mxu1 %v6056_v32 }
 0x591   :  { %5185 = vmatprep.subr.bf16.mxu0 %v6060_v35  ;;  %5217 = vmatprep.subr.bf16.mxu1 %v6064_v38 }
 0x594   :  { %5187 = vmatpush1.bf16.msra.mxu0 %v6071_v42  ;;  %5219 = vmatpush1.bf16.msra.mxu1 %v6075_v45 }
 0x595   :  { %5189 = vmatprep.subr.bf16.mxu0 %v6079_v50  ;;  %5221 = vmatprep.subr.bf16.mxu1 %v6083_v53 }
 0x598   :  { %5191 = vmatpush1.bf16.msra.mxu0 %v6090_v57  ;;  %5223 = vmatpush1.bf16.msra.mxu1 %v6094_v60 }
 0x599   :  { %5193 = vmatprep.subr.bf16.mxu0 %v6098_v63  ;;  %5225 = vmatprep.subr.bf16.mxu1 %v6102_v4 }
 0x59c   :  { %5195 = vmatpush1.bf16.msra.mxu0 %v6109_v10  ;;  %5227 = vmatpush1.bf16.msra.mxu1 %v6113_v14 }
 0x59d   :  { %5197 = vmatprep.subr.bf16.mxu0 %v6117_v18  ;;  %5229 = vmatprep.subr.bf16.mxu1 %v6121_v23 }
 0x5a0   :  { %5199 = vmatpush1.bf16.msra.mxu0 %v6128_v28  ;;  %5231 = vmatpush1.bf16.msra.mxu1 %v6132_v33 }
 0x5a1   :  { %5201 = vmatprep.subr.bf16.mxu0 %v6136_v37  ;;  %5233 = vmatprep.subr.bf16.mxu1 %v6140_v41 }
 0x5a4   :  { %5203 = vmatpush1.bf16.msra.mxu0 %v6147_v44  ;;  %5235 = vmatpush1.bf16.msra.mxu1 %v7704_v51 }
 0x5a5   :  { %5237 = vmatprep.subr.bf16.mxu0 %v7705_v52  ;;  %5269 = vmatprep.subr.bf16.mxu1 %v7706_v11  ;;  %v7741_v11 = vld [vmem:[#allocation32_spill] sm:$0xff] }
 0x5a6   :  { %v7743_v2 = vsel %vm6277_vm7, %v7741_v11, %v7742_v1 }
 0x65a   :  { %v1825_v61 = vpop.f32.mrb[26].mxu0  ;;  %v1896_v48 = vpop.f32.mrb[26].mxu1 }
 0x65b   :  { %v1901_v21 = vadd.f32 %v1825_v61, %v7736_v30  ;;  %v1903_v58 = vadd.f32 %v1896_v48, %v7737_v59  ;;  %v1827_v34 = vpop.f32.mrb[27].mxu0  ;;  %v1898_v62 = vpop.f32.mrb[27].mxu1 }
 0x65c   :  { %v1902_v52 = vadd.f32 %v1827_v34, %v7740_v31  ;;  %v1904_v5 = vadd.f32 %v1898_v62, %v7743_v2  ;;  %v7744_v62 = vld [vmem:[#allocation13_spill] sm:$0xff] }
 0x65d   :  { %v1905_v24 = vmul.f32 0.5, %v1901_v21  ;;  %v1907_v8 = vmul.f32 0.5, %v1903_v58  ;;  %v1408_v36 = vmax.f32 %v7744_v62, 0.0 }
 0x65e   :  { %v1906_v20 = vmul.f32 0.5, %v1902_v52 }
 0x65f   :  { %5747 = vtanh.f32 %v1905_v24 }
 0x660   :  { %5749 = vtanh.f32 %v1906_v20  ;;  %v7755_v20 = vld [vmem:[#allocation15_spill] sm:$0xff] }
 0x661   :  { %5751 = vtanh.f32 %v1904_v5 }
 0x662   :  { %5753 = vtanh.f32 %v1907_v8  ;;  %v1231_v8 = vmax.f32 %v7755_v20, 0.0  ;;  %v2977_v20 = vld [vmem:[%s7608_s7 + $0x8] sm:$0xff] }
 0x669   :  { %v5748_v15 = vpop.eup %5747 }
 0x66a   :  { %v1911_v7 = vadd.f32 1.0, %v5748_v15  ;;  %v5750_v17 = vpop.eup %5749 }
 0x66b   :  { %v1912_v27 = vadd.f32 1.0, %v5750_v17  ;;  %v5752_v54 = vpop.eup %5751 }
 0x66c   :  { %v1914_v56 = vmul.f32 0.5, %v1911_v7  ;;  %v5754_v30 = vpop.eup %5753 }
 0x66d   :  { %v1915_v55 = vmul.f32 0.5, %v1912_v27  ;;  %v1913_v21 = vadd.f32 1.0, %v5754_v30  ;;  %v3826_v27 = vld [vmem:[%s7608_s7 + $0x88] sm:$0xff]  ;;  %v3827_v30 = vld [vmem:[%s7608_s7 + $0x90] sm:$0xff] }
 0x66e   :  { %v1919_v46 = vmul.f32 %v5752_v54, %v1914_v56  ;;  %v3825_v56 = vld [vmem:[%s7608_s7 + $0x80] sm:$0xff] }
 0x66f   :  { %v1918_v61 = vmul.f32 %v1915_v55, %v6689_v0  ;;  %v1916_v59 = vmul.f32 0.5, %v1913_v21  ;;  %v5461_v54 = vpack.c.bf16 %v3826_v27, %v3825_v56  ;;  %v5855_v55 = vmov 0.0|0.0   ;;  %v3828_v21 = vld [vmem:[%s7608_s7 + $0x98] sm:$0xff] }
 0x671   :  { %v6750_v48 = vadd.f32 %v1919_v46, %v1918_v61  ;;  %v3760_v46 = vld [vmem:[%s7606_s5 + $0x80] sm:$0xff]  ;;  %v3761_v61 = vld [vmem:[%s7606_s5 + $0x88] sm:$0xff] }
 0x673   :  { %5755 = vtanh.f32 %v6750_v48 }
 0x67d   :  { %v5756_v34 = vpop.eup %5755 }
 0x67e   :  { %v1922_v58 = vmul.f32 %v5756_v34, %v1916_v59  ;;  %v5464_v59 = vpack.c.bf16 %v3828_v21, %v3827_v30  ;;  %v3762_v34 = vld [vmem:[%s7606_s5 + $0x90] sm:$0xff]  ;;  %v2981_v30 = vld [vmem:[%s7608_s7 + $0x28] sm:$0xff] }
 0x680   :  { %v1923_v49 = vmax.f32 %v1922_v58, 0.0  ;;  %1993 = vmatmul.mubr.f32.vlgmr.msra.gmra.mrb[28].mxu0 %v1922_v58  ;;  %2064 = vmatmul.mubr.f32.vlgmr.msra.gmra.mrb[28].mxu1 %v1922_v58  ;;  %v3763_v58 = vld [vmem:[%s7606_s5 + $0x98] sm:$0xff] }
 0x681   :  { %5239 = vmatpush1.bf16.msra.mxu0 %v6018_v3  ;;  %5271 = vmatpush1.bf16.msra.mxu1 %v6021_v6  ;;  %v5304_v62 = vpack.c.bf16 %v3763_v58, %v3762_v34  ;;  %v2983_v34 = vld [vmem:[%s7608_s7 + $0x38] sm:$0xff] }
 0x682   :  { %v6757_v0 = vsel %vm2262_vm8, %v1408_v36, %v1923_v49  ;;  %v6760_v31 = vsel %vm2262_vm8, %v1923_v49, %v1408_v36  ;;  %5241 = vmatprep.subr.bf16.mxu0 %v6023_v9  ;;  %5273 = vmatprep.subr.bf16.mxu1 %v6026_v12  ;;  %v7745_v9 = vld [vmem:[#allocation38_spill] sm:$0xff]  ;;  %v3829_v36 = vld [vmem:[%s7608_s7 + $0xa0] sm:$0xff]  ;;  %v3830_v49 = vld [vmem:[%s7608_s7 + $0xa8] sm:$0xff] }
 0x683   :  { %2161 = vmatprep.mubr.f32.mxu0 %v7703_v47  ;;  %2232 = vmatprep.mubr.f32.mxu1 %v7703_v47 }
 0x685   :  { %5243 = vmatpush1.bf16.msra.mxu0 %v6033_v16  ;;  %5275 = vmatpush1.bf16.msra.mxu1 %v6037_v19  ;;  %v7746_v16 = vld [vmem:[#allocation35_spill] sm:$0xff]  ;;  %v7747_v19 = vld [vmem:[#allocation16_spill] sm:$0xff] }
 0x686   :  { %5245 = vmatprep.subr.bf16.mxu0 %v6041_v22  ;;  %5277 = vmatprep.subr.bf16.mxu1 %v6045_v25  ;;  %v7748_v22 = vsel %vm6263_vm5, %v7746_v16, %v7747_v19  ;;  %v3831_v16 = vld [vmem:[%s7608_s7 + $0xb0] sm:$0xff]  ;;  %v3832_v19 = vld [vmem:[%s7608_s7 + $0xb8] sm:$0xff] }
 0x689   :  { %5247 = vmatpush1.bf16.msra.mxu0 %v6052_v29  ;;  %5279 = vmatpush1.bf16.msra.mxu1 %v6056_v32 }
 0x68a   :  { %5249 = vmatprep.subr.bf16.mxu0 %v6060_v35  ;;  %5281 = vmatprep.subr.bf16.mxu1 %v6064_v38  ;;  %v7749_v35 = vld [vmem:[#allocation36_spill] sm:$0xff]  ;;  %v7750_v38 = vld [vmem:[#allocation17_spill] sm:$0xff] }
 0x68d   :  { %5251 = vmatpush1.bf16.msra.mxu0 %v6071_v42  ;;  %5283 = vmatpush1.bf16.msra.mxu1 %v6075_v45  ;;  %v7751_v42 = vsel %vm6267_vm6, %v7749_v35, %v7750_v38  ;;  %v3833_v35 = vld [vmem:[%s7608_s7 + $0xc0] sm:$0xff]  ;;  %v3834_v38 = vld [vmem:[%s7608_s7 + $0xc8] sm:$0xff] }
 0x68e   :  { %5253 = vmatprep.subr.bf16.mxu0 %v6079_v50  ;;  %5285 = vmatprep.subr.bf16.mxu1 %v6083_v53  ;;  %v7752_v50 = vld [vmem:[#allocation37_spill] sm:$0xff]  ;;  %v7753_v53 = vld [vmem:[#allocation18_spill] sm:$0xff] }
 0x691   :  { %5255 = vmatpush1.bf16.msra.mxu0 %v6090_v57  ;;  %5287 = vmatpush1.bf16.msra.mxu1 %v6094_v60  ;;  %v7754_v57 = vsel %vm6277_vm7, %v7752_v50, %v7753_v53  ;;  %v3769_v50 = vld [vmem:[%s7606_s5 + $0xc8] sm:$0xff] }
 0x692   :  { %5257 = vmatprep.subr.bf16.mxu0 %v6098_v63  ;;  %5289 = vmatprep.subr.bf16.mxu1 %v6102_v4 }
 0x695   :  { %5259 = vmatpush1.bf16.msra.mxu0 %v6109_v10  ;;  %5291 = vmatpush1.bf16.msra.mxu1 %v6113_v14 }
 0x696   :  { %5261 = vmatprep.subr.bf16.mxu0 %v6117_v18  ;;  %5293 = vmatprep.subr.bf16.mxu1 %v6121_v23 }
 0x699   :  { %5263 = vmatpush1.bf16.msra.mxu0 %v6128_v28  ;;  %5295 = vmatpush1.bf16.msra.mxu1 %v6132_v33 }
 0x69a   :  { %5265 = vmatprep.subr.bf16.mxu0 %v6136_v37  ;;  %5297 = vmatprep.subr.bf16.mxu1 %v6140_v41 }
 0x69d   :  { %5267 = vmatpush1.bf16.msra.mxu0 %v6147_v44  ;;  %5299 = vmatpush1.bf16.msra.mxu1 %v7704_v51 }
 0x69e   :  { %5460 = vmatprep.subr.bf16.mxu1 %v5855_v55 }
 0x753   :  { %v1994_v3 = vpop.f32.mrb[28].mxu0  ;;  %v2065_v6 = vpop.f32.mrb[28].mxu1 }
 0x754   :  { %v2070_v12 = vadd.f32 %v1994_v3, %v7745_v9  ;;  %v2072_v25 = vadd.f32 %v2065_v6, %v7748_v22  ;;  %v1996_v29 = vpop.f32.mrb[29].mxu0  ;;  %v2067_v32 = vpop.f32.mrb[29].mxu1  ;;  %v5467_v3 = vpack.c.bf16 %v3830_v49, %v3829_v36  ;;  %v3764_v6 = vld [vmem:[%s7606_s5 + $0xa0] sm:$0xff]  ;;  %v3765_v9 = vld [vmem:[%s7606_s5 + $0xa8] sm:$0xff]  ;;  %v5470_v22 = vpack.c.bf16 %v3832_v19, %v3831_v16 }
 0x755   :  { %v2071_v45 = vadd.f32 %v1996_v29, %v7751_v42  ;;  %v2073_v60 = vadd.f32 %v2067_v32, %v7754_v57  ;;  %v3767_v29 = vld [vmem:[%s7606_s5 + $0xb8] sm:$0xff]  ;;  %v5473_v42 = vpack.c.bf16 %v3834_v38, %v3833_v35  ;;  %v3835_v57 = vld [vmem:[%s7608_s7 + $0xd0] sm:$0xff]  ;;  %v2985_v36 = vld [vmem:[%s7608_s7 + $0x48] sm:$0xff] }
 0x756   :  { %v2074_v63 = vmul.f32 0.5, %v2070_v12  ;;  %v2076_v10 = vmul.f32 0.5, %v2072_v25  ;;  %v5308_v12 = vpack.c.bf16 %v3765_v9, %v3764_v6  ;;  %v3766_v25 = vld [vmem:[%s7606_s5 + $0xb0] sm:$0xff]  ;;  %v2987_v6 = vld [vmem:[%s7608_s7 + $0x58] sm:$0xff]  ;;  %v2989_v16 = vld [vmem:[%s7608_s7 + $0x68] sm:$0xff] }
 0x757   :  { %v2075_v4 = vmul.f32 0.5, %v2071_v45  ;;  %v5312_v32 = vpack.c.bf16 %v3767_v29, %v3766_v25  ;;  %v3768_v45 = vld [vmem:[%s7606_s5 + $0xc0] sm:$0xff]  ;;  %v2991_v25 = vld [vmem:[%s7608_s7 + $0x78] sm:$0xff]  ;;  %v7756_v38 = vld [vmem:[#allocation45_spill] sm:$0xff] }
 0x758   :  { %5757 = vtanh.f32 %v2074_v63  ;;  %v5316_v53 = vpack.c.bf16 %v3769_v50, %v3768_v45  ;;  %v7757_v45 = vld [vmem:[#allocation41_spill] sm:$0xff]  ;;  %v7758_v50 = vld [vmem:[#allocation39_spill] sm:$0xff] }
 0x759   :  { %5759 = vtanh.f32 %v2075_v4  ;;  %v3770_v4 = vld [vmem:[%s7606_s5 + $0xd0] sm:$0xff] }
 0x75a   :  { %5761 = vtanh.f32 %v2073_v60  ;;  %v3836_v60 = vld [vmem:[%s7608_s7 + $0xd8] sm:$0xff] }
 0x75b   :  { %5763 = vtanh.f32 %v2076_v10  ;;  %v5476_v63 = vpack.c.bf16 %v3836_v60, %v3835_v57  ;;  %v3771_v10 = vld [vmem:[%s7606_s5 + $0xd8] sm:$0xff] }
 0x762   :  { %v5758_v14 = vpop.eup %5757 }
 0x763   :  { %v2080_v18 = vadd.f32 1.0, %v5758_v14  ;;  %v5760_v23 = vpop.eup %5759  ;;  %v3837_v14 = vld [vmem:[%s7608_s7 + $0xe0] sm:$0xff] }
 0x764   :  { %v2081_v33 = vadd.f32 1.0, %v5760_v23  ;;  %v5762_v37 = vpop.eup %5761  ;;  %v3838_v23 = vld [vmem:[%s7608_s7 + $0xe8] sm:$0xff] }
 0x765   :  { %v2083_v28 = vmul.f32 0.5, %v2080_v18  ;;  %v5764_v11 = vpop.eup %5763  ;;  %v5320_v18 = vpack.c.bf16 %v3771_v10, %v3770_v4  ;;  %v7760_v4 = vld [vmem:[#allocation42_spill] sm:$0xff]  ;;  %v7761_v10 = vld [vmem:[#allocation40_spill] sm:$0xff] }
 0x766   :  { %v2084_v41 = vmul.f32 0.5, %v2081_v33  ;;  %v2082_v1 = vadd.f32 1.0, %v5764_v11  ;;  %v3773_v33 = vld [vmem:[%s7606_s5 + $0xe8] sm:$0xff]  ;;  %v3774_v11 = vld [vmem:[%s7606_s5 + $0xf0] sm:$0xff] }
 0x767   :  { %v2088_v44 = vmul.f32 %v5762_v37, %v2083_v28  ;;  %v3772_v28 = vld [vmem:[%s7606_s5 + $0xe0] sm:$0xff]  ;;  %v5479_v37 = vpack.c.bf16 %v3838_v23, %v3837_v14  ;;  %v7762_v14 = vsel %vm6267_vm6, %v7760_v4, %v7761_v10  ;;  %v3842_v4 = vld [vmem:[%s7608_s7 + $0x108] sm:$0xff]  ;;  %v3778_v10 = vld [vmem:[%s7606_s5 + $0x110] sm:$0xff] }
 0x768   :  { %v2087_v51 = vmul.f32 %v2084_v41, %v6750_v48  ;;  %v2085_v2 = vmul.f32 0.5, %v2082_v1  ;;  %v5300_v48 = vpack.c.bf16 %v3761_v61, %v3760_v46  ;;  %v5324_v41 = vpack.c.bf16 %v3773_v33, %v3772_v28  ;;  %v3775_v1 = vld [vmem:[%s7606_s5 + $0xf8] sm:$0xff]  ;;  %v7763_v23 = vld [vmem:[#allocation44_spill] sm:$0xff] }
 0x769   :  { %v2979_v46 = vld [vmem:[%s7608_s7 + $0x18] sm:$0xff] }
 0x76a   :  { %v6809_v52 = vadd.f32 %v2088_v44, %v2087_v51  ;;  %5301 = vmatprep.subr.bf16.mxu0 %v5300_v48  ;;  %v3839_v44 = vld [vmem:[%s7608_s7 + $0xf0] sm:$0xff]  ;;  %v3840_v51 = vld [vmem:[%s7608_s7 + $0xf8] sm:$0xff] }
 0x76b   :  { %v7764_v28 = vld [vmem:[#allocation43_spill] sm:$0xff] }
 0x76c   :  { %5765 = vtanh.f32 %v6809_v52  ;;  %v7765_v33 = vsel %vm6277_vm7, %v7763_v23, %v7764_v28  ;;  %v3780_v28 = vld [vmem:[%s7606_s5 + $0x120] sm:$0xff] }
 0x776   :  { %v5766_v5 = vpop.eup %5765 }
 0x777   :  { %v2091_v24 = vmul.f32 %v5766_v5, %v2085_v2  ;;  %v5482_v2 = vpack.c.bf16 %v3840_v51, %v3839_v44  ;;  %v5328_v5 = vpack.c.bf16 %v3775_v1, %v3774_v11 }
 0x779   :  { %v2092_v15 = vmax.f32 %v2091_v24, 0.0  ;;  %2162 = vmatmul.mubr.f32.vlgmr.msra.gmra.mrb[30].mxu0 %v2091_v24  ;;  %2233 = vmatmul.mubr.f32.vlgmr.msra.gmra.mrb[30].mxu1 %v2091_v24  ;;  %v2976_v24 = vld [vmem:[%s7608_s7] sm:$0xff] }
 0x77a   :  { %4154 = vmatprep.mubr.f32.mxu0 %v7703_v47  ;;  %5462 = vmatpush3.bf16.msra.mxu1 %v5461_v54  ;;  %v5485_v56 = vpack.c.bf16 %v2977_v20, %v2976_v24  ;;  %v2978_v54 = vld [vmem:[%s7608_s7 + $0x10] sm:$0xff] }
 0x77b   :  { %v6815_v7 = vsel %vm2262_vm8, %v1231_v8, %v2092_v15  ;;  %v6818_v17 = vsel %vm2262_vm8, %v2092_v15, %v1231_v8  ;;  %5463 = vmatprep.subr.bf16.mxu1 %v5855_v55  ;;  %5303 = vmatpush3.bf16.msra.mxu0 %v5300_v48  ;;  %v2287_v8 = vld [vmem:[%s7606_s5] sm:$0xff]  ;;  %v2288_v15 = vld [vmem:[%s7606_s5 + $0x8] sm:$0xff]  ;;  %v5488_v61 = vpack.c.bf16 %v2979_v46, %v2978_v54 }
 0x77c   :  { %5305 = vmatprep.subr.bf16.mxu0 %v5304_v62  ;;  %4374 = vmatprep.mubr.msk.f32.mxu1 %vm5856_vm9, %v7703_v47  ;;  %v6938_v27 = vpack.c.bf16 %v2288_v15, %v2287_v8  ;;  %v2980_v48 = vld [vmem:[%s7608_s7 + $0x20] sm:$0xff] }
 0x77d   :  { %v5491_v21 = vpack.c.bf16 %v2981_v30, %v2980_v48  ;;  %v2289_v48 = vld [vmem:[%s7606_s5 + $0x10] sm:$0xff]  ;;  %v2290_v30 = vld [vmem:[%s7606_s5 + $0x18] sm:$0xff] }
 0x77e   :  { %5465 = vmatpush3.bf16.msra.mxu1 %v5464_v59  ;;  %v2982_v59 = vld [vmem:[%s7608_s7 + $0x30] sm:$0xff] }
 0x77f   :  { %5466 = vmatprep.subr.bf16.mxu1 %v5855_v55  ;;  %5307 = vmatpush3.bf16.msra.mxu0 %v5304_v62  ;;  %v5494_v58 = vpack.c.bf16 %v2983_v34, %v2982_v59  ;;  %v2984_v62 = vld [vmem:[%s7608_s7 + $0x40] sm:$0xff] }
 0x780   :  { %5309 = vmatprep.subr.bf16.mxu0 %v5308_v12  ;;  %v5497_v49 = vpack.c.bf16 %v2985_v36, %v2984_v62  ;;  %v2291_v62 = vld [vmem:[%s7606_s5 + $0x20] sm:$0xff]  ;;  %v2292_v36 = vld [vmem:[%s7606_s5 + $0x28] sm:$0xff] }
 0x782   :  { %5468 = vmatpush3.bf16.msra.mxu1 %v5467_v3  ;;  %v2986_v3 = vld [vmem:[%s7608_s7 + $0x50] sm:$0xff] }
 0x783   :  { %5469 = vmatprep.subr.bf16.mxu1 %v5855_v55  ;;  %5311 = vmatpush3.bf16.msra.mxu0 %v5308_v12  ;;  %v5500_v9 = vpack.c.bf16 %v2987_v6, %v2986_v3  ;;  %v2988_v12 = vld [vmem:[%s7608_s7 + $0x60] sm:$0xff]  ;;  %v5340_v3 = vpack.c.bf16 %v2292_v36, %v2291_v62  ;;  %v2293_v6 = vld [vmem:[%s7606_s5 + $0x30] sm:$0xff]  ;;  %v3852_v36 = vld [vmem:[%s7608_s7 + $0x158] sm:$0xff] }
 0x784   :  { %5313 = vmatprep.subr.bf16.mxu0 %v5312_v32  ;;  %v5503_v19 = vpack.c.bf16 %v2989_v16, %v2988_v12  ;;  %v2295_v12 = vld [vmem:[%s7606_s5 + $0x40] sm:$0xff]  ;;  %v2296_v16 = vld [vmem:[%s7606_s5 + $0x48] sm:$0xff]  ;;  %v3851_v62 = vld [vmem:[%s7608_s7 + $0x150] sm:$0xff] }
 0x786   :  { %5471 = vmatpush3.bf16.msra.mxu1 %v5470_v22  ;;  %v2990_v22 = vld [vmem:[%s7608_s7 + $0x70] sm:$0xff] }
 0x787   :  { %5472 = vmatprep.subr.bf16.mxu1 %v5855_v55  ;;  %5315 = vmatpush3.bf16.msra.mxu0 %v5312_v32  ;;  %v5506_v29 = vpack.c.bf16 %v2991_v25, %v2990_v22  ;;  %v2297_v22 = vld [vmem:[%s7606_s5 + $0x50] sm:$0xff]  ;;  %v2298_v25 = vld [vmem:[%s7606_s5 + $0x58] sm:$0xff] }
 0x788   :  { %5317 = vmatprep.subr.bf16.mxu0 %v5316_v53 }
 0x78a   :  { %5474 = vmatpush3.bf16.msra.mxu1 %v5473_v42 }
 0x78b   :  { %5475 = vmatprep.subr.bf16.mxu1 %v5855_v55  ;;  %5319 = vmatpush3.bf16.msra.mxu0 %v5316_v53  ;;  %v7759_v53 = vsel %vm6263_vm5, %v7757_v45, %v7758_v50  ;;  %v2302_v45 = vld [vmem:[%s7606_s5 + $0x78] sm:$0xff] }
 0x78c   :  { %5321 = vmatprep.subr.bf16.mxu0 %v5320_v18 }
 0x78e   :  { %5477 = vmatpush3.bf16.msra.mxu1 %v5476_v63 }
 0x78f   :  { %5478 = vmatprep.subr.bf16.mxu1 %v5855_v55  ;;  %5323 = vmatpush3.bf16.msra.mxu0 %v5320_v18 }
 0x790   :  { %5325 = vmatprep.subr.bf16.mxu0 %v5324_v41 }
 0x792   :  { %5480 = vmatpush3.bf16.msra.mxu1 %v5479_v37 }
 0x793   :  { %5481 = vmatprep.subr.bf16.mxu1 %v5855_v55  ;;  %5327 = vmatpush3.bf16.msra.mxu0 %v5324_v41 }
 0x794   :  { %5329 = vmatprep.subr.bf16.mxu0 %v5328_v5 }
 0x796   :  { %5483 = vmatpush3.bf16.msra.mxu1 %v5482_v2 }
 0x797   :  { %5484 = vmatprep.subr.bf16.mxu1 %v5855_v55  ;;  %5331 = vmatpush3.bf16.msra.mxu0 %v5328_v5 }
 0x798   :  { %5333 = vmatprep.subr.bf16.mxu0 %v6938_v27 }
 0x799   :  { %4375 = vmatmul.mubr.f32.vlgmr.msra.gmra.mrb[32].mxu1 %v7703_v47 }
 0x79a   :  { %5486 = vmatpush3.bf16.msra.mxu1 %v5485_v56  ;;  %4377 = vmatprep.mubr.msk.f32.mxu1 %vm5856_vm9, %v7703_v47 }
 0x79b   :  { %5487 = vmatprep.subr.bf16.mxu1 %v5855_v55 }
 0x79e   :  { %5489 = vmatpush3.bf16.msra.mxu1 %v5488_v61 }
 0x79f   :  { %5490 = vmatprep.subr.bf16.mxu1 %v5855_v55 }
 0x7a2   :  { %5492 = vmatpush3.bf16.msra.mxu1 %v5491_v21  ;;  %v7766_v21 = vld [vmem:[#allocation46_spill] sm:$0xff] }
 0x7a3   :  { %5493 = vmatprep.subr.bf16.mxu1 %v5855_v55  ;;  %v1054_v59 = vmax.f32 %v7766_v21, 0.0  ;;  %v3788_v21 = vld [vmem:[%s7606_s5 + $0x160] sm:$0xff] }
 0x7a6   :  { %5495 = vmatpush3.bf16.msra.mxu1 %v5494_v58  ;;  %v5336_v58 = vpack.c.bf16 %v2290_v30, %v2289_v48  ;;  %v3849_v48 = vld [vmem:[%s7608_s7 + $0x140] sm:$0xff]  ;;  %v3850_v30 = vld [vmem:[%s7608_s7 + $0x148] sm:$0xff] }
 0x7a7   :  { %5496 = vmatprep.subr.bf16.mxu1 %v5855_v55 }
 0x7aa   :  { %5498 = vmatpush3.bf16.msra.mxu1 %v5497_v49 }
 0x7ab   :  { %5499 = vmatprep.subr.bf16.mxu1 %v5855_v55 }
 0x7ae   :  { %5501 = vmatpush3.bf16.msra.mxu1 %v5500_v9  ;;  %v2294_v9 = vld [vmem:[%s7606_s5 + $0x38] sm:$0xff] }
 0x7af   :  { %5502 = vmatprep.subr.bf16.mxu1 %v5855_v55 }
 0x7b2   :  { %5504 = vmatpush3.bf16.msra.mxu1 %v5503_v19  ;;  %v5348_v19 = vpack.c.bf16 %v2296_v16, %v2295_v12  ;;  %v3853_v12 = vld [vmem:[%s7608_s7 + $0x160] sm:$0xff]  ;;  %v3854_v16 = vld [vmem:[%s7608_s7 + $0x168] sm:$0xff] }
 0x7b3   :  { %5505 = vmatprep.subr.bf16.mxu1 %v5855_v55 }
 0x7b6   :  { %5507 = vmatpush3.bf16.msra.mxu1 %v5506_v29  ;;  %v5352_v29 = vpack.c.bf16 %v2298_v25, %v2297_v22  ;;  %v3793_v22 = vld [vmem:[%s7606_s5 + $0x188] sm:$0xff]  ;;  %v5527_v25 = vpack.c.bf16 %v3854_v16, %v3853_v12  ;;  %v3810_v16 = vld [vmem:[%s7606_s5 + $0x210] sm:$0xff] }
 0x7b7   :  { %5508 = vmatprep.subr.bf16.mxu1 %v5855_v55 }
 0x84c   :  { %v2163_v32 = vpop.f32.mrb[30].mxu0  ;;  %v2234_v35 = vpop.f32.mrb[30].mxu1 }
 0x84d   :  { %v2239_v42 = vadd.f32 %v2163_v32, %v7756_v38  ;;  %v2241_v57 = vadd.f32 %v2234_v35, %v7759_v53  ;;  %v2165_v60 = vpop.f32.mrb[31].mxu0  ;;  %v2236_v63 = vpop.f32.mrb[31].mxu1  ;;  %v2299_v32 = vld [vmem:[%s7606_s5 + $0x60] sm:$0xff]  ;;  %v2300_v35 = vld [vmem:[%s7606_s5 + $0x68] sm:$0xff] }
 0x84e   :  { %v2240_v18 = vadd.f32 %v2165_v60, %v7762_v14  ;;  %v2242_v37 = vadd.f32 %v2236_v63, %v7765_v33  ;;  %v5356_v38 = vpack.c.bf16 %v2300_v35, %v2299_v32  ;;  %v3776_v53 = vld [vmem:[%s7606_s5 + $0x100] sm:$0xff]  ;;  %v3779_v14 = vld [vmem:[%s7606_s5 + $0x118] sm:$0xff]  ;;  %v3781_v33 = vld [vmem:[%s7606_s5 + $0x128] sm:$0xff] }
 0x84f   :  { %v2243_v41 = vmul.f32 0.5, %v2239_v42  ;;  %v2245_v44 = vmul.f32 0.5, %v2241_v57  ;;  %v2301_v42 = vld [vmem:[%s7606_s5 + $0x70] sm:$0xff]  ;;  %v3777_v57 = vld [vmem:[%s7606_s5 + $0x108] sm:$0xff]  ;;  %v3841_v63 = vld [vmem:[%s7608_s7 + $0x100] sm:$0xff]  ;;  %v5368_v23 = vpack.c.bf16 %v3779_v14, %v3778_v10 }
 0x850   :  { %v2244_v40 = vmul.f32 0.5, %v2240_v18  ;;  %v5360_v50 = vpack.c.bf16 %v2302_v45, %v2301_v42  ;;  %v5364_v60 = vpack.c.bf16 %v3777_v57, %v3776_v53  ;;  %v5509_v18 = vpack.c.bf16 %v3842_v4, %v3841_v63  ;;  %v3855_v32 = vld [vmem:[%s7608_s7 + $0x170] sm:$0xff]  ;;  %v3856_v35 = vld [vmem:[%s7608_s7 + $0x178] sm:$0xff]  ;;  %v3796_v53 = vld [vmem:[%s7606_s5 + $0x1a0] sm:$0xff] }
 0x851   :  { %5767 = vtanh.f32 %v2243_v41  ;;  %v3844_v41 = vld [vmem:[%s7608_s7 + $0x118] sm:$0xff]  ;;  %v5530_v45 = vpack.c.bf16 %v3856_v35, %v3855_v32  ;;  %v3797_v57 = vld [vmem:[%s7606_s5 + $0x1a8] sm:$0xff]  ;;  %v3798_v14 = vld [vmem:[%s7606_s5 + $0x1b0] sm:$0xff] }
 0x852   :  { %5769 = vtanh.f32 %v2244_v40  ;;  %v5372_v40 = vpack.c.bf16 %v3781_v33, %v3780_v28  ;;  %v3795_v42 = vld [vmem:[%s7606_s5 + $0x198] sm:$0xff]  ;;  %v3858_v63 = vld [vmem:[%s7608_s7 + $0x188] sm:$0xff]  ;;  %v5404_v4 = vpack.c.bf16 %v3797_v57, %v3796_v53  ;;  %v3812_v35 = vld [vmem:[%s7606_s5 + $0x220] sm:$0xff] }
 0x853   :  { %5771 = vtanh.f32 %v2242_v37  ;;  %v3843_v37 = vld [vmem:[%s7608_s7 + $0x110] sm:$0xff]  ;;  %v3860_v28 = vld [vmem:[%s7608_s7 + $0x198] sm:$0xff]  ;;  %v3816_v57 = vld [vmem:[%s7606_s5 + $0x240] sm:$0xff] }
 0x854   :  { %5773 = vtanh.f32 %v2245_v44  ;;  %v5512_v44 = vpack.c.bf16 %v3844_v41, %v3843_v37  ;;  %v3800_v41 = vld [vmem:[%s7606_s5 + $0x1c0] sm:$0xff] }
 0x85b   :  { %v5768_v51 = vpop.eup %5767 }
 0x85c   :  { %v2249_v11 = vadd.f32 1.0, %v5768_v51  ;;  %v5770_v1 = vpop.eup %5769  ;;  %v3782_v51 = vld [vmem:[%s7606_s5 + $0x130] sm:$0xff] }
 0x85d   :  { %v2250_v2 = vadd.f32 1.0, %v5770_v1  ;;  %v5772_v5 = vpop.eup %5771  ;;  %v3845_v1 = vld [vmem:[%s7608_s7 + $0x120] sm:$0xff] }
 0x85e   :  { %v2252_v43 = vmul.f32 0.5, %v2249_v11  ;;  %v5774_v15 = vpop.eup %5773  ;;  %v3783_v11 = vld [vmem:[%s7606_s5 + $0x138] sm:$0xff] }
 0x85f   :  { %v2253_v24 = vmul.f32 0.5, %v2250_v2  ;;  %v2251_v56 = vadd.f32 1.0, %v5774_v15  ;;  %v5376_v2 = vpack.c.bf16 %v3783_v11, %v3782_v51  ;;  %v3848_v15 = vld [vmem:[%s7608_s7 + $0x138] sm:$0xff] }
 0x860   :  { %v2257_v20 = vmul.f32 %v5772_v5, %v2252_v43  ;;  %v3846_v43 = vld [vmem:[%s7608_s7 + $0x128] sm:$0xff] }
 0x861   :  { %v2256_v39 = vmul.f32 %v2253_v24, %v6809_v52  ;;  %v2254_v54 = vmul.f32 0.5, %v2251_v56  ;;  %v5515_v5 = vpack.c.bf16 %v3846_v43, %v3845_v1  ;;  %v3784_v24 = vld [vmem:[%s7606_s5 + $0x140] sm:$0xff]  ;;  %v3786_v56 = vld [vmem:[%s7606_s5 + $0x150] sm:$0xff]  ;;  %v3803_v43 = vld [vmem:[%s7606_s5 + $0x1d8] sm:$0xff] }
 0x862   :  { %v3802_v1 = vld [vmem:[%s7606_s5 + $0x1d0] sm:$0xff] }
 0x863   :  { %v2258_v8 = vadd.f32 %v2257_v20, %v2256_v39  ;;  %v3785_v20 = vld [vmem:[%s7606_s5 + $0x148] sm:$0xff] }
 0x864   :  { %v5380_v39 = vpack.c.bf16 %v3785_v20, %v3784_v24  ;;  %v5416_v24 = vpack.c.bf16 %v3803_v43, %v3802_v1 }
 0x865   :  { %5775 = vtanh.f32 %v2258_v8  ;;  %v3847_v8 = vld [vmem:[%s7608_s7 + $0x130] sm:$0xff] }
 0x86f   :  { %v5776_v46 = vpop.eup %5775 }
 0x870   :  { %v2260_v61 = vmul.f32 %v5776_v46, %v2254_v54  ;;  %v3787_v54 = vld [vmem:[%s7606_s5 + $0x158] sm:$0xff]  ;;  %v5518_v46 = vpack.c.bf16 %v3848_v15, %v3847_v8  ;;  %v3805_v8 = vld [vmem:[%s7606_s5 + $0x1e8] sm:$0xff]  ;;  %v7318_v15 = vpop.f32.mrb[32].mxu1 }
 0x872   :  { %v2261_v34 = vmax.f32 %v2260_v61, 0.0  ;;  %v5384_v61 = vpack.c.bf16 %v3787_v54, %v3786_v56  ;;  %v3865_v56 = vld [vmem:[%s7608_s7 + $0x1c0] sm:$0xff]  ;;  %v3866_v54 = vld [vmem:[%s7608_s7 + $0x1c8] sm:$0xff] }
 0x874   :  { %v7020_v52 = vsel %vm2262_vm8, %v1054_v59, %v2261_v34  ;;  %v7029_v49 = vsel %vm2262_vm8, %v2261_v34, %v1054_v59  ;;  %v3789_v59 = vld [vmem:[%s7606_s5 + $0x168] sm:$0xff]  ;;  %v5521_v34 = vpack.c.bf16 %v3850_v30, %v3849_v48  ;;  %v5545_v48 = vpack.c.bf16 %v3866_v54, %v3865_v56  ;;  %v3806_v30 = vld [vmem:[%s7606_s5 + $0x1f0] sm:$0xff] }
 0x875   :  { %4155 = vmatmul.mubr.f32.vlgmr.msra.gmra.mrb[32].mxu0 %v7020_v52  ;;  %4378 = vmatmul.mubr.f32.gmra.mrb[34].mxu1 %v7020_v52 }
 0x876   :  { %5335 = vmatpush3.bf16.msra.mxu0 %v6938_v27  ;;  %4157 = vmatprep.mubr.f32.mxu0 %v6815_v7  ;;  %v5344_v27 = vpack.c.bf16 %v2294_v9, %v2293_v6  ;;  %v3791_v6 = vld [vmem:[%s7606_s5 + $0x178] sm:$0xff]  ;;  %v5524_v9 = vpack.c.bf16 %v3852_v36, %v3851_v62  ;;  %v3808_v36 = vld [vmem:[%s7606_s5 + $0x200] sm:$0xff] }
 0x877   :  { %5337 = vmatprep.subr.bf16.mxu0 %v5336_v58  ;;  %4380 = vmatprep.mubr.msk.f32.mxu1 %vm5856_vm9, %v7703_v47 }
 0x879   :  { %4158 = vmatmul.mubr.f32.gmra.mrb[34].mxu0 %v6757_v0  ;;  %4381 = vmatmul.mubr.f32.gmra.mrb[36].mxu1 %v6815_v7 }
 0x87a   :  { %5339 = vmatpush3.bf16.msra.mxu0 %v5336_v58  ;;  %4160 = vmatprep.mubr.f32.mxu0 %v6696_v13  ;;  %v5388_v58 = vpack.c.bf16 %v3789_v59, %v3788_v21  ;;  %v3807_v21 = vld [vmem:[%s7606_s5 + $0x1f8] sm:$0xff]  ;;  %v3867_v59 = vld [vmem:[%s7608_s7 + $0x1d0] sm:$0xff] }
 0x87b   :  { %5341 = vmatprep.subr.bf16.mxu0 %v5340_v3  ;;  %4383 = vmatprep.mubr.msk.f32.mxu1 %vm5856_vm9, %v7703_v47 }
 0x87d   :  { %4161 = vmatmul.mubr.f32.gmra.mrb[36].mxu0 %v6699_v26  ;;  %4384 = vmatmul.mubr.f32.gmra.mrb[38].mxu1 %v6757_v0 }
 0x87e   :  { %5343 = vmatpush3.bf16.msra.mxu0 %v5340_v3  ;;  %4163 = vmatprep.mubr.f32.mxu0 %v6760_v31  ;;  %v3790_v3 = vld [vmem:[%s7606_s5 + $0x170] sm:$0xff] }
 0x87f   :  { %5345 = vmatprep.subr.bf16.mxu0 %v5344_v27  ;;  %4386 = vmatprep.mubr.msk.f32.mxu1 %vm5856_vm9, %v7703_v47 }
 0x881   :  { %4164 = vmatmul.mubr.f32.gmra.mrb[38].mxu0 %v6818_v17  ;;  %4387 = vmatmul.mubr.f32.gmra.mrb[40].mxu1 %v6696_v13 }
 0x882   :  { %5347 = vmatpush3.bf16.msra.mxu0 %v5344_v27  ;;  %4389 = vmatprep.mubr.msk.f32.mxu1 %vm5856_vm9, %v7703_v47  ;;  %v5392_v27 = vpack.c.bf16 %v3791_v6, %v3790_v3  ;;  %v3809_v3 = vld [vmem:[%s7606_s5 + $0x208] sm:$0xff]  ;;  %v3869_v6 = vld [vmem:[%s7608_s7 + $0x1e0] sm:$0xff] }
 0x883   :  { %5349 = vmatprep.subr.bf16.mxu0 %v5348_v19  ;;  %4198 = vmatprep.mubr.f32.mxu0 %v7703_v47 }
 0x885   :  { %4390 = vmatmul.mubr.f32.gmra.mrb[42].mxu1 %v6699_v26 }
 0x886   :  { %5351 = vmatpush3.bf16.msra.mxu0 %v5348_v19  ;;  %4392 = vmatprep.mubr.msk.f32.mxu1 %vm5856_vm9, %v7703_v47  ;;  %v3792_v19 = vld [vmem:[%s7606_s5 + $0x180] sm:$0xff] }
 0x887   :  { %5353 = vmatprep.subr.bf16.mxu0 %v5352_v29 }
 0x889   :  { %4393 = vmatmul.mubr.f32.gmra.mrb[44].mxu1 %v6760_v31 }
 0x88a   :  { %5355 = vmatpush3.bf16.msra.mxu0 %v5352_v29  ;;  %4395 = vmatprep.mubr.msk.f32.mxu1 %vm5856_vm9, %v7703_v47  ;;  %v5396_v29 = vpack.c.bf16 %v3793_v22, %v3792_v19  ;;  %v3811_v19 = vld [vmem:[%s7606_s5 + $0x218] sm:$0xff]  ;;  %v3871_v22 = vld [vmem:[%s7608_s7 + $0x1f0] sm:$0xff] }
 0x88b   :  { %5357 = vmatprep.subr.bf16.mxu0 %v5356_v38 }
 0x88d   :  { %4396 = vmatmul.mubr.f32.gmra.mrb[46].mxu1 %v6818_v17 }
 0x88e   :  { %5359 = vmatpush3.bf16.msra.mxu0 %v5356_v38  ;;  %4398 = vmatprep.mubr.msk.f32.mxu1 %vm5856_vm9, %v7703_v47  ;;  %v3794_v38 = vld [vmem:[%s7606_s5 + $0x190] sm:$0xff] }
 0x88f   :  { %5361 = vmatprep.subr.bf16.mxu0 %v5360_v50 }
 0x891   :  { %4399 = vmatmul.mubr.f32.gmra.mrb[48].mxu1 %v7029_v49 }
 0x892   :  { %5363 = vmatpush3.bf16.msra.mxu0 %v5360_v50  ;;  %4433 = vmatprep.mubr.msk.f32.mxu1 %vm5856_vm9, %v7703_v47  ;;  %v5400_v50 = vpack.c.bf16 %v3795_v42, %v3794_v38  ;;  %v3813_v38 = vld [vmem:[%s7606_s5 + $0x228] sm:$0xff] }
 0x893   :  { %5365 = vmatprep.subr.bf16.mxu0 %v5364_v60  ;;  %v5436_v42 = vpack.c.bf16 %v3813_v38, %v3812_v35  ;;  %v3561_v35 = vld [vmem:[%s7610_s9 + $0x78] sm:$0xff] }
 0x895   :  { %4199 = vmatmul.mubr.f32.vlgmr.msra.gmra.mrb[32].mxu0 %v7703_v47  ;;  %4434 = vmatmul.mubr.f32.vlgmr.msra.gmra.mrb[50].mxu1 %v7703_v47 }
 0x896   :  { %4201 = vmatprep.mubr.f32.mxu0 %v7020_v52  ;;  %5367 = vmatpush3.bf16.msra.mxu0 %v5364_v60  ;;  %v3857_v60 = vld [vmem:[%s7608_s7 + $0x180] sm:$0xff] }
 0x897   :  { %5510 = vmatpush3.bf16.msra.mxu1 %v5509_v18  ;;  %5369 = vmatprep.subr.bf16.mxu0 %v5368_v23  ;;  %v5533_v10 = vpack.c.bf16 %v3858_v63, %v3857_v60  ;;  %v3799_v18 = vld [vmem:[%s7606_s5 + $0x1b8] sm:$0xff]  ;;  %v3817_v60 = vld [vmem:[%s7606_s5 + $0x248] sm:$0xff] }
 0x898   :  { %4436 = vmatprep.mubr.msk.f32.mxu1 %vm5856_vm9, %v7703_v47  ;;  %5511 = vmatprep.subr.bf16.mxu1 %v5855_v55  ;;  %v5408_v33 = vpack.c.bf16 %v3799_v18, %v3798_v14  ;;  %v5444_v63 = vpack.c.bf16 %v3817_v60, %v3816_v57  ;;  %v3820_v14 = vld [vmem:[%s7606_s5 + $0x260] sm:$0xff]  ;;  %v3821_v18 = vld [vmem:[%s7606_s5 + $0x268] sm:$0xff] }
 0x899   :  { %4202 = vmatmul.mubr.f32.gmra.mrb[34].mxu0 %v6815_v7  ;;  %4437 = vmatmul.mubr.f32.gmra.mrb[52].mxu1 %v7703_v47 }
 0x89a   :  { %4204 = vmatprep.mubr.f32.mxu0 %v6757_v0  ;;  %5371 = vmatpush3.bf16.msra.mxu0 %v5368_v23  ;;  %v3859_v23 = vld [vmem:[%s7608_s7 + $0x190] sm:$0xff] }
 0x89b   :  { %5373 = vmatprep.subr.bf16.mxu0 %v5372_v40  ;;  %4439 = vmatprep.mubr.msk.f32.mxu1 %vm5856_vm9, %v7703_v47  ;;  %v5536_v37 = vpack.c.bf16 %v3860_v28, %v3859_v23  ;;  %v5452_v23 = vpack.c.bf16 %v3821_v18, %v3820_v14  ;;  %v3823_v28 = vld [vmem:[%s7606_s5 + $0x278] sm:$0xff] }
 0x89c   :  { %5513 = vmatpush3.bf16.msra.mxu1 %v5512_v44  ;;  %v3862_v44 = vld [vmem:[%s7608_s7 + $0x1a8] sm:$0xff] }
 0x89d   :  { %4205 = vmatmul.mubr.f32.gmra.mrb[36].mxu0 %v6696_v13  ;;  %4440 = vmatmul.mubr.f32.gmra.mrb[54].mxu1 %v7020_v52 }
 0x89e   :  { %4207 = vmatprep.mubr.f32.mxu0 %v6699_v26  ;;  %5375 = vmatpush3.bf16.msra.mxu0 %v5372_v40  ;;  %v3801_v40 = vld [vmem:[%s7606_s5 + $0x1c8] sm:$0xff] }
 0x89f   :  { %5514 = vmatprep.subr.bf16.mxu1 %v5855_v55  ;;  %5377 = vmatprep.subr.bf16.mxu0 %v5376_v2  ;;  %v5412_v51 = vpack.c.bf16 %v3801_v40, %v3800_v41  ;;  %v3551_v41 = vld [vmem:[%s7610_s9 + $0x28] sm:$0xff] }
 0x8a0   :  { %4442 = vmatprep.mubr.msk.f32.mxu1 %vm5856_vm9, %v7703_v47  ;;  %5516 = vmatpush3.bf16.msra.mxu1 %v5515_v5  ;;  %v3864_v5 = vld [vmem:[%s7608_s7 + $0x1b8] sm:$0xff] }
 0x8a1   :  { %4208 = vmatmul.mubr.f32.gmra.mrb[38].mxu0 %v6760_v31  ;;  %4443 = vmatmul.mubr.f32.gmra.mrb[56].mxu1 %v6815_v7 }
 0x8a2   :  { %5379 = vmatpush3.bf16.msra.mxu0 %v5376_v2  ;;  %4242 = vmatprep.mubr.f32.mxu0 %v7020_v52  ;;  %v3863_v2 = vld [vmem:[%s7608_s7 + $0x1b0] sm:$0xff] }
 0x8a3   :  { %5381 = vmatprep.subr.bf16.mxu0 %v5380_v39  ;;  %4445 = vmatprep.mubr.msk.f32.mxu1 %vm5856_vm9, %v7703_v47  ;;  %v5542_v20 = vpack.c.bf16 %v3864_v5, %v3863_v2  ;;  %v3562_v5 = vld [vmem:[%s7611_s10] sm:$0xff] }
 0x8a4   :  { %5517 = vmatprep.subr.bf16.mxu1 %v5855_v55 }
 0x8a5   :  { %4446 = vmatmul.mubr.f32.gmra.mrb[58].mxu1 %v6757_v0 }
 0x8a6   :  { %5383 = vmatpush3.bf16.msra.mxu0 %v5380_v39  ;;  %5519 = vmatpush3.bf16.msra.mxu1 %v5518_v46  ;;  %v3804_v39 = vld [vmem:[%s7606_s5 + $0x1e0] sm:$0xff]  ;;  %v4376_v46 = vpop.f32.mrb[33].mxu1 }
 0x8a7   :  { %5385 = vmatprep.subr.bf16.mxu0 %v5384_v61  ;;  %4448 = vmatprep.mubr.msk.f32.mxu1 %vm5856_vm9, %v7703_v47 }
 0x8a8   :  { %5520 = vmatprep.subr.bf16.mxu1 %v5855_v55 }
 0x8a9   :  { %4449 = vmatmul.mubr.f32.gmra.mrb[60].mxu1 %v6696_v13 }
 0x8aa   :  { %5387 = vmatpush3.bf16.msra.mxu0 %v5384_v61  ;;  %5522 = vmatpush3.bf16.msra.mxu1 %v5521_v34  ;;  %v5420_v61 = vpack.c.bf16 %v3805_v8, %v3804_v39  ;;  %v3868_v34 = vld [vmem:[%s7608_s7 + $0x1d8] sm:$0xff]  ;;  %v3555_v39 = vld [vmem:[%s7610_s9 + $0x48] sm:$0xff] }
 0x8ab   :  { %5389 = vmatprep.subr.bf16.mxu0 %v5388_v58  ;;  %4451 = vmatprep.mubr.msk.f32.mxu1 %vm5856_vm9, %v7703_v47  ;;  %v5548_v62 = vpack.c.bf16 %v3868_v34, %v3867_v59  ;;  %v3557_v59 = vld [vmem:[%s7610_s9 + $0x58] sm:$0xff] }
 0x8ac   :  { %5523 = vmatprep.subr.bf16.mxu1 %v5855_v55 }
 0x8ad   :  { %4452 = vmatmul.mubr.f32.gmra.mrb[62].mxu1 %v6699_v26 }
 0x8ae   :  { %5391 = vmatpush3.bf16.msra.mxu0 %v5388_v58  ;;  %5525 = vmatpush3.bf16.msra.mxu1 %v5524_v9  ;;  %v5424_v58 = vpack.c.bf16 %v3807_v21, %v3806_v30  ;;  %v3870_v9 = vld [vmem:[%s7608_s7 + $0x1e8] sm:$0xff]  ;;  %v3556_v21 = vld [vmem:[%s7610_s9 + $0x50] sm:$0xff] }
 0x8af   :  { %5393 = vmatprep.subr.bf16.mxu0 %v5392_v27  ;;  %4454 = vmatprep.mubr.msk.f32.mxu1 %vm5856_vm9, %v7703_v47  ;;  %v5551_v12 = vpack.c.bf16 %v3870_v9, %v3869_v6  ;;  %v3558_v9 = vld [vmem:[%s7610_s9 + $0x60] sm:$0xff] }
 0x8b0   :  { %5526 = vmatprep.subr.bf16.mxu1 %v5855_v55 }
 0x8b1   :  { %4455 = vmatmul.mubr.f32.gmra.mrb[64].mxu1 %v6760_v31 }
 0x8b2   :  { %5395 = vmatpush3.bf16.msra.mxu0 %v5392_v27  ;;  %5528 = vmatpush3.bf16.msra.mxu1 %v5527_v25  ;;  %v5428_v27 = vpack.c.bf16 %v3809_v3, %v3808_v36  ;;  %v3872_v25 = vld [vmem:[%s7608_s7 + $0x1f8] sm:$0xff]  ;;  %v3566_v36 = vld [vmem:[%s7611_s10 + $0x20] sm:$0xff]  ;;  %v3567_v3 = vld [vmem:[%s7611_s10 + $0x28] sm:$0xff] }
 0x8b3   :  { %5397 = vmatprep.subr.bf16.mxu0 %v5396_v29  ;;  %4457 = vmatprep.mubr.msk.f32.mxu1 %vm5856_vm9, %v7703_v47  ;;  %v5554_v32 = vpack.c.bf16 %v3872_v25, %v3871_v22  ;;  %v5563_v6 = vpack.c.bf16 %v3567_v3, %v3566_v36  ;;  %v3568_v22 = vld [vmem:[%s7611_s10 + $0x30] sm:$0xff]  ;;  %v3569_v25 = vld [vmem:[%s7611_s10 + $0x38] sm:$0xff] }
 0x8b4   :  { %5529 = vmatprep.subr.bf16.mxu1 %v5855_v55 }
 0x8b5   :  { %4243 = vmatmul.mubr.f32.vlgmr.msra.gmra.mrb[32].mxu0 %v6815_v7  ;;  %4458 = vmatmul.mubr.f32.gmra.mrb[66].mxu1 %v6818_v17 }
 0x8b6   :  { %4245 = vmatprep.mubr.f32.mxu0 %v6757_v0  ;;  %5399 = vmatpush3.bf16.msra.mxu0 %v5396_v29  ;;  %v5432_v29 = vpack.c.bf16 %v3811_v19, %v3810_v16 }
 0x8b7   :  { %5531 = vmatpush3.bf16.msra.mxu1 %v5530_v45  ;;  %5401 = vmatprep.subr.bf16.mxu0 %v5400_v50  ;;  %v3814_v45 = vld [vmem:[%s7606_s5 + $0x230] sm:$0xff] }
 0x8b8   :  { %4492 = vmatprep.mubr.msk.f32.mxu1 %vm5856_vm9, %v7703_v47  ;;  %5532 = vmatprep.subr.bf16.mxu1 %v5855_v55 }
 0x8b9   :  { %4246 = vmatmul.mubr.f32.gmra.mrb[34].mxu0 %v6696_v13 }
 0x8ba   :  { %4248 = vmatprep.mubr.f32.mxu0 %v6699_v26  ;;  %5403 = vmatpush3.bf16.msra.mxu0 %v5400_v50  ;;  %v3815_v50 = vld [vmem:[%s7606_s5 + $0x238] sm:$0xff] }
 0x8bb   :  { %4493 = vmatmul.mubr.f32.vlgmr.msra.gmra.mrb[68].mxu1 %v7020_v52  ;;  %5405 = vmatprep.subr.bf16.mxu0 %v5404_v4  ;;  %v3861_v52 = vld [vmem:[%s7608_s7 + $0x1a0] sm:$0xff]  ;;  %v5440_v53 = vpack.c.bf16 %v3815_v50, %v3814_v45 }
 0x8bc   :  { %5534 = vmatpush3.bf16.msra.mxu1 %v5533_v10  ;;  %4495 = vmatprep.mubr.msk.f32.mxu1 %vm5856_vm9, %v7703_v47  ;;  %v5539_v11 = vpack.c.bf16 %v3862_v44, %v3861_v52  ;;  %v3819_v10 = vld [vmem:[%s7606_s5 + $0x258] sm:$0xff] }
 0x8bd   :  { %4249 = vmatmul.mubr.f32.gmra.mrb[36].mxu0 %v6760_v31  ;;  %5535 = vmatprep.subr.bf16.mxu1 %v5855_v55 }
 0x8be   :  { %4251 = vmatprep.mubr.f32.mxu0 %v6818_v17  ;;  %5407 = vmatpush3.bf16.msra.mxu0 %v5404_v4  ;;  %v3818_v4 = vld [vmem:[%s7606_s5 + $0x250] sm:$0xff] }
 0x8bf   :  { %4496 = vmatmul.mubr.f32.gmra.mrb[70].mxu1 %v6815_v7  ;;  %5409 = vmatprep.subr.bf16.mxu0 %v5408_v33 }
 0x8c0   :  { %4498 = vmatprep.mubr.msk.f32.mxu1 %vm5856_vm9, %v7703_v47  ;;  %5537 = vmatpush3.bf16.msra.mxu1 %v5536_v37  ;;  %v3550_v37 = vld [vmem:[%s7610_s9 + $0x20] sm:$0xff] }
 0x8c1   :  { %4252 = vmatmul.mubr.f32.gmra.mrb[38].mxu0 %v7029_v49  ;;  %5538 = vmatprep.subr.bf16.mxu1 %v5855_v55  ;;  %v5575_v52 = vpack.c.bf16 %v3551_v41, %v3550_v37 }
 0x8c2   :  { %5411 = vmatpush3.bf16.msra.mxu0 %v5408_v33  ;;  %4286 = vmatprep.mubr.f32.mxu0 %v6815_v7 }
 0x8c3   :  { %4499 = vmatmul.mubr.f32.gmra.mrb[72].mxu1 %v6757_v0  ;;  %5413 = vmatprep.subr.bf16.mxu0 %v5412_v51 }
 0x8c4   :  { %4501 = vmatprep.mubr.msk.f32.mxu1 %vm5856_vm9, %v7703_v47  ;;  %5540 = vmatpush3.bf16.msra.mxu1 %v5539_v11  ;;  %v3553_v11 = vld [vmem:[%s7610_s9 + $0x38] sm:$0xff] }
 0x8c5   :  { %5541 = vmatprep.subr.bf16.mxu1 %v5855_v55 }
 0x8c6   :  { %5415 = vmatpush3.bf16.msra.mxu0 %v5412_v51  ;;  %v3552_v51 = vld [vmem:[%s7610_s9 + $0x30] sm:$0xff] }
 0x8c7   :  { %4502 = vmatmul.mubr.f32.gmra.mrb[74].mxu1 %v6696_v13  ;;  %5417 = vmatprep.subr.bf16.mxu0 %v5416_v24  ;;  %v5578_v43 = vpack.c.bf16 %v3553_v11, %v3552_v51 }
 0x8c8   :  { %4504 = vmatprep.mubr.msk.f32.mxu1 %vm5856_vm9, %v7703_v47  ;;  %5543 = vmatpush3.bf16.msra.mxu1 %v5542_v20  ;;  %v3554_v20 = vld [vmem:[%s7610_s9 + $0x40] sm:$0xff] }
 0x8c9   :  { %5544 = vmatprep.subr.bf16.mxu1 %v5855_v55  ;;  %v5581_v54 = vpack.c.bf16 %v3555_v39, %v3554_v20 }
 0x8ca   :  { %5419 = vmatpush3.bf16.msra.mxu0 %v5416_v24  ;;  %v3563_v24 = vld [vmem:[%s7611_s10 + $0x8] sm:$0xff] }
 0x8cb   :  { %4505 = vmatmul.mubr.f32.gmra.mrb[76].mxu1 %v6699_v26  ;;  %5421 = vmatprep.subr.bf16.mxu0 %v5420_v61  ;;  %v5557_v8 = vpack.c.bf16 %v3563_v24, %v3562_v5 }
 0x8cc   :  { %4507 = vmatprep.mubr.msk.f32.mxu1 %vm5856_vm9, %v7703_v47  ;;  %5546 = vmatpush3.bf16.msra.mxu1 %v5545_v48  ;;  %v3565_v48 = vld [vmem:[%s7611_s10 + $0x18] sm:$0xff] }
 0x8cd   :  { %5547 = vmatprep.subr.bf16.mxu1 %v5855_v55 }
 0x8ce   :  { %5423 = vmatpush3.bf16.msra.mxu0 %v5420_v61  ;;  %v3564_v61 = vld [vmem:[%s7611_s10 + $0x10] sm:$0xff] }
 0x8cf   :  { %4508 = vmatmul.mubr.f32.gmra.mrb[78].mxu1 %v6760_v31  ;;  %5425 = vmatprep.subr.bf16.mxu0 %v5424_v58  ;;  %v5560_v30 = vpack.c.bf16 %v3565_v48, %v3564_v61 }
 0x8d0   :  { %4510 = vmatprep.mubr.msk.f32.mxu1 %vm5856_vm9, %v7703_v47  ;;  %5549 = vmatpush3.bf16.msra.mxu1 %v5548_v62 }
 0x8d1   :  { %5550 = vmatprep.subr.bf16.mxu1 %v5855_v55 }
 0x8d2   :  { %5427 = vmatpush3.bf16.msra.mxu0 %v5424_v58  ;;  %v5584_v58 = vpack.c.bf16 %v3557_v59, %v3556_v21 }
 0x8d3   :  { %4511 = vmatmul.mubr.f32.gmra.mrb[80].mxu1 %v6818_v17  ;;  %5429 = vmatprep.subr.bf16.mxu0 %v5428_v27 }
 0x8d4   :  { %4513 = vmatprep.mubr.msk.f32.mxu1 %vm5856_vm9, %v7703_v47  ;;  %5552 = vmatpush3.bf16.msra.mxu1 %v5551_v12 }
 0x8d5   :  { %4287 = vmatmul.mubr.f32.vlgmr.msra.gmra.mrb[32].mxu0 %v6757_v0  ;;  %5553 = vmatprep.subr.bf16.mxu1 %v5855_v55 }
 0x8d6   :  { %4289 = vmatprep.mubr.f32.mxu0 %v6696_v13  ;;  %5431 = vmatpush3.bf16.msra.mxu0 %v5428_v27  ;;  %v3559_v27 = vld [vmem:[%s7610_s9 + $0x68] sm:$0xff] }
 0x8d7   :  { %4514 = vmatmul.mubr.f32.gmra.mrb[82].mxu1 %v7029_v49  ;;  %5433 = vmatprep.subr.bf16.mxu0 %v5432_v29  ;;  %v5587_v16 = vpack.c.bf16 %v3559_v27, %v3558_v9 }
 0x8d8   :  { %4516 = vmatprep.mubr.msk.f32.mxu1 %vm5856_vm9, %v7703_v47  ;;  %5555 = vmatpush3.bf16.msra.mxu1 %v5554_v32  ;;  %v3560_v32 = vld [vmem:[%s7610_s9 + $0x70] sm:$0xff] }
 0x8d9   :  { %4290 = vmatmul.mubr.f32.gmra.mrb[34].mxu0 %v6699_v26  ;;  %5568 = vmatprep.subr.bf16.mxu1 %v5855_v55 }
 0x8da   :  { %4292 = vmatprep.mubr.f32.mxu0 %v6760_v31  ;;  %5435 = vmatpush3.bf16.msra.mxu0 %v5432_v29  ;;  %v5566_v29 = vpack.c.bf16 %v3569_v25, %v3568_v22 }
 0x8db   :  { %4517 = vmatmul.mubr.f32.gmra.mrb[84].mxu1 %v7703_v47  ;;  %5437 = vmatprep.subr.bf16.mxu0 %v5436_v42 }
 0x8dc   :  { %4551 = vmatprep.mubr.msk.f32.mxu1 %vm5856_vm9, %v7703_v47 }
 0x8dd   :  { %4293 = vmatmul.mubr.f32.gmra.mrb[36].mxu0 %v6818_v17 }
 0x8de   :  { %4295 = vmatprep.mubr.f32.mxu0 %v7029_v49  ;;  %5439 = vmatpush3.bf16.msra.mxu0 %v5436_v42  ;;  %v5590_v42 = vpack.c.bf16 %v3561_v35, %v3560_v32 }
 0x8df   :  { %4552 = vmatmul.mubr.f32.vlgmr.msra.gmra.mrb[86].mxu1 %v6815_v7  ;;  %5441 = vmatprep.subr.bf16.mxu0 %v5440_v53  ;;  %v5448_v7 = vpack.c.bf16 %v3819_v10, %v3818_v4 }
 0x8e0   :  { %4554 = vmatprep.mubr.msk.f32.mxu1 %vm5856_vm9, %v7703_v47 }
 0x8e1   :  { %4296 = vmatmul.mubr.f32.gmra.mrb[38].mxu0 %v7703_v47 }
 0x8e2   :  { %5443 = vmatpush3.bf16.msra.mxu0 %v5440_v53  ;;  %4330 = vmatprep.mubr.f32.mxu0 %v6757_v0 }
 0x8e3   :  { %4555 = vmatmul.mubr.f32.gmra.mrb[88].mxu1 %v6757_v0  ;;  %5445 = vmatprep.subr.bf16.mxu0 %v5444_v63  ;;  %v3822_v0 = vld [vmem:[%s7606_s5 + $0x270] sm:$0xff]  ;;  %s5857_s5 = smov [#allocation9]  }
 0x8e4   :  { %4557 = vmatprep.mubr.msk.f32.mxu1 %vm5856_vm9, %v7703_v47  ;;  %v5456_v33 = vpack.c.bf16 %v3823_v28, %v3822_v0  ;;  %s3729_s3 = sshll.u32 %s5857_s5, 4  ;;  %s3730_s3 = int_to_ptr.vmem [resolvable:$true] %s3729_s3 }
 0x8e5   :  { %s5821_s28 = scalar_lea.vmem %s3730_s3, 128  ;;  %p5826_p3 = scmp.lt.s32.totalorder %s3730_s3, %s3730_s3 }
 0x8e6   :  { %5447 = vmatpush3.bf16.msra.mxu0 %v5444_v63  ;;  %p5822_p2 = scmp.ne.s32.totalorder %s3730_s3, %s5821_s28  ;;  %p5827_p4 = scmp.lt.s32.totalorder %s5821_s28, %s5821_s28 }
 0x8e7   :  { %4558 = vmatmul.mubr.f32.gmra.mrb[90].mxu1 %v6696_v13  ;;  %5449 = vmatprep.subr.bf16.mxu0 %v5448_v7 }
 0x8e8   :  { %4560 = vmatprep.mubr.msk.f32.mxu1 %vm5856_vm9, %v7703_v47  ;;  %p5828_p5 = por %p5827_p4, %p5826_p3 }
 0x8ea   :  { %5451 = vmatpush3.bf16.msra.mxu0 %v5448_v7  ;;  %p5829_p6 = pnand %p5828_p5, %p5822_p2 }
 0x8eb   :  { %4561 = vmatmul.mubr.f32.gmra.mrb[92].mxu1 %v6699_v26  ;;  %5453 = vmatprep.subr.bf16.mxu0 %v5452_v23 }
 0x8ec   :  { %4563 = vmatprep.mubr.msk.f32.mxu1 %vm5856_vm9, %v7703_v47 }
 0x8ee   :  { %5455 = vmatpush3.bf16.msra.mxu0 %v5452_v23 }
 0x8ef   :  { %4564 = vmatmul.mubr.f32.gmra.mrb[94].mxu1 %v6760_v31  ;;  %5457 = vmatprep.subr.bf16.mxu0 %v5456_v33 }
 0x8f0   :  { %4566 = vmatprep.mubr.msk.f32.mxu1 %vm5856_vm9, %v7703_v47 }
 0x8f2   :  { %5459 = vmatpush3.bf16.msra.mxu0 %v5456_v33 }
 0x8f3   :  { %4567 = vmatmul.mubr.f32.gmra.mrb[96].mxu1 %v6818_v17  ;;  %5556 = vmatprep.subr.bf16.mxu0 %v5855_v55 }
 0x8f4   :  { %4569 = vmatprep.mubr.msk.f32.mxu1 %vm5856_vm9, %v7703_v47 }
 0x8f5   :  { %4331 = vmatmul.mubr.f32.vlgmr.msra.gmra.mrb[32].mxu0 %v6696_v13  ;;  %v3546_v13 = vld [vmem:[%s7610_s9] sm:$0xff] }
 0x8f6   :  { %4333 = vmatprep.mubr.f32.mxu0 %v6699_v26  ;;  %v3547_v26 = vld [vmem:[%s7610_s9 + $0x8] sm:$0xff]  ;;  %5558 = vmatpush3.bf16.msra.mxu0 %v5557_v8 }
 0x8f7   :  { %4570 = vmatmul.mubr.f32.gmra.mrb[98].mxu1 %v7029_v49  ;;  %5559 = vmatprep.subr.bf16.mxu0 %v5855_v55 }
 0x8f8   :  { %4572 = vmatprep.mubr.msk.f32.mxu1 %vm5856_vm9, %v7703_v47 }
 0x8f9   :  { %4334 = vmatmul.mubr.f32.gmra.mrb[34].mxu0 %v6760_v31  ;;  %v5569_v31 = vpack.c.bf16 %v3547_v26, %v3546_v13 }
 0x8fa   :  { %4336 = vmatprep.mubr.f32.mxu0 %v6818_v17  ;;  %v3548_v17 = vld [vmem:[%s7610_s9 + $0x10] sm:$0xff]  ;;  %5561 = vmatpush3.bf16.msra.mxu0 %v5560_v30 }
 0x8fb   :  { %4573 = vmatmul.mubr.f32.gmra.mrb[100].mxu1 %v7703_v47  ;;  %5562 = vmatprep.subr.bf16.mxu0 %v5855_v55 }
 0x8fc   :  { %4575 = vmatprep.mubr.msk.f32.mxu1 %vm5856_vm9, %v7703_v47  ;;  %5570 = vmatpush3.bf16.msra.mxu1 %v5569_v31 }
 0x8fd   :  { %4337 = vmatmul.mubr.f32.gmra.mrb[36].mxu0 %v7029_v49  ;;  %5571 = vmatprep.subr.bf16.mxu1 %v5855_v55 }
 0x8fe   :  { %4339 = vmatprep.mubr.f32.mxu0 %v7703_v47  ;;  %5564 = vmatpush3.bf16.msra.mxu0 %v5563_v6 }
 0x8ff   :  { %4576 = vmatmul.mubr.f32.gmra.mrb[102].mxu1 %v7703_v47  ;;  %5565 = vmatprep.subr.bf16.mxu0 %v5855_v55 }
 0x900   :  { %4629 = vmatprep.mubr.msk.f32.mxu1 %vm5856_vm9, %v7703_v47 }
 0x901   :  { %4340 = vmatmul.mubr.f32.gmra.mrb[38].mxu0 %v7703_v47 }
 0x902   :  { %4594 = vmatprep.mubr.msk.f32.mxu0 %vm5856_vm9, %v7703_v47  ;;  %v3549_v47 = vld [vmem:[%s7610_s9 + $0x18] sm:$0xff]  ;;  %5567 = vmatpush3.bf16.msra.mxu0 %v5566_v29 }
 0x903   :  { %v5572_v49 = vpack.c.bf16 %v3549_v47, %v3548_v17 }
 0x905   :  { %5573 = vmatpush3.bf16.msra.mxu1 %v5572_v49 }
 0x906   :  { %5574 = vmatprep.subr.bf16.mxu1 %v5855_v55 }
 0x909   :  { %5576 = vmatpush3.bf16.msra.mxu1 %v5575_v52 }
 0x90a   :  { %5577 = vmatprep.subr.bf16.mxu1 %v5855_v55 }
 0x90d   :  { %5579 = vmatpush3.bf16.msra.mxu1 %v5578_v43 }
 0x90e   :  { %5580 = vmatprep.subr.bf16.mxu1 %v5855_v55 }
 0x911   :  { %5582 = vmatpush3.bf16.msra.mxu1 %v5581_v54 }
 0x912   :  { %5583 = vmatprep.subr.bf16.mxu1 %v5855_v55 }
 0x915   :  { %5585 = vmatpush3.bf16.msra.mxu1 %v5584_v58 }
 0x916   :  { %5586 = vmatprep.subr.bf16.mxu1 %v5855_v55 }
 0x919   :  { %5588 = vmatpush3.bf16.msra.mxu1 %v5587_v16 }
 0x91a   :  { %5589 = vmatprep.subr.bf16.mxu1 %v5855_v55 }
 0x91d   :  { %5591 = vmatpush3.bf16.msra.mxu1 %v5590_v42 }
 0x948   :  { %v7487_v40 = vpop.f32.mrb[34].mxu1 }
 0x949   :  { %v4379_v44 = vpop.f32.mrb[35].mxu1 }
 0x94c   :  { %v3086_v1 = vpop.f32.mrb[36].mxu1 }
 0x94d   :  { %v4382_v2 = vpop.f32.mrb[37].mxu1 }
 0x950   :  { %v3091_v56 = vpop.f32.mrb[38].mxu1 }
 0x951   :  { %v4385_v46 = vpop.f32.mrb[39].mxu1 }
 0x954   :  { %v3096_v34 = vpop.f32.mrb[40].mxu1 }
 0x955   :  { %v4388_v62 = vpop.f32.mrb[41].mxu1 }
 0x958   :  { %v3101_v12 = vpop.f32.mrb[42].mxu1 }
 0x959   :  { %v4391_v19 = vpop.f32.mrb[43].mxu1 }
 0x95c   :  { %v3106_v38 = vpop.f32.mrb[44].mxu1 }
 0x95d   :  { %v4394_v45 = vpop.f32.mrb[45].mxu1 }
 0x960   :  { %v3111_v50 = vpop.f32.mrb[46].mxu1 }
 0x961   :  { %v4397_v53 = vpop.f32.mrb[47].mxu1 }
 0x964   :  { %v3116_v57 = vpop.f32.mrb[48].mxu1 }
 0x965   :  { %v4400_v60 = vpop.f32.mrb[49].mxu1 }
 0x966   :  { %v7558_v60 = vld [vmem:[%s7609_s8] ss:$0 sm:$0xff] }
 0x968   :  { %v3186_v63 = vpop.f32.mrb[50].mxu1 }
 0x969   :  { %v3187_v55 = vadd.f32 %v3186_v63, %v7318_v15  ;;  %v4435_v4 = vpop.f32.mrb[51].mxu1 }
 0x96c   :  { %v3191_v10 = vpop.f32.mrb[52].mxu1 }
 0x96d   :  { %v3192_v7 = vadd.f32 %v3191_v10, %v7487_v40  ;;  %v4438_v14 = vpop.f32.mrb[53].mxu1 }
 0x970   :  { %v3196_v18 = vpop.f32.mrb[54].mxu1 }
 0x971   :  { %v3197_v23 = vadd.f32 %v3196_v18, %v3086_v1  ;;  %v4441_v0 = vpop.f32.mrb[55].mxu1 }
 0x974   :  { %v3201_v28 = vpop.f32.mrb[56].mxu1 }
 0x975   :  { %v3202_v33 = vadd.f32 %v3201_v28, %v3091_v56  ;;  %v4444_v13 = vpop.f32.mrb[57].mxu1 }
 0x978   :  { %v3206_v26 = vpop.f32.mrb[58].mxu1 }
 0x979   :  { %v3207_v31 = vadd.f32 %v3206_v26, %v3096_v34  ;;  %v4447_v17 = vpop.f32.mrb[59].mxu1 }
 0x97c   :  { %v3211_v47 = vpop.f32.mrb[60].mxu1 }
 0x97d   :  { %v3212_v49 = vadd.f32 %v3211_v47, %v3101_v12  ;;  %v4450_v37 = vpop.f32.mrb[61].mxu1 }
 0x980   :  { %v3216_v41 = vpop.f32.mrb[62].mxu1 }
 0x981   :  { %v3217_v52 = vadd.f32 %v3216_v41, %v3106_v38  ;;  %v4453_v15 = vpop.f32.mrb[63].mxu1 }
 0x984   :  { %v3221_v44 = vpop.f32.mrb[64].mxu1 }
 0x985   :  { %v3222_v51 = vadd.f32 %v3221_v44, %v3111_v50  ;;  %v4456_v11 = vpop.f32.mrb[65].mxu1 }
 0x988   :  { %v3226_v40 = vpop.f32.mrb[66].mxu1 }
 0x989   :  { %v3227_v43 = vadd.f32 %v3226_v40, %v3116_v57  ;;  %v4459_v2 = vpop.f32.mrb[67].mxu1  ;;  %v3824_v40 = vld [vmem:[%s7607_s6] ss:$0 sm:$0xff] }
 0x98e   :  { %v3314_v1 = vpop.f32.mrb[68].mxu1 }
 0x98f   :  { %v3358_v5 = vadd.f32 %v3314_v1, %v3187_v55  ;;  %v4494_v24 = vpop.f32.mrb[69].mxu1 }
 0x992   :  { %v3319_v20 = vpop.f32.mrb[70].mxu1 }
 0x993   :  { %v3359_v39 = vadd.f32 %v3319_v20, %v3192_v7  ;;  %v4497_v8 = vpop.f32.mrb[71].mxu1 }
 0x996   :  { %v3324_v56 = vpop.f32.mrb[72].mxu1 }
 0x997   :  { %v3360_v54 = vadd.f32 %v3324_v56, %v3197_v23  ;;  %v4500_v46 = vpop.f32.mrb[73].mxu1 }
 0x99a   :  { %v3329_v61 = vpop.f32.mrb[74].mxu1 }
 0x99b   :  { %v3361_v48 = vadd.f32 %v3329_v61, %v3202_v33  ;;  %v4503_v30 = vpop.f32.mrb[75].mxu1 }
 0x99e   :  { %v3334_v21 = vpop.f32.mrb[76].mxu1 }
 0x99f   :  { %v3362_v59 = vadd.f32 %v3334_v21, %v3207_v31  ;;  %v4506_v34 = vpop.f32.mrb[77].mxu1 }
 0x9a2   :  { %v3339_v58 = vpop.f32.mrb[78].mxu1 }
 0x9a3   :  { %v3363_v62 = vadd.f32 %v3339_v58, %v3212_v49  ;;  %v4509_v36 = vpop.f32.mrb[79].mxu1 }
 0x9a6   :  { %v3344_v3 = vpop.f32.mrb[80].mxu1 }
 0x9a7   :  { %v3364_v6 = vadd.f32 %v3344_v3, %v3217_v52  ;;  %v4512_v9 = vpop.f32.mrb[81].mxu1 }
 0x9aa   :  { %v3349_v27 = vpop.f32.mrb[82].mxu1 }
 0x9ab   :  { %v3365_v12 = vadd.f32 %v3349_v27, %v3222_v51  ;;  %v4515_v16 = vpop.f32.mrb[83].mxu1 }
 0x9ae   :  { %v3354_v19 = vpop.f32.mrb[84].mxu1 }
 0x9af   :  { %v7553_v22 = vadd.f32 %v3354_v19, %v3227_v43  ;;  %v4518_v25 = vpop.f32.mrb[85].mxu1 }
 0x9b2   :  { %v3451_v29 = vpop.f32.mrb[86].mxu1 }
 0x9b3   :  { %v3495_v32 = vadd.f32 %v3451_v29, %v3358_v5  ;;  %v4553_v35 = vpop.f32.mrb[87].mxu1 }
 0x9b5   :  { %v3511_v10 = vadd.f32 %v7558_v60, %v3495_v32 }
 0x9b6   :  { %v3456_v38 = vpop.f32.mrb[88].mxu1 }
 0x9b7   :  { %v3496_v42 = vadd.f32 %v3456_v38, %v3359_v39  ;;  %v4556_v45 = vpop.f32.mrb[89].mxu1  ;;  %v3520_v23 = vmax.f32 %v3511_v10, 0.0 }
 0x9b9   :  { %v3512_v0 = vadd.f32 %v7558_v60, %v3496_v42  ;;  %v7564_v17 = vsel %vm2262_vm8, %v3520_v23, -inf }
 0x9ba   :  { %v3461_v50 = vpop.f32.mrb[90].mxu1 }
 0x9bb   :  { %v3497_v53 = vadd.f32 %v3461_v50, %v3360_v54  ;;  %v4559_v57 = vpop.f32.mrb[91].mxu1  ;;  %v3521_v49 = vmax.f32 %v3512_v0, 0.0 }
 0x9bd   :  { %v3513_v37 = vadd.f32 %v7558_v60, %v3497_v53  ;;  %v3530_v24 = vsel %vm2262_vm8, %v3521_v49, -inf }
 0x9be   :  { %v3466_v63 = vpop.f32.mrb[92].mxu1 }
 0x9bf   :  { %v3498_v55 = vadd.f32 %v3466_v63, %v3361_v48  ;;  %v4562_v4 = vpop.f32.mrb[93].mxu1  ;;  %v3522_v20 = vmax.f32 %v3513_v37, 0.0 }
 0x9c1   :  { %v3514_v1 = vadd.f32 %v7558_v60, %v3498_v55 }
 0x9c2   :  { %v3471_v7 = vpop.f32.mrb[94].mxu1 }
 0x9c3   :  { %v3499_v14 = vadd.f32 %v3471_v7, %v3362_v59  ;;  %v4565_v18 = vpop.f32.mrb[95].mxu1  ;;  %v3523_v59 = vmax.f32 %v3514_v1, 0.0 }
 0x9c5   :  { %v3515_v28 = vadd.f32 %v7558_v60, %v3499_v14  ;;  %v3532_v42 = vsel %vm2262_vm8, %v3523_v59, -inf }
 0x9c6   :  { %v3476_v33 = vpop.f32.mrb[96].mxu1 }
 0x9c7   :  { %v3524_v13 = vmax.f32 %v3515_v28, 0.0  ;;  %v3500_v26 = vadd.f32 %v3476_v33, %v3363_v62  ;;  %v4568_v31 = vpop.f32.mrb[97].mxu1  ;;  %v3531_v62 = vsel %vm2262_vm8, %v3522_v20, -inf }
 0x9c8   :  { %v4332_v47 = vpop.f32.mrb[32].mxu0 }
 0x9c9   :  { %v3533_v41 = vsel %vm2262_vm8, %v3524_v13, -inf  ;;  %v3516_v52 = vadd.f32 %v7558_v60, %v3500_v26  ;;  %v2898_v15 = vpop.f32.mrb[33].mxu0  ;;  %v2953_v46 = vadd.f32 %v4332_v47, %v3824_v40 }
 0x9ca   :  { %v3534_v44 = vmax.f32 %v7564_v17, %v3533_v41  ;;  %v3481_v51 = vpop.f32.mrb[98].mxu1  ;;  %v2952_v34 = vadd.f32 %v3824_v40, %v2898_v15 }
 0x9cb   :  { %v3525_v11 = vmax.f32 %v3516_v52, 0.0  ;;  %v3501_v43 = vadd.f32 %v3481_v51, %v3364_v6  ;;  %v4571_v2 = vpop.f32.mrb[99].mxu1  ;;  %v2961_v27 = vmax.f32 %v2953_v46, 0.0 }
 0x9cc   :  { %v4335_v5 = vpop.f32.mrb[34].mxu0  ;;  %v2960_v45 = vmax.f32 %v2952_v34, 0.0 }
 0x9cd   :  { %v3535_v39 = vsel %vm2262_vm8, %v3525_v11, -inf  ;;  %v3517_v8 = vadd.f32 %v7558_v60, %v3501_v43  ;;  %v2908_v56 = vpop.f32.mrb[35].mxu0  ;;  %v2955_v29 = vadd.f32 %v4335_v5, %v3824_v40 }
 0x9ce   :  { %v3536_v54 = vmax.f32 %v3530_v24, %v3535_v39  ;;  %v3486_v61 = vpop.f32.mrb[100].mxu1  ;;  %v2954_v50 = vadd.f32 %v3824_v40, %v2908_v56 }
 0x9cf   :  { %v3526_v48 = vmax.f32 %v3517_v8, 0.0  ;;  %v3502_v30 = vadd.f32 %v3486_v61, %v3365_v12  ;;  %v4574_v21 = vpop.f32.mrb[101].mxu1  ;;  %v2963_v0 = vmax.f32 %v2955_v29, 0.0 }
 0x9d0   :  { %v4338_v58 = vpop.f32.mrb[36].mxu0  ;;  %v2962_v33 = vmax.f32 %v2954_v50, 0.0 }
 0x9d1   :  { %v3537_v36 = vsel %vm2262_vm8, %v3526_v48, -inf  ;;  %v3518_v3 = vadd.f32 %v7558_v60, %v3502_v30  ;;  %v2957_v6 = vadd.f32 %v4338_v58, %v3824_v40  ;;  %v2918_v9 = vpop.f32.mrb[37].mxu0 }
 0x9d2   :  { %v3538_v16 = vmax.f32 %v3531_v62, %v3537_v36  ;;  %v2956_v19 = vadd.f32 %v3824_v40, %v2918_v9  ;;  %v3491_v25 = vpop.f32.mrb[102].mxu1 }
 0x9d3   :  { %v3527_v32 = vmax.f32 %v3518_v3, 0.0  ;;  %v2965_v35 = vmax.f32 %v2957_v6, 0.0  ;;  %v3503_v12 = vadd.f32 %v3491_v25, %v7553_v22  ;;  %v4577_v38 = vpop.f32.mrb[103].mxu1 }
 0x9d4   :  { %v2964_v53 = vmax.f32 %v2956_v19, 0.0  ;;  %v4341_v57 = vpop.f32.mrb[38].mxu0 }
 0x9d5   :  { %v3539_v63 = vsel %vm2262_vm8, %v3527_v32, -inf  ;;  %v2969_v55 = vmax.f32 %v2961_v27, %v2965_v35  ;;  %v3519_v4 = vadd.f32 %v7558_v60, %v3503_v12  ;;  %v2959_v10 = vadd.f32 %v4341_v57, %v3824_v40  ;;  %v2928_v7 = vpop.f32.mrb[39].mxu0 }
 0x9d6   :  { %v3540_v14 = vmax.f32 %v3532_v42, %v3539_v63  ;;  %v2968_v18 = vmax.f32 %v2960_v45, %v2964_v53  ;;  %v2958_v23 = vadd.f32 %v3824_v40, %v2928_v7  ;;  %v3875_v40 = vld [vmem:[%s7612_s11] ss:$0 sm:$0xff] }
 0x9d7   :  { %v3528_v28 = vmax.f32 %v3519_v4, 0.0  ;;  %v2967_v22 = vmax.f32 %v2959_v10, 0.0 }
 0x9d8   :  { %v3544_v13 = vmax.f32 %v3538_v16, %v3540_v14  ;;  %v2972_v26 = vmax.f32 %v2968_v18, %v2969_v55  ;;  %v2966_v31 = vmax.f32 %v2958_v23, 0.0 }
 0x9d9   :  { %v3541_v17 = vsel %vm2262_vm8, %v3528_v28, -inf  ;;  %v2971_v47 = vmax.f32 %v2963_v0, %v2967_v22 }
 0x9da   :  { %v3542_v49 = vmax.f32 %v3534_v44, %v3541_v17  ;;  %v2970_v37 = vmax.f32 %v2962_v33, %v2966_v31 }
 0x9dc   :  { %v3543_v41 = vmax.f32 %v3542_v49, %v3536_v54  ;;  %v2973_v52 = vmax.f32 %v2970_v37, %v2971_v47 }
 0x9de   :  { %v3545_v60 = vmax.f32 %v3543_v41, %v3544_v13  ;;  %v2974_v15 = vmax.f32 %v2972_v26, %v2973_v52 }
 0x9e0   :  { %4595 = vmatmul.mubr.msk.f32.vlgmr.msra.gmra.mrb[40].mxu0 %vm2262_vm8, %v3545_v60  ;;  %4630 = vmatmul.mubr.f32.vlgmr.msra.gmra.mrb[104].mxu1 %v2974_v15 }
 0xab3   :  { %v3639_v51 = vpop.f32.mrb[40].mxu0  ;;  %v3709_v11 = vpop.f32.mrb[104].mxu1 }
 0xab4   :  { %v4596_v43 = vpop.f32.mrb[41].mxu0  ;;  %v3710_v2 = vadd.f32 %v3709_v11, %v3639_v51  ;;  %v4631_v1 = vpop.f32.mrb[105].mxu1 }
 0xab6   :  { %v3720_v44 = vadd.f32 %v3875_v40, %v3710_v2 }
 0xab8   :  { %3722 = vst.msk [vmem:[#allocation9] sm:$0xff] %vm3721_vm10, %v3720_v44 }
 0xab9   :  { %5832 = shalt.err (!%p5829_p6)
}
 0xaba   :  { %s5833_s11 = scalar_lea.hbm %s7613_s12, 128 }
 0xabb   :  { %p5834_p7 = scmp.ne.s32.totalorder %s7613_s12, %s5833_s11  ;;  %p5837_p8 = scmp.lt.u32.totalorder %s5833_s11, %s7613_s12 }
 0xabd   :  { %p5839_p9 = pnand %p5837_p8, %p5834_p7 }
 0xabf   :  { %5842 = shalt.err (!%p5839_p9)
}
 0xac0   :  { %3732 = dma.vmem_to_hbm [thread:$0]  %s3730_s3, 128, %s7613_s12, [#allocation6]  }
 0xac1   :  { %5847 = dma.done.wait [#allocation6], 128  }
 0xac2   :  { %5848 = vsyncadd [#allocation6], 4294967168 }
 0xac3   :  { %3736 = vsyncpa [#allocation5], 1 }
 0xac4   :  { %3737 = vsyncpa [#allocation8], 1 }
 0xac5   :  { %3738 = vsyncpa [#allocation6], 1 }

</bundles_post_ra>
